<compile_context>
chip_gen: v7x
topology: tpu7x:2x2x1
jax: 0.10.0
libtpu: 0.0.40
codegen_flags: <defaults>
</compile_context>

<pallas_src>
import jax
import jax.numpy as jnp
from jax import lax
from jax.experimental import pallas as pl
from jax.experimental.pallas import tpu as pltpu

EPS = 1e-5


def _down_kernel(x_ref, w1_ref, b1_ref, w2_ref, b2_ref, g_ref, beta_ref,
                 out_ref, pad1_ref, pad2_ref):
    N, H, W, Cin = x_ref.shape
    Hp, Wp = H // 2, W // 2
    Cout = out_ref.shape[-1]
    R = N * Hp * Wp
    inv_r = 1.0 / R  # static

    # ---- MaxPool2d(kernel_size=2, stride=2) via strided loads.
    # (Strided pl.ds lowers cleanly here -- verified on HW; the reshape-based
    #  (N,Hp,2,Wp,2,C) variant risks an unsupported sublane relayout.)
    x00 = x_ref[:, pl.ds(0, Hp, stride=2), pl.ds(0, Wp, stride=2), :]
    x01 = x_ref[:, pl.ds(0, Hp, stride=2), pl.ds(1, Wp, stride=2), :]
    x10 = x_ref[:, pl.ds(1, Hp, stride=2), pl.ds(0, Wp, stride=2), :]
    x11 = x_ref[:, pl.ds(1, Hp, stride=2), pl.ds(1, Wp, stride=2), :]
    pooled = jnp.maximum(jnp.maximum(x00, x01), jnp.maximum(x10, x11))

    # ---- Zero-padded conv input: interior written once, only halo strips zeroed.
    def fill_padded(pad_ref, interior, c):
        pad_ref[:, 1:Hp + 1, 1:Wp + 1, :] = interior
        zrow = jnp.zeros((N, 1, Wp + 2, c), jnp.float32)
        pad_ref[:, 0:1, :, :] = zrow
        pad_ref[:, Hp + 1:Hp + 2, :, :] = zrow
        zcol = jnp.zeros((N, Hp, 1, c), jnp.float32)
        pad_ref[:, 1:Hp + 1, 0:1, :] = zcol
        pad_ref[:, 1:Hp + 1, Wp + 1:Wp + 2, :] = zcol

    # ---- Conv2d(c -> Cout, 3x3, padding=1) as ONE im2col matmul:
    #      col (R, 9*c) [bf16]  @  w (9*c, Cout) [bf16]  -> f32 accumulation.
    def conv3x3(pad_ref, w_ref, b_ref, c):
        taps = []
        for dy in range(3):
            for dx in range(3):
                taps.append(pad_ref[:, dy:dy + Hp, dx:dx + Wp, :].reshape(R, c))
        col = jnp.concatenate(taps, axis=1).astype(jnp.bfloat16)     # (R, 9*c)
        acc = jnp.dot(col, w_ref[...],
                      preferred_element_type=jnp.float32)            # (R, Cout)
        return acc + b_ref[...]

    # ---- BatchNorm2d (batch stats over N,H,W per channel, single pass) + ReLU.
    #      var = E[x^2] - E[x]^2 ; gamma/beta folded into one scale/shift FMA.
    def bn_relu(acc):
        s = jnp.sum(acc, axis=0, keepdims=True)
        ss = jnp.sum(acc * acc, axis=0, keepdims=True)
        mean = s * inv_r
        var = ss * inv_r - mean * mean
        scale = lax.rsqrt(var + EPS) * g_ref[...]
        shift = beta_ref[...] - mean * scale
        return jnp.maximum(acc * scale + shift, 0.0)

    fill_padded(pad1_ref, pooled, Cin)
    h1 = bn_relu(conv3x3(pad1_ref, w1_ref, b1_ref, Cin))              # (R, Cout)

    fill_padded(pad2_ref, h1.reshape(N, Hp, Wp, Cout), Cout)
    h2 = bn_relu(conv3x3(pad2_ref, w2_ref, b2_ref, Cout))             # (R, Cout)

    out_ref[...] = h2.reshape(N, Hp, Wp, Cout)


def down_pallas(x_nchw, params):
    """x_nchw: (N, Cin, H, W) float32, PyTorch layout. Returns (N, Cout, H/2, W/2)."""
    w1, b1, w2, b2, gamma, beta = params
    N, Cin, H, W = x_nchw.shape
    Cout = w1.shape[0]
    assert H % 2 == 0 and W % 2 == 0
    Hp, Wp = H // 2, W // 2
    R = N * Hp * Wp

    x_nhwc = jnp.transpose(x_nchw, (0, 2, 3, 1))
    # OIHW -> HWIO -> (9*Cin, Cout); bf16 operands for the MXU (f32 accumulation).
    w1k = jnp.transpose(w1, (2, 3, 1, 0)).reshape(9 * Cin, Cout).astype(jnp.bfloat16)
    w2k = jnp.transpose(w2, (2, 3, 1, 0)).reshape(9 * Cout, Cout).astype(jnp.bfloat16)

    flops = 2 * R * 9 * Cin * Cout + 2 * R * 9 * Cout * Cout
    bytes_accessed = (4 * (x_nhwc.size + R * Cout)            # activations in/out
                      + 2 * (w1k.size + w2k.size)             # bf16 weights
                      + 4 * 4 * Cout)                         # biases / gamma / beta
    cost = pl.CostEstimate(flops=flops, transcendentals=2 * Cout,
                           bytes_accessed=bytes_accessed)

    # Everything (input, output, both padded scratches) is VMEM-resident; raise the
    # scoped-VMEM limit above the 16/32 MiB defaults, capped at v7x's 64 MiB/TC.
    vmem_needed = (4 * (x_nhwc.size + R * Cout
                        + N * (Hp + 2) * (Wp + 2) * (Cin + Cout))
                   + 2 * (w1k.size + w2k.size))
    vmem_limit = int(min(max(2 * vmem_needed, 32 * 1024 * 1024), 64 * 1024 * 1024))

    out_nhwc = pl.pallas_call(
        _down_kernel,
        out_shape=jax.ShapeDtypeStruct((N, Hp, Wp, Cout), jnp.float32),
        in_specs=[pl.BlockSpec(memory_space=pltpu.MemorySpace.VMEM)] * 7,
        out_specs=pl.BlockSpec(memory_space=pltpu.MemorySpace.VMEM),
        scratch_shapes=[
            pltpu.VMEM((N, Hp + 2, Wp + 2, Cin), jnp.float32),   # padded pooled input
            pltpu.VMEM((N, Hp + 2, Wp + 2, Cout), jnp.float32),  # padded conv1 output
        ],
        compiler_params=pltpu.CompilerParams(vmem_limit_bytes=vmem_limit),
        cost_estimate=cost,
    )(x_nhwc, w1k, b1.reshape(1, Cout), w2k, b2.reshape(1, Cout),
      gamma.reshape(1, Cout), beta.reshape(1, Cout))

    return jnp.transpose(out_nhwc, (0, 3, 1, 2))


def down_reference(x_nchw, params):
    """Plain-JAX reference of the PyTorch forward (NCHW), for verification."""
    w1, b1, w2, b2, gamma, beta = params
    xp = lax.reduce_window(x_nchw, -jnp.inf, lax.max,
                           (1, 1, 2, 2), (1, 1, 2, 2), "VALID")

    def conv(x, w, b):
        y = lax.conv_general_dilated(x, w, (1, 1), "SAME",
                                     dimension_numbers=("NCHW", "OIHW", "NCHW"),
                                     precision=lax.Precision.HIGHEST)
        return y + b[None, :, None, None]

    def bn_relu(y):
        mean = y.mean(axis=(0, 2, 3), keepdims=True)
        var = ((y - mean) ** 2).mean(axis=(0, 2, 3), keepdims=True)
        yn = (y - mean) * lax.rsqrt(var + EPS)
        yn = yn * gamma[None, :, None, None] + beta[None, :, None, None]
        return jnp.maximum(yn, 0.0)

    y = bn_relu(conv(xp, w1, b1))
    return bn_relu(conv(y, w2, b2))


if __name__ == "__main__":
    N, Cin, H, W = 2, 4, 16, 16
    Cout = 8

    key = jax.random.PRNGKey(0)
    k_x, k_w1, k_b1, k_w2, k_b2 = jax.random.split(key, 5)

    x = jax.random.normal(k_x, (N, Cin, H, W), jnp.float32)
    # Deterministic synthetic params matching nn.Conv2d / nn.BatchNorm2d shapes.
    w1 = 0.2 * jax.random.normal(k_w1, (Cout, Cin, 3, 3), jnp.float32)
    b1 = 0.1 * jax.random.normal(k_b1, (Cout,), jnp.float32)
    w2 = 0.2 * jax.random.normal(k_w2, (Cout, Cout, 3, 3), jnp.float32)
    b2 = 0.1 * jax.random.normal(k_b2, (Cout,), jnp.float32)
    gamma = jnp.ones((Cout,), jnp.float32)   # BatchNorm default init
    beta = jnp.zeros((Cout,), jnp.float32)
    params = (w1, b1, w2, b2, gamma, beta)

    out = down_pallas(x, params)
    out = jax.block_until_ready(out)

    ref = jax.block_until_ready(down_reference(x, params))
    assert out.shape == (N, Cout, H // 2, W // 2), out.shape
    # Kernel uses bf16 MXU operands (f32 accumulation); reference is f32 HIGHEST.
    assert jnp.allclose(out, ref, atol=5e-2, rtol=5e-2), (
        "max abs diff = %g" % float(jnp.max(jnp.abs(out - ref))))

    # TODO(synk): BatchNorm running-stat updates (a training-time side effect) are not
    # represented; only the forward output is reproduced.
    print("KERNEL_OK")
</pallas_src>

<mosaic_0001>
module attributes {stable_mosaic.version = 11 : i64} {
  func.func @_down_kernel(%arg0: memref<2x16x16x4xf32, #tpu.memory_space<vmem>>, %arg1: memref<36x8xbf16, #tpu.memory_space<vmem>>, %arg2: memref<1x8xf32, #tpu.memory_space<vmem>>, %arg3: memref<72x8xbf16, #tpu.memory_space<vmem>>, %arg4: memref<1x8xf32, #tpu.memory_space<vmem>>, %arg5: memref<1x8xf32, #tpu.memory_space<vmem>>, %arg6: memref<1x8xf32, #tpu.memory_space<vmem>>, %arg7: memref<2x8x8x8xf32, #tpu.memory_space<vmem>>, %arg8: memref<2x10x10x4xf32, #tpu.memory_space<vmem>>, %arg9: memref<2x10x10x8xf32, #tpu.memory_space<vmem>>) attributes {dimension_semantics = [], scalar_prefetch = 0 : i64, scratch_operands = 2 : i64, tpu.core_type = #tpu.core_type<tc>} {
    %c0 = arith.constant 0 : index
    %c0_0 = arith.constant 0 : index
    %c0_1 = arith.constant 0 : index
    %c0_2 = arith.constant 0 : index
    %0 = tpu.strided_load %arg0[%c0, %c0_0, %c0_1, %c0_2] {strides = array<i32: 1, 2, 2, 1>} : memref<2x16x16x4xf32, #tpu.memory_space<vmem>>, vector<2x8x8x4xf32>
    %c0_3 = arith.constant 0 : index
    %c0_4 = arith.constant 0 : index
    %c1 = arith.constant 1 : index
    %c0_5 = arith.constant 0 : index
    %1 = tpu.strided_load %arg0[%c0_3, %c0_4, %c1, %c0_5] {strides = array<i32: 1, 2, 2, 1>} : memref<2x16x16x4xf32, #tpu.memory_space<vmem>>, vector<2x8x8x4xf32>
    %c0_6 = arith.constant 0 : index
    %c1_7 = arith.constant 1 : index
    %c0_8 = arith.constant 0 : index
    %c0_9 = arith.constant 0 : index
    %2 = tpu.strided_load %arg0[%c0_6, %c1_7, %c0_8, %c0_9] {strides = array<i32: 1, 2, 2, 1>} : memref<2x16x16x4xf32, #tpu.memory_space<vmem>>, vector<2x8x8x4xf32>
    %c0_10 = arith.constant 0 : index
    %c1_11 = arith.constant 1 : index
    %c1_12 = arith.constant 1 : index
    %c0_13 = arith.constant 0 : index
    %3 = tpu.strided_load %arg0[%c0_10, %c1_11, %c1_12, %c0_13] {strides = array<i32: 1, 2, 2, 1>} : memref<2x16x16x4xf32, #tpu.memory_space<vmem>>, vector<2x8x8x4xf32>
    %4 = arith.maximumf %0, %1 : vector<2x8x8x4xf32>
    %5 = arith.maximumf %2, %3 : vector<2x8x8x4xf32>
    %6 = arith.maximumf %4, %5 : vector<2x8x8x4xf32>
    %c0_14 = arith.constant 0 : index
    %c1_15 = arith.constant 1 : index
    %c1_16 = arith.constant 1 : index
    %c0_17 = arith.constant 0 : index
    %7 = vector.load %arg8[%c0_14, %c1_15, %c1_16, %c0_17] : memref<2x10x10x4xf32, #tpu.memory_space<vmem>>, vector<2x8x8x4xf32>
    tpu.vector_store %arg8[%c0_14, %c1_15, %c1_16, %c0_17], %6 {strides = array<i32>} : memref<2x10x10x4xf32, #tpu.memory_space<vmem>>, vector<2x8x8x4xf32>,
    %cst = arith.constant 0.000000e+00 : f32
    %8 = vector.broadcast %cst : f32 to vector<2x1x10x4xf32>
    %c0_18 = arith.constant 0 : index
    %c0_19 = arith.constant 0 : index
    %c0_20 = arith.constant 0 : index
    %c0_21 = arith.constant 0 : index
    %9 = vector.load %arg8[%c0_18, %c0_19, %c0_20, %c0_21] : memref<2x10x10x4xf32, #tpu.memory_space<vmem>>, vector<2x1x10x4xf32>
    tpu.vector_store %arg8[%c0_18, %c0_19, %c0_20, %c0_21], %8 {strides = array<i32>} : memref<2x10x10x4xf32, #tpu.memory_space<vmem>>, vector<2x1x10x4xf32>,
    %c0_22 = arith.constant 0 : index
    %c9 = arith.constant 9 : index
    %c0_23 = arith.constant 0 : index
    %c0_24 = arith.constant 0 : index
    %10 = vector.load %arg8[%c0_22, %c9, %c0_23, %c0_24] : memref<2x10x10x4xf32, #tpu.memory_space<vmem>>, vector<2x1x10x4xf32>
    tpu.vector_store %arg8[%c0_22, %c9, %c0_23, %c0_24], %8 {strides = array<i32>} : memref<2x10x10x4xf32, #tpu.memory_space<vmem>>, vector<2x1x10x4xf32>,
    %cst_25 = arith.constant 0.000000e+00 : f32
    %11 = vector.broadcast %cst_25 : f32 to vector<2x8x1x4xf32>
    %c0_26 = arith.constant 0 : index
    %c1_27 = arith.constant 1 : index
    %c0_28 = arith.constant 0 : index
    %c0_29 = arith.constant 0 : index
    %12 = vector.load %arg8[%c0_26, %c1_27, %c0_28, %c0_29] : memref<2x10x10x4xf32, #tpu.memory_space<vmem>>, vector<2x8x1x4xf32>
    tpu.vector_store %arg8[%c0_26, %c1_27, %c0_28, %c0_29], %11 {strides = array<i32>} : memref<2x10x10x4xf32, #tpu.memory_space<vmem>>, vector<2x8x1x4xf32>,
    %c0_30 = arith.constant 0 : index
    %c1_31 = arith.constant 1 : index
    %c9_32 = arith.constant 9 : index
    %c0_33 = arith.constant 0 : index
    %13 = vector.load %arg8[%c0_30, %c1_31, %c9_32, %c0_33] : memref<2x10x10x4xf32, #tpu.memory_space<vmem>>, vector<2x8x1x4xf32>
    tpu.vector_store %arg8[%c0_30, %c1_31, %c9_32, %c0_33], %11 {strides = array<i32>} : memref<2x10x10x4xf32, #tpu.memory_space<vmem>>, vector<2x8x1x4xf32>,
    %c0_34 = arith.constant 0 : index
    %c0_35 = arith.constant 0 : index
    %c0_36 = arith.constant 0 : index
    %c0_37 = arith.constant 0 : index
    %14 = vector.load %arg8[%c0_34, %c0_35, %c0_36, %c0_37] : memref<2x10x10x4xf32, #tpu.memory_space<vmem>>, vector<2x8x8x4xf32>
    %15 = vector.shape_cast %14 : vector<2x8x8x4xf32> to vector<128x4xf32>
    %c0_38 = arith.constant 0 : index
    %c0_39 = arith.constant 0 : index
    %c1_40 = arith.constant 1 : index
    %c0_41 = arith.constant 0 : index
    %16 = vector.load %arg8[%c0_38, %c0_39, %c1_40, %c0_41] : memref<2x10x10x4xf32, #tpu.memory_space<vmem>>, vector<2x8x8x4xf32>
    %17 = vector.shape_cast %16 : vector<2x8x8x4xf32> to vector<128x4xf32>
    %c0_42 = arith.constant 0 : index
    %c0_43 = arith.constant 0 : index
    %c2 = arith.constant 2 : index
    %c0_44 = arith.constant 0 : index
    %18 = vector.load %arg8[%c0_42, %c0_43, %c2, %c0_44] : memref<2x10x10x4xf32, #tpu.memory_space<vmem>>, vector<2x8x8x4xf32>
    %19 = vector.shape_cast %18 : vector<2x8x8x4xf32> to vector<128x4xf32>
    %c0_45 = arith.constant 0 : index
    %c1_46 = arith.constant 1 : index
    %c0_47 = arith.constant 0 : index
    %c0_48 = arith.constant 0 : index
    %20 = vector.load %arg8[%c0_45, %c1_46, %c0_47, %c0_48] : memref<2x10x10x4xf32, #tpu.memory_space<vmem>>, vector<2x8x8x4xf32>
    %21 = vector.shape_cast %20 : vector<2x8x8x4xf32> to vector<128x4xf32>
    %c0_49 = arith.constant 0 : index
    %c1_50 = arith.constant 1 : index
    %c1_51 = arith.constant 1 : index
    %c0_52 = arith.constant 0 : index
    %22 = vector.load %arg8[%c0_49, %c1_50, %c1_51, %c0_52] : memref<2x10x10x4xf32, #tpu.memory_space<vmem>>, vector<2x8x8x4xf32>
    %23 = vector.shape_cast %22 : vector<2x8x8x4xf32> to vector<128x4xf32>
    %c0_53 = arith.constant 0 : index
    %c1_54 = arith.constant 1 : index
    %c2_55 = arith.constant 2 : index
    %c0_56 = arith.constant 0 : index
    %24 = vector.load %arg8[%c0_53, %c1_54, %c2_55, %c0_56] : memref<2x10x10x4xf32, #tpu.memory_space<vmem>>, vector<2x8x8x4xf32>
    %25 = vector.shape_cast %24 : vector<2x8x8x4xf32> to vector<128x4xf32>
    %c0_57 = arith.constant 0 : index
    %c2_58 = arith.constant 2 : index
    %c0_59 = arith.constant 0 : index
    %c0_60 = arith.constant 0 : index
    %26 = vector.load %arg8[%c0_57, %c2_58, %c0_59, %c0_60] : memref<2x10x10x4xf32, #tpu.memory_space<vmem>>, vector<2x8x8x4xf32>
    %27 = vector.shape_cast %26 : vector<2x8x8x4xf32> to vector<128x4xf32>
    %c0_61 = arith.constant 0 : index
    %c2_62 = arith.constant 2 : index
    %c1_63 = arith.constant 1 : index
    %c0_64 = arith.constant 0 : index
    %28 = vector.load %arg8[%c0_61, %c2_62, %c1_63, %c0_64] : memref<2x10x10x4xf32, #tpu.memory_space<vmem>>, vector<2x8x8x4xf32>
    %29 = vector.shape_cast %28 : vector<2x8x8x4xf32> to vector<128x4xf32>
    %c0_65 = arith.constant 0 : index
    %c2_66 = arith.constant 2 : index
    %c2_67 = arith.constant 2 : index
    %c0_68 = arith.constant 0 : index
    %30 = vector.load %arg8[%c0_65, %c2_66, %c2_67, %c0_68] : memref<2x10x10x4xf32, #tpu.memory_space<vmem>>, vector<2x8x8x4xf32>
    %31 = vector.shape_cast %30 : vector<2x8x8x4xf32> to vector<128x4xf32>
    %32 = tpu.concatenate %15, %17, %19, %21, %23, %25, %27, %29, %31 in 1 : vector<128x4xf32>, vector<128x4xf32>, vector<128x4xf32>, vector<128x4xf32>, vector<128x4xf32>, vector<128x4xf32>, vector<128x4xf32>, vector<128x4xf32>, vector<128x4xf32> -> vector<128x36xf32>
    %33 = arith.truncf %32 : vector<128x36xf32> to vector<128x36xbf16>
    %c0_69 = arith.constant 0 : index
    %c0_70 = arith.constant 0 : index
    %34 = vector.load %arg1[%c0_69, %c0_70] : memref<36x8xbf16, #tpu.memory_space<vmem>>, vector<36x8xbf16>
    %cst_71 = arith.constant dense<0.000000e+00> : vector<128x8xf32>
    %35 = tpu.matmul %33, %34, %cst_71 {dimension_numbers = #tpu.dot_dimension_numbers<[1], [0], [0], [1], [0, 0, 1, 1], [], []>} : vector<128x36xbf16>, vector<36x8xbf16>, vector<128x8xf32> -> vector<128x8xf32>
    %c0_72 = arith.constant 0 : index
    %c0_73 = arith.constant 0 : index
    %36 = vector.load %arg2[%c0_72, %c0_73] : memref<1x8xf32, #tpu.memory_space<vmem>>, vector<1x8xf32>
    %37 = vector.broadcast %36 : vector<1x8xf32> to vector<128x8xf32>
    %38 = arith.addf %35, %37 : vector<128x8xf32>
    %cst_74 = arith.constant dense<0.000000e+00> : vector<8xf32>
    %39 = vector.multi_reduction <add>, %38, %cst_74 [0] : vector<128x8xf32> to vector<8xf32>
    %40 = vector.shape_cast %39 : vector<8xf32> to vector<1x8xf32>
    %41 = arith.mulf %38, %38 : vector<128x8xf32>
    %cst_75 = arith.constant dense<0.000000e+00> : vector<8xf32>
    %42 = vector.multi_reduction <add>, %41, %cst_75 [0] : vector<128x8xf32> to vector<8xf32>
    %43 = vector.shape_cast %42 : vector<8xf32> to vector<1x8xf32>
    %cst_76 = arith.constant 7.812500e-03 : f32
    %44 = vector.broadcast %cst_76 : f32 to vector<1x8xf32>
    %45 = arith.mulf %40, %44 : vector<1x8xf32>
    %cst_77 = arith.constant 7.812500e-03 : f32
    %46 = vector.broadcast %cst_77 : f32 to vector<1x8xf32>
    %47 = arith.mulf %43, %46 : vector<1x8xf32>
    %48 = arith.mulf %45, %45 : vector<1x8xf32>
    %49 = arith.subf %47, %48 : vector<1x8xf32>
    %cst_78 = arith.constant 9.99999974E-6 : f32
    %50 = vector.broadcast %cst_78 : f32 to vector<1x8xf32>
    %51 = arith.addf %49, %50 : vector<1x8xf32>
    %52 = math.rsqrt %51 : vector<1x8xf32>
    %c0_79 = arith.constant 0 : index
    %c0_80 = arith.constant 0 : index
    %53 = vector.load %arg5[%c0_79, %c0_80] : memref<1x8xf32, #tpu.memory_space<vmem>>, vector<1x8xf32>
    %54 = arith.mulf %52, %53 : vector<1x8xf32>
    %c0_81 = arith.constant 0 : index
    %c0_82 = arith.constant 0 : index
    %55 = vector.load %arg6[%c0_81, %c0_82] : memref<1x8xf32, #tpu.memory_space<vmem>>, vector<1x8xf32>
    %56 = arith.mulf %45, %54 : vector<1x8xf32>
    %57 = arith.subf %55, %56 : vector<1x8xf32>
    %58 = vector.broadcast %54 : vector<1x8xf32> to vector<128x8xf32>
    %59 = arith.mulf %38, %58 : vector<128x8xf32>
    %60 = vector.broadcast %57 : vector<1x8xf32> to vector<128x8xf32>
    %61 = arith.addf %59, %60 : vector<128x8xf32>
    %cst_83 = arith.constant 0.000000e+00 : f32
    %62 = vector.broadcast %cst_83 : f32 to vector<128x8xf32>
    %63 = arith.maximumf %61, %62 : vector<128x8xf32>
    %64 = vector.shape_cast %63 : vector<128x8xf32> to vector<2x8x8x8xf32>
    %c0_84 = arith.constant 0 : index
    %c1_85 = arith.constant 1 : index
    %c1_86 = arith.constant 1 : index
    %c0_87 = arith.constant 0 : index
    %65 = vector.load %arg9[%c0_84, %c1_85, %c1_86, %c0_87] : memref<2x10x10x8xf32, #tpu.memory_space<vmem>>, vector<2x8x8x8xf32>
    tpu.vector_store %arg9[%c0_84, %c1_85, %c1_86, %c0_87], %64 {strides = array<i32>} : memref<2x10x10x8xf32, #tpu.memory_space<vmem>>, vector<2x8x8x8xf32>,
    %cst_88 = arith.constant 0.000000e+00 : f32
    %66 = vector.broadcast %cst_88 : f32 to vector<2x1x10x8xf32>
    %c0_89 = arith.constant 0 : index
    %c0_90 = arith.constant 0 : index
    %c0_91 = arith.constant 0 : index
    %c0_92 = arith.constant 0 : index
    %67 = vector.load %arg9[%c0_89, %c0_90, %c0_91, %c0_92] : memref<2x10x10x8xf32, #tpu.memory_space<vmem>>, vector<2x1x10x8xf32>
    tpu.vector_store %arg9[%c0_89, %c0_90, %c0_91, %c0_92], %66 {strides = array<i32>} : memref<2x10x10x8xf32, #tpu.memory_space<vmem>>, vector<2x1x10x8xf32>,
    %c0_93 = arith.constant 0 : index
    %c9_94 = arith.constant 9 : index
    %c0_95 = arith.constant 0 : index
    %c0_96 = arith.constant 0 : index
    %68 = vector.load %arg9[%c0_93, %c9_94, %c0_95, %c0_96] : memref<2x10x10x8xf32, #tpu.memory_space<vmem>>, vector<2x1x10x8xf32>
    tpu.vector_store %arg9[%c0_93, %c9_94, %c0_95, %c0_96], %66 {strides = array<i32>} : memref<2x10x10x8xf32, #tpu.memory_space<vmem>>, vector<2x1x10x8xf32>,
    %cst_97 = arith.constant 0.000000e+00 : f32
    %69 = vector.broadcast %cst_97 : f32 to vector<2x8x1x8xf32>
    %c0_98 = arith.constant 0 : index
    %c1_99 = arith.constant 1 : index
    %c0_100 = arith.constant 0 : index
    %c0_101 = arith.constant 0 : index
    %70 = vector.load %arg9[%c0_98, %c1_99, %c0_100, %c0_101] : memref<2x10x10x8xf32, #tpu.memory_space<vmem>>, vector<2x8x1x8xf32>
    tpu.vector_store %arg9[%c0_98, %c1_99, %c0_100, %c0_101], %69 {strides = array<i32>} : memref<2x10x10x8xf32, #tpu.memory_space<vmem>>, vector<2x8x1x8xf32>,
    %c0_102 = arith.constant 0 : index
    %c1_103 = arith.constant 1 : index
    %c9_104 = arith.constant 9 : index
    %c0_105 = arith.constant 0 : index
    %71 = vector.load %arg9[%c0_102, %c1_103, %c9_104, %c0_105] : memref<2x10x10x8xf32, #tpu.memory_space<vmem>>, vector<2x8x1x8xf32>
    tpu.vector_store %arg9[%c0_102, %c1_103, %c9_104, %c0_105], %69 {strides = array<i32>} : memref<2x10x10x8xf32, #tpu.memory_space<vmem>>, vector<2x8x1x8xf32>,
    %c0_106 = arith.constant 0 : index
    %c0_107 = arith.constant 0 : index
    %c0_108 = arith.constant 0 : index
    %c0_109 = arith.constant 0 : index
    %72 = vector.load %arg9[%c0_106, %c0_107, %c0_108, %c0_109] : memref<2x10x10x8xf32, #tpu.memory_space<vmem>>, vector<2x8x8x8xf32>
    %73 = vector.shape_cast %72 : vector<2x8x8x8xf32> to vector<128x8xf32>
    %c0_110 = arith.constant 0 : index
    %c0_111 = arith.constant 0 : index
    %c1_112 = arith.constant 1 : index
    %c0_113 = arith.constant 0 : index
    %74 = vector.load %arg9[%c0_110, %c0_111, %c1_112, %c0_113] : memref<2x10x10x8xf32, #tpu.memory_space<vmem>>, vector<2x8x8x8xf32>
    %75 = vector.shape_cast %74 : vector<2x8x8x8xf32> to vector<128x8xf32>
    %c0_114 = arith.constant 0 : index
    %c0_115 = arith.constant 0 : index
    %c2_116 = arith.constant 2 : index
    %c0_117 = arith.constant 0 : index
    %76 = vector.load %arg9[%c0_114, %c0_115, %c2_116, %c0_117] : memref<2x10x10x8xf32, #tpu.memory_space<vmem>>, vector<2x8x8x8xf32>
    %77 = vector.shape_cast %76 : vector<2x8x8x8xf32> to vector<128x8xf32>
    %c0_118 = arith.constant 0 : index
    %c1_119 = arith.constant 1 : index
    %c0_120 = arith.constant 0 : index
    %c0_121 = arith.constant 0 : index
    %78 = vector.load %arg9[%c0_118, %c1_119, %c0_120, %c0_121] : memref<2x10x10x8xf32, #tpu.memory_space<vmem>>, vector<2x8x8x8xf32>
    %79 = vector.shape_cast %78 : vector<2x8x8x8xf32> to vector<128x8xf32>
    %c0_122 = arith.constant 0 : index
    %c1_123 = arith.constant 1 : index
    %c1_124 = arith.constant 1 : index
    %c0_125 = arith.constant 0 : index
    %80 = vector.load %arg9[%c0_122, %c1_123, %c1_124, %c0_125] : memref<2x10x10x8xf32, #tpu.memory_space<vmem>>, vector<2x8x8x8xf32>
    %81 = vector.shape_cast %80 : vector<2x8x8x8xf32> to vector<128x8xf32>
    %c0_126 = arith.constant 0 : index
    %c1_127 = arith.constant 1 : index
    %c2_128 = arith.constant 2 : index
    %c0_129 = arith.constant 0 : index
    %82 = vector.load %arg9[%c0_126, %c1_127, %c2_128, %c0_129] : memref<2x10x10x8xf32, #tpu.memory_space<vmem>>, vector<2x8x8x8xf32>
    %83 = vector.shape_cast %82 : vector<2x8x8x8xf32> to vector<128x8xf32>
    %c0_130 = arith.constant 0 : index
    %c2_131 = arith.constant 2 : index
    %c0_132 = arith.constant 0 : index
    %c0_133 = arith.constant 0 : index
    %84 = vector.load %arg9[%c0_130, %c2_131, %c0_132, %c0_133] : memref<2x10x10x8xf32, #tpu.memory_space<vmem>>, vector<2x8x8x8xf32>
    %85 = vector.shape_cast %84 : vector<2x8x8x8xf32> to vector<128x8xf32>
    %c0_134 = arith.constant 0 : index
    %c2_135 = arith.constant 2 : index
    %c1_136 = arith.constant 1 : index
    %c0_137 = arith.constant 0 : index
    %86 = vector.load %arg9[%c0_134, %c2_135, %c1_136, %c0_137] : memref<2x10x10x8xf32, #tpu.memory_space<vmem>>, vector<2x8x8x8xf32>
    %87 = vector.shape_cast %86 : vector<2x8x8x8xf32> to vector<128x8xf32>
    %c0_138 = arith.constant 0 : index
    %c2_139 = arith.constant 2 : index
    %c2_140 = arith.constant 2 : index
    %c0_141 = arith.constant 0 : index
    %88 = vector.load %arg9[%c0_138, %c2_139, %c2_140, %c0_141] : memref<2x10x10x8xf32, #tpu.memory_space<vmem>>, vector<2x8x8x8xf32>
    %89 = vector.shape_cast %88 : vector<2x8x8x8xf32> to vector<128x8xf32>
    %90 = tpu.concatenate %73, %75, %77, %79, %81, %83, %85, %87, %89 in 1 : vector<128x8xf32>, vector<128x8xf32>, vector<128x8xf32>, vector<128x8xf32>, vector<128x8xf32>, vector<128x8xf32>, vector<128x8xf32>, vector<128x8xf32>, vector<128x8xf32> -> vector<128x72xf32>
    %91 = arith.truncf %90 : vector<128x72xf32> to vector<128x72xbf16>
    %c0_142 = arith.constant 0 : index
    %c0_143 = arith.constant 0 : index
    %92 = vector.load %arg3[%c0_142, %c0_143] : memref<72x8xbf16, #tpu.memory_space<vmem>>, vector<72x8xbf16>
    %cst_144 = arith.constant dense<0.000000e+00> : vector<128x8xf32>
    %93 = tpu.matmul %91, %92, %cst_144 {dimension_numbers = #tpu.dot_dimension_numbers<[1], [0], [0], [1], [0, 0, 1, 1], [], []>} : vector<128x72xbf16>, vector<72x8xbf16>, vector<128x8xf32> -> vector<128x8xf32>
    %c0_145 = arith.constant 0 : index
    %c0_146 = arith.constant 0 : index
    %94 = vector.load %arg4[%c0_145, %c0_146] : memref<1x8xf32, #tpu.memory_space<vmem>>, vector<1x8xf32>
    %95 = vector.broadcast %94 : vector<1x8xf32> to vector<128x8xf32>
    %96 = arith.addf %93, %95 : vector<128x8xf32>
    %cst_147 = arith.constant dense<0.000000e+00> : vector<8xf32>
    %97 = vector.multi_reduction <add>, %96, %cst_147 [0] : vector<128x8xf32> to vector<8xf32>
    %98 = vector.shape_cast %97 : vector<8xf32> to vector<1x8xf32>
    %99 = arith.mulf %96, %96 : vector<128x8xf32>
    %cst_148 = arith.constant dense<0.000000e+00> : vector<8xf32>
    %100 = vector.multi_reduction <add>, %99, %cst_148 [0] : vector<128x8xf32> to vector<8xf32>
    %101 = vector.shape_cast %100 : vector<8xf32> to vector<1x8xf32>
    %cst_149 = arith.constant 7.812500e-03 : f32
    %102 = vector.broadcast %cst_149 : f32 to vector<1x8xf32>
    %103 = arith.mulf %98, %102 : vector<1x8xf32>
    %cst_150 = arith.constant 7.812500e-03 : f32
    %104 = vector.broadcast %cst_150 : f32 to vector<1x8xf32>
    %105 = arith.mulf %101, %104 : vector<1x8xf32>
    %106 = arith.mulf %103, %103 : vector<1x8xf32>
    %107 = arith.subf %105, %106 : vector<1x8xf32>
    %cst_151 = arith.constant 9.99999974E-6 : f32
    %108 = vector.broadcast %cst_151 : f32 to vector<1x8xf32>
    %109 = arith.addf %107, %108 : vector<1x8xf32>
    %110 = math.rsqrt %109 : vector<1x8xf32>
    %c0_152 = arith.constant 0 : index
    %c0_153 = arith.constant 0 : index
    %111 = vector.load %arg5[%c0_152, %c0_153] : memref<1x8xf32, #tpu.memory_space<vmem>>, vector<1x8xf32>
    %112 = arith.mulf %110, %111 : vector<1x8xf32>
    %c0_154 = arith.constant 0 : index
    %c0_155 = arith.constant 0 : index
    %113 = vector.load %arg6[%c0_154, %c0_155] : memref<1x8xf32, #tpu.memory_space<vmem>>, vector<1x8xf32>
    %114 = arith.mulf %103, %112 : vector<1x8xf32>
    %115 = arith.subf %113, %114 : vector<1x8xf32>
    %116 = vector.broadcast %112 : vector<1x8xf32> to vector<128x8xf32>
    %117 = arith.mulf %96, %116 : vector<128x8xf32>
    %118 = vector.broadcast %115 : vector<1x8xf32> to vector<128x8xf32>
    %119 = arith.addf %117, %118 : vector<128x8xf32>
    %cst_156 = arith.constant 0.000000e+00 : f32
    %120 = vector.broadcast %cst_156 : f32 to vector<128x8xf32>
    %121 = arith.maximumf %119, %120 : vector<128x8xf32>
    %122 = vector.shape_cast %121 : vector<128x8xf32> to vector<2x8x8x8xf32>
    %c0_157 = arith.constant 0 : index
    %c0_158 = arith.constant 0 : index
    %c0_159 = arith.constant 0 : index
    %c0_160 = arith.constant 0 : index
    %123 = vector.load %arg7[%c0_157, %c0_158, %c0_159, %c0_160] : memref<2x8x8x8xf32, #tpu.memory_space<vmem>>, vector<2x8x8x8xf32>
    tpu.vector_store %arg7[%c0_157, %c0_158, %c0_159, %c0_160], %122 {strides = array<i32>} : memref<2x8x8x8xf32, #tpu.memory_space<vmem>>, vector<2x8x8x8xf32>,
    return
  }
}

</mosaic_0001>

<bundles_post_ra>
// kernel: tpu_custom_call.1
= control target key start
LH: loop header
LB: loop body
LE: loop exit
PB: predicated region body
PF: predicated region fallthrough
CT: control target
= control target key end

     0   :  { %vm204_vm0 = vcmask 31744   ;;  %vm222_vm1 = vcmask 25600   ;;  %v3478_v6 = vmov 0.0   ;;  %vm231_vm2 = vcmask 24576   ;;  %s3479_s25 = smov 8   ;;  %s3480_s26 = smov 4   ;;  %s4880_s0 = inlined_call_operand.vmem [shape: f32[2,16,16,4], index: 0, kind: input, shape index: {}]   ;;  %s4881_s1 = inlined_call_operand.vmem [shape: bf16[36,8], index: 1, kind: input, shape index: {}]   ;;  %s4882_s2 = inlined_call_operand.vmem [shape: f32[1,8], index: 2, kind: input, shape index: {}]   ;;  %s4883_s3 = inlined_call_operand.vmem [shape: bf16[72,8], index: 3, kind: input, shape index: {}]   ;;  %s4884_s4 = inlined_call_operand.vmem [shape: f32[1,8], index: 4, kind: input, shape index: {}]   ;;  %s4885_s5 = inlined_call_operand.vmem [shape: f32[1,8], index: 5, kind: input, shape index: {}]   ;;  %s4886_s6 = inlined_call_operand.vmem [shape: f32[1,8], index: 6, kind: input, shape index: {}]   ;;  %s4887_s7 = inlined_call_operand.hbm [shape: f32[2,8,8,8], index: 7, kind: output, shape index: {}]  }
   0x1   :  { %v28_v0 = vld [vmem:[%s4880_s0] ss:$2 sm:$0xff]  ;;  %v2639_v1 = vld [vmem:[%s4880_s0 + $0x1] ss:$2 sm:$0xff]  ;;  %v2655_v2 = vld [vmem:[%s4880_s0 + $0x10] ss:$2 sm:$0xff] }
   0x2   :  { %v2671_v3 = vld [vmem:[%s4880_s0 + $0x11] ss:$2 sm:$0xff]  ;;  %v155_v4 = vmax.f32 %v28_v0, %v2639_v1  ;;  %221 = vst.msk [vmem:[#allocation2] sm:$0xff] %vm204_vm0, %v3478_v6  ;;  %224 = vst.msk [vmem:[#allocation2 + $0xa0] sm:$0xff] %vm204_vm0, %v3478_v6  ;;  %v2624_v7 = vld [vmem:[%s4880_s0 + $0x20] ss:$2 sm:$0xff] }
   0x3   :  { %v171_v5 = vmax.f32 %v2655_v2, %v2671_v3  ;;  %223 = vst.msk [vmem:[#allocation2 + $0x8] sm:$0x3] %vm222_vm1, %v3478_v6  ;;  %225 = vst.msk [vmem:[#allocation2 + $0xa8] sm:$0x3] %vm222_vm1, %v3478_v6  ;;  %v2625_v8 = vld [vmem:[%s4880_s0 + $0x40] ss:$2 sm:$0xff] }
   0x4   :  { %227 = vst.msk [vmem:[#allocation2 + $0x90] sm:$0xff] %vm204_vm0, %v3478_v6  ;;  %229 = vst.msk [vmem:[#allocation2 + $0x130] sm:$0xff] %vm204_vm0, %v3478_v6  ;;  %v2640_v9 = vld [vmem:[%s4880_s0 + $0x21] ss:$2 sm:$0xff]  ;;  %v2656_v11 = vld [vmem:[%s4880_s0 + $0x30] ss:$2 sm:$0xff] }
   0x5   :  { %228 = vst.msk [vmem:[#allocation2 + $0x98] sm:$0x3] %vm222_vm1, %v3478_v6  ;;  %230 = vst.msk [vmem:[#allocation2 + $0x138] sm:$0x3] %vm222_vm1, %v3478_v6  ;;  %v2641_v10 = vld [vmem:[%s4880_s0 + $0x41] ss:$2 sm:$0xff]  ;;  %v187_v12 = vmax.f32 %v155_v4, %v171_v5  ;;  %v156_v16 = vmax.f32 %v2624_v7, %v2640_v9 }
   0x6   :  { %248 = vst.msk [vmem:[#allocation2 + $0x19] sm:$0x1] %vm231_vm2, %v3478_v6  ;;  %232 = vst.msk [vmem:[#allocation2 + $0x10] sm:$0x1] %vm231_vm2, %v3478_v6  ;;  %v2657_v13 = vld [vmem:[%s4880_s0 + $0x50] ss:$2 sm:$0xff]  ;;  %v157_v17 = vmax.f32 %v2625_v8, %v2641_v10 }
   0x7   :  { %233 = vst.msk [vmem:[#allocation2 + $0x20] sm:$0x1] %vm231_vm2, %v3478_v6  ;;  %234 = vst.msk [vmem:[#allocation2 + $0x30] sm:$0x1] %vm231_vm2, %v3478_v6  ;;  %v2672_v14 = vld [vmem:[%s4880_s0 + $0x31] ss:$2 sm:$0xff] }
   0x8   :  { %235 = vst.msk [vmem:[#allocation2 + $0x40] sm:$0x1] %vm231_vm2, %v3478_v6  ;;  %236 = vst.msk [vmem:[#allocation2 + $0x50] sm:$0x1] %vm231_vm2, %v3478_v6  ;;  %v2673_v15 = vld [vmem:[%s4880_s0 + $0x51] ss:$2 sm:$0xff]  ;;  %v172_v18 = vmax.f32 %v2656_v11, %v2672_v14 }
   0x9   :  { %237 = vst.msk [vmem:[#allocation2 + $0x60] sm:$0x1] %vm231_vm2, %v3478_v6  ;;  %238 = vst.msk [vmem:[#allocation2 + $0x70] sm:$0x1] %vm231_vm2, %v3478_v6  ;;  %v173_v19 = vmax.f32 %v2657_v13, %v2673_v15  ;;  %v2626_v20 = vld [vmem:[%s4880_s0 + $0x60] ss:$2 sm:$0xff] }
   0xa   :  { %239 = vst.msk [vmem:[#allocation2 + $0x80] sm:$0x1] %vm231_vm2, %v3478_v6  ;;  %240 = vst.msk [vmem:[#allocation2 + $0xb0] sm:$0x1] %vm231_vm2, %v3478_v6  ;;  %v2642_v21 = vld [vmem:[%s4880_s0 + $0x61] ss:$2 sm:$0xff]  ;;  %v188_v26 = vmax.f32 %v156_v16, %v172_v18 }
   0xb   :  { %241 = vst.msk [vmem:[#allocation2 + $0xc0] sm:$0x1] %vm231_vm2, %v3478_v6  ;;  %242 = vst.msk [vmem:[#allocation2 + $0xd0] sm:$0x1] %vm231_vm2, %v3478_v6  ;;  %v2658_v22 = vld [vmem:[%s4880_s0 + $0x70] ss:$2 sm:$0xff]  ;;  %v158_v24 = vmax.f32 %v2626_v20, %v2642_v21  ;;  %v189_v27 = vmax.f32 %v157_v17, %v173_v19 }
   0xc   :  { %243 = vst.msk [vmem:[#allocation2 + $0xe0] sm:$0x1] %vm231_vm2, %v3478_v6  ;;  %244 = vst.msk [vmem:[#allocation2 + $0xf0] sm:$0x1] %vm231_vm2, %v3478_v6  ;;  %v2674_v23 = vld [vmem:[%s4880_s0 + $0x71] ss:$2 sm:$0xff] }
   0xd   :  { %245 = vst.msk [vmem:[#allocation2 + $0x100] sm:$0x1] %vm231_vm2, %v3478_v6  ;;  %246 = vst.msk [vmem:[#allocation2 + $0x110] sm:$0x1] %vm231_vm2, %v3478_v6  ;;  %v2627_v25 = vld [vmem:[%s4880_s0 + $0x80] ss:$2 sm:$0xff]  ;;  %v174_v28 = vmax.f32 %v2658_v22, %v2674_v23 }
   0xe   :  { %247 = vst.msk [vmem:[#allocation2 + $0x120] sm:$0x1] %vm231_vm2, %v3478_v6  ;;  %249 = vst.msk [vmem:[#allocation2 + $0x29] sm:$0x1] %vm231_vm2, %v3478_v6  ;;  %v2643_v29 = vld [vmem:[%s4880_s0 + $0x81] ss:$2 sm:$0xff] }
   0xf   :  { %250 = vst.msk [vmem:[#allocation2 + $0x39] sm:$0x1] %vm231_vm2, %v3478_v6  ;;  %251 = vst.msk [vmem:[#allocation2 + $0x49] sm:$0x1] %vm231_vm2, %v3478_v6  ;;  %v2659_v30 = vld [vmem:[%s4880_s0 + $0x90] ss:$2 sm:$0xff]  ;;  %v159_v32 = vmax.f32 %v2627_v25, %v2643_v29  ;;  %v190_v36 = vmax.f32 %v158_v24, %v174_v28 }
  0x10   :  { %252 = vst.msk [vmem:[#allocation2 + $0x59] sm:$0x1] %vm231_vm2, %v3478_v6  ;;  %253 = vst.msk [vmem:[#allocation2 + $0x69] sm:$0x1] %vm231_vm2, %v3478_v6  ;;  %v2675_v31 = vld [vmem:[%s4880_s0 + $0x91] ss:$2 sm:$0xff] }
  0x11   :  { %254 = vst.msk [vmem:[#allocation2 + $0x79] sm:$0x1] %vm231_vm2, %v3478_v6  ;;  %255 = vst.msk [vmem:[#allocation2 + $0x89] sm:$0x1] %vm231_vm2, %v3478_v6  ;;  %v2628_v33 = vld [vmem:[%s4880_s0 + $0xa0] ss:$2 sm:$0xff]  ;;  %v175_v37 = vmax.f32 %v2659_v30, %v2675_v31 }
  0x12   :  { %256 = vst.msk [vmem:[#allocation2 + $0xb9] sm:$0x1] %vm231_vm2, %v3478_v6  ;;  %257 = vst.msk [vmem:[#allocation2 + $0xc9] sm:$0x1] %vm231_vm2, %v3478_v6  ;;  %v296_v34 = vld [vmem:[#allocation2 + $0x2] sm:$0xff]  ;;  %vm937_vm3 = vcmask 64512  }
  0x13   :  { %258 = vst.msk [vmem:[#allocation2 + $0xd9] sm:$0x1] %vm231_vm2, %v3478_v6  ;;  %259 = vst.msk [vmem:[#allocation2 + $0xe9] sm:$0x1] %vm231_vm2, %v3478_v6  ;;  %v280_v35 = vld [vmem:[#allocation2 + $0x1] sm:$0xff]  ;;  %v191_v42 = vmax.f32 %v159_v32, %v175_v37  ;;  %s3481_s20 = smov 12  }
  0x14   :  { %260 = vst.msk [vmem:[#allocation2 + $0xf9] sm:$0x1] %vm231_vm2, %v3478_v6  ;;  %261 = vst.msk [vmem:[#allocation2 + $0x109] sm:$0x1] %vm231_vm2, %v3478_v6  ;;  %v2629_v38 = vld [vmem:[%s4880_s0 + $0xc0] ss:$2 sm:$0xff] }
  0x15   :  { %262 = vst.msk [vmem:[#allocation2 + $0x119] sm:$0x1] %vm231_vm2, %v3478_v6  ;;  %263 = vst.msk [vmem:[#allocation2 + $0x129] sm:$0x1] %vm231_vm2, %v3478_v6  ;;  %v2644_v39 = vld [vmem:[%s4880_s0 + $0xa1] ss:$2 sm:$0xff] }
  0x16   :  { %205 = vst.msk [vmem:[#allocation2 + $0x11] sm:$0xff] %vm204_vm0, %v187_v12  ;;  %206 = vst.msk [vmem:[#allocation2 + $0x21] sm:$0xff] %vm204_vm0, %v188_v26  ;;  %v2645_v40 = vld [vmem:[%s4880_s0 + $0xc1] ss:$2 sm:$0xff]  ;;  %v2660_v41 = vld [vmem:[%s4880_s0 + $0xb0] ss:$2 sm:$0xff]  ;;  %v160_v46 = vmax.f32 %v2628_v33, %v2644_v39 }
  0x17   :  { %207 = vst.msk [vmem:[#allocation2 + $0x31] sm:$0xff] %vm204_vm0, %v189_v27  ;;  %208 = vst.msk [vmem:[#allocation2 + $0x41] sm:$0xff] %vm204_vm0, %v190_v36  ;;  %v2661_v43 = vld [vmem:[%s4880_s0 + $0xd0] ss:$2 sm:$0xff]  ;;  %v2676_v44 = vld [vmem:[%s4880_s0 + $0xb1] ss:$2 sm:$0xff]  ;;  %v161_v47 = vmax.f32 %v2629_v38, %v2645_v40 }
  0x18   :  { %1393 = vst.msk [vmem:[#allocation3] sm:$0xff] %vm937_vm3, %v3478_v6  ;;  %1396 = vst.msk [vmem:[#allocation3 + $0xa0] sm:$0xff] %vm937_vm3, %v3478_v6  ;;  %v2677_v45 = vld [vmem:[%s4880_s0 + $0xd1] ss:$2 sm:$0xff]  ;;  %v176_v48 = vmax.f32 %v2660_v41, %v2676_v44  ;;  %v2630_v50 = vld [vmem:[%s4880_s0 + $0xe0] ss:$2 sm:$0xff] }
  0x19   :  { %1399 = vst.msk [vmem:[#allocation3 + $0x90] sm:$0xff] %vm937_vm3, %v3478_v6  ;;  %1401 = vst.msk [vmem:[#allocation3 + $0x130] sm:$0xff] %vm937_vm3, %v3478_v6  ;;  %v177_v49 = vmax.f32 %v2661_v43, %v2677_v45  ;;  %v2646_v51 = vld [vmem:[%s4880_s0 + $0xe1] ss:$2 sm:$0xff]  ;;  %v2662_v52 = vld [vmem:[%s4880_s0 + $0xf0] ss:$2 sm:$0xff] }
  0x1a   :  { %209 = vst.msk [vmem:[#allocation2 + $0x51] sm:$0xff] %vm204_vm0, %v191_v42  ;;  %v162_v55 = vmax.f32 %v2630_v50, %v2646_v51  ;;  %v192_v58 = vmax.f32 %v160_v46, %v176_v48  ;;  %v2678_v60 = vld [vmem:[%s4880_s0 + $0xf1] ss:$2 sm:$0xff]  ;;  %v2631_v63 = vld [vmem:[%s4880_s0 + $0x100] ss:$2 sm:$0xff]  ;;  %s3482_s8 = smov 16  }
  0x1b   :  { %v193_v59 = vmax.f32 %v161_v47, %v177_v49  ;;  %v178_v62 = vmax.f32 %v2662_v52, %v2678_v60  ;;  %v2647_v0 = vld [vmem:[%s4880_s0 + $0x101] ss:$2 sm:$0xff]  ;;  %v2663_v1 = vld [vmem:[%s4880_s0 + $0x110] ss:$2 sm:$0xff]  ;;  %v2679_v14 = vld [vmem:[%s4880_s0 + $0x111] ss:$2 sm:$0xff] }
  0x1c   :  { %210 = vst.msk [vmem:[#allocation2 + $0x61] sm:$0xff] %vm204_vm0, %v192_v58  ;;  %v163_v13 = vmax.f32 %v2631_v63, %v2647_v0  ;;  %v2632_v15 = vld [vmem:[%s4880_s0 + $0x120] ss:$2 sm:$0xff]  ;;  %v179_v19 = vmax.f32 %v2663_v1, %v2679_v14  ;;  %v2648_v21 = vld [vmem:[%s4880_s0 + $0x121] ss:$2 sm:$0xff]  ;;  %s3483_s28 = smov 20  }
  0x1d   :  { %v3714_v53 = vld [vmem:[#allocation2 + $0x12] sm:$0xff]  ;;  %v3737_v2 = vld [vmem:[#allocation2 + $0x22] sm:$0xff]  ;;  %211 = vst.msk [vmem:[#allocation2 + $0x71] sm:$0xff] %vm204_vm0, %v193_v59  ;;  %v194_v10 = vmax.f32 %v162_v55, %v178_v62  ;;  %v164_v26 = vmax.f32 %v2632_v15, %v2648_v21  ;;  %s3484_s24 = smov 24   ;;  %s3485_s12 = smov 28   ;;  %vm1116_vm4 = vcmask 1041408  }
  0x1e   :  { %v3716_v54 = vld [vmem:[#allocation2 + $0x11] sm:$0xff]  ;;  %v2812_v56 = vpack.i.bf16 %v3714_v53, %v296_v34  ;;  %v282_v4 = vld [vmem:[#allocation2 + $0x21] sm:$0xff]  ;;  %v195_v23 = vmax.f32 %v163_v13, %v179_v19  ;;  %v2842_v40 = vpack.i.bf16 %v3737_v2, %v3714_v53  ;;  %s3486_s14 = smov 32  }
  0x1f   :  { %v2802_v57 = vpack.i.bf16 %v3716_v54, %v280_v35  ;;  %v3724_v61 = vld [vmem:[#allocation2 + $0x10] sm:$0xff]  ;;  %v3749_v9 = vld [vmem:[#allocation2 + $0x20] sm:$0xff]  ;;  %212 = vst.msk [vmem:[#allocation2 + $0x81] sm:$0xff] %vm204_vm0, %v194_v10  ;;  %v2832_v30 = vpack.i.bf16 %v282_v4, %v3716_v54 }
  0x20   :  { %2813 = vrot.lane.b32.xlu1 %v2812_v56, %s3479_s25  ;;  %v3739_v3 = vld [vmem:[#allocation2 + $0x32] sm:$0xff]  ;;  %v3753_v12 = vld [vmem:[#allocation2 + $0x40] sm:$0xff]  ;;  %v2822_v17 = vpack.i.bf16 %v3749_v9, %v3724_v61  ;;  %213 = vst.msk [vmem:[#allocation2 + $0xb1] sm:$0xff] %vm204_vm0, %v195_v23  ;;  %v3443_v23 = vld [vmem:[%s4881_s1 + $0x8] sm:$0xff]  }
  0x21   :  { %2803 = vrot.lane.b32.xlu0 %v2802_v57, %s3480_s26  ;;  %v3745_v5 = vpack.i.bf16 %v3739_v3, %v3737_v2  ;;  %v283_v7 = vld [vmem:[#allocation2 + $0x31] sm:$0xff]  ;;  %v3770_v18 = vld [vmem:[#allocation2 + $0x41] sm:$0xff] }
  0x22   :  { %v3747_v8 = vld [vmem:[#allocation2 + $0x30] sm:$0xff]  ;;  %v3751_v11 = vpack.i.bf16 %v283_v7, %v282_v4  ;;  %v2633_v20 = vld [vmem:[%s4880_s0 + $0x140] ss:$2 sm:$0xff]  ;;  %v2649_v22 = vld [vmem:[%s4880_s0 + $0x141] ss:$2 sm:$0xff]  ;;  %v2837_v29 = vpack.i.bf16 %v3770_v18, %v283_v7 }
  0x23   :  { %v2827_v16 = vpack.i.bf16 %v3753_v12, %v3747_v8  ;;  %v2664_v24 = vld [vmem:[%s4880_s0 + $0x130] ss:$2 sm:$0xff]  ;;  %v2680_v25 = vld [vmem:[%s4880_s0 + $0x131] ss:$2 sm:$0xff]  ;;  %v165_v31 = vmax.f32 %v2633_v20, %v2649_v22  ;;  %v3795_v32 = vld [vmem:[#allocation2 + $0x42] sm:$0xff]  ;;  %v2852_v55 = vpack.i.bf16 %v3747_v8, %v3749_v9 }
  0x24   :  { %2818 = vrot.lane.b32.xlu1 %v3745_v5, %s3479_s25  ;;  %v2665_v27 = vld [vmem:[%s4880_s0 + $0x150] ss:$2 sm:$0xff]  ;;  %v180_v28 = vmax.f32 %v2664_v24, %v2680_v25  ;;  %v2681_v33 = vld [vmem:[%s4880_s0 + $0x151] ss:$2 sm:$0xff]  ;;  %v2634_v36 = vld [vmem:[%s4880_s0 + $0x160] ss:$2 sm:$0xff]  ;;  %v2847_v39 = vpack.i.bf16 %v3795_v32, %v3739_v3 }
  0x25   :  { %2808 = vrot.lane.b32.xlu0 %v3751_v11, %s3480_s26  ;;  %v181_v35 = vmax.f32 %v2665_v27, %v2681_v33  ;;  %v2650_v37 = vld [vmem:[%s4880_s0 + $0x161] ss:$2 sm:$0xff]  ;;  %v2666_v38 = vld [vmem:[%s4880_s0 + $0x170] ss:$2 sm:$0xff]  ;;  %v2682_v43 = vld [vmem:[%s4880_s0 + $0x171] ss:$2 sm:$0xff] }
  0x26   :  { %v196_v34 = vmax.f32 %v164_v26, %v180_v28  ;;  %v3816_v41 = vld [vmem:[#allocation2 + $0x50] sm:$0xff]  ;;  %v2635_v44 = vld [vmem:[%s4880_s0 + $0x180] ss:$2 sm:$0xff]  ;;  %v166_v45 = vmax.f32 %v2634_v36, %v2650_v37  ;;  %v182_v46 = vmax.f32 %v2666_v38, %v2682_v43  ;;  %v2651_v47 = vld [vmem:[%s4880_s0 + $0x181] ss:$2 sm:$0xff] }
  0x27   :  { %v197_v42 = vmax.f32 %v165_v31, %v181_v35  ;;  %v2667_v48 = vld [vmem:[%s4880_s0 + $0x190] ss:$2 sm:$0xff]  ;;  %v2683_v49 = vld [vmem:[%s4880_s0 + $0x191] ss:$2 sm:$0xff]  ;;  %v167_v50 = vmax.f32 %v2635_v44, %v2651_v47  ;;  %v2636_v52 = vld [vmem:[%s4880_s0 + $0x1a0] ss:$2 sm:$0xff]  ;;  %v2857_v57 = vpack.i.bf16 %v3816_v41, %v3753_v12 }
  0x28   :  { %2828 = vrot.lane.b32.xlu1 %v2827_v16, %s3481_s20  ;;  %214 = vst.msk [vmem:[#allocation2 + $0xc1] sm:$0xff] %vm204_vm0, %v196_v34  ;;  %v183_v51 = vmax.f32 %v2667_v48, %v2683_v49  ;;  %v2637_v53 = vld [vmem:[%s4880_s0 + $0x1c0] ss:$2 sm:$0xff]  ;;  %v2652_v54 = vld [vmem:[%s4880_s0 + $0x1a1] ss:$2 sm:$0xff]  ;;  %v198_v56 = vmax.f32 %v166_v45, %v182_v46  ;;  %v3849_v58 = vld [vmem:[#allocation2 + $0x51] sm:$0xff] }
  0x29   :  { %2823 = vrot.lane.b32.xlu0 %v2822_v17, %s3481_s20  ;;  %215 = vst.msk [vmem:[#allocation2 + $0xd1] sm:$0xff] %vm204_vm0, %v197_v42  ;;  %v2653_v60 = vld [vmem:[%s4880_s0 + $0x1c1] ss:$2 sm:$0xff]  ;;  %v2668_v62 = vld [vmem:[%s4880_s0 + $0x1b0] ss:$2 sm:$0xff]  ;;  %v168_v63 = vmax.f32 %v2636_v52, %v2652_v54  ;;  %v2867_v10 = vpack.i.bf16 %v3849_v58, %v3770_v18 }
  0x2a   :  { %v199_v59 = vmax.f32 %v167_v50, %v183_v51  ;;  %216 = vst.msk [vmem:[#allocation2 + $0xe1] sm:$0xff] %vm204_vm0, %v198_v56  ;;  %v2669_v0 = vld [vmem:[%s4880_s0 + $0x1d0] ss:$2 sm:$0xff]  ;;  %v2684_v1 = vld [vmem:[%s4880_s0 + $0x1b1] ss:$2 sm:$0xff]  ;;  %v169_v3 = vmax.f32 %v2637_v53, %v2653_v60  ;;  %v3442_v21 = vld [vmem:[%s4881_s1] sm:$0xff]  }
  0x2b   :  { %v2685_v2 = vld [vmem:[%s4880_s0 + $0x1d1] ss:$2 sm:$0xff]  ;;  %v184_v4 = vmax.f32 %v2668_v62, %v2684_v1  ;;  %v2638_v13 = vld [vmem:[%s4880_s0 + $0x1e0] ss:$2 sm:$0xff]  ;;  %v2654_v14 = vld [vmem:[%s4880_s0 + $0x1e1] ss:$2 sm:$0xff]  ;;  %2737 = vmatprep.subr.bf16.mxu0 %v3442_v21 }
  0x2c   :  { %2838 = vrot.lane.b32.xlu1 %v2837_v29, %s3482_s8  ;;  %217 = vst.msk [vmem:[#allocation2 + $0xf1] sm:$0xff] %vm204_vm0, %v199_v59  ;;  %v185_v7 = vmax.f32 %v2669_v0, %v2685_v2  ;;  %v2670_v15 = vld [vmem:[%s4880_s0 + $0x1f0] ss:$2 sm:$0xff]  ;;  %v2686_v18 = vld [vmem:[%s4880_s0 + $0x1f1] ss:$2 sm:$0xff]  ;;  %v170_v19 = vmax.f32 %v2638_v13, %v2654_v14  ;;  %v286_v24 = vld [vmem:[#allocation2 + $0x61] sm:$0xff]  ;;  %2738 = vmatpush3.bf16.msra.mxu0 %v3442_v21 }
  0x2d   :  { %2833 = vrot.lane.b32.xlu0 %v2832_v30, %s3482_s8  ;;  %v200_v16 = vmax.f32 %v168_v63, %v184_v4  ;;  %v186_v20 = vmax.f32 %v2670_v15, %v2686_v18  ;;  %v287_v25 = vld [vmem:[#allocation2 + $0x71] sm:$0xff]  ;;  %v3444_v27 = vld [vmem:[%s4881_s1 + $0x10] ss:$0 sps:$4 sm:$0x33]   ;;  %2739 = vmatprep.subr.bf16.mxu0 %v3443_v23  ;;  %v302_v29 = vld [vmem:[#allocation2 + $0x62] sm:$0xff] }
  0x2e   :  { %v201_v17 = vmax.f32 %v169_v3, %v185_v7  ;;  %v396_v26 = vld [vmem:[#allocation2 + $0x52] sm:$0xff]  ;;  %v1118_v31 = vsel %vm1116_vm4, %v3444_v27, 0  ;;  %v3907_v35 = vld [vmem:[#allocation2 + $0x60] sm:$0xff] }
  0x2f   :  { %218 = vst.msk [vmem:[#allocation2 + $0x101] sm:$0xff] %vm204_vm0, %v200_v16  ;;  %v202_v22 = vmax.f32 %v170_v19, %v186_v20  ;;  %v2882_v28 = vpack.i.bf16 %v396_v26, %v3795_v32  ;;  %v303_v30 = vld [vmem:[#allocation2 + $0x72] sm:$0xff]  ;;  %v319_v36 = vld [vmem:[#allocation2 + $0x80] sm:$0xff] }
  0x30   :  { %2848 = vrot.lane.b32.xlu1 %v2847_v39, %s3483_s28  ;;  %219 = vst.msk [vmem:[#allocation2 + $0x111] sm:$0xff] %vm204_vm0, %v201_v17  ;;  %2740 = vmatpush3.bf16.msra.mxu0 %v3443_v23  ;;  %v2897_v33 = vpack.i.bf16 %v303_v30, %v302_v29  ;;  %v3905_v34 = vld [vmem:[#allocation2 + $0x70] sm:$0xff] }
  0x31   :  { %2843 = vrot.lane.b32.xlu0 %v2842_v40, %s3483_s28  ;;  %220 = vst.msk [vmem:[#allocation2 + $0x121] sm:$0xff] %vm204_vm0, %v202_v22  ;;  %2785 = vmatprep.subr.msk.bf16.mxu0 %vm1116_vm4, %v3444_v27 }
  0x34   :  { %2858 = vrot.lane.b32.xlu1 %v2857_v57, %s3484_s24 }
  0x35   :  { %2853 = vrot.lane.b32.xlu0 %v2852_v55, %s3484_s24 }
  0x38   :  { %2868 = vrot.lane.b32.xlu1 %v2867_v10, %s3485_s12 }
  0x39   :  { %2863 = vrot.lane.b32.xlu0 %v3751_v11, %s3485_s12  ;;  %v2887_v11 = vpack.i.bf16 %v287_v25, %v286_v24 }
  0x3c   :  { %2878 = vrot.lane.b32.xlu1 %v2867_v10, %s3480_s26 }
  0x3d   :  { %2873 = vrot.lane.b32.xlu0 %v3745_v5, %s3486_s14 }
  0x40   :  { %2888 = vrot.lane.b32.xlu1 %v2887_v11, %s3480_s26 }
  0x41   :  { %2883 = vrot.lane.b32.xlu0 %v2882_v28, %s3486_s14 }
  0x42   :  { %12 = vsyncpa [#allocation5], 0  ;;  %2742 = vmatpush3.bf16.msra.mxu0 %v1118_v31  ;;  %v2907_v5 = vpack.i.bf16 %v319_v36, %v3905_v34  ;;  %v2902_v32 = vpack.i.bf16 %v3907_v35, %v3816_v41  ;;  %v335_v37 = vld [vmem:[#allocation2 + $0x81] sm:$0xff]  ;;  %v2912_v39 = vpack.i.bf16 %v286_v24, %v3849_v58  ;;  %v2922_v43 = vpack.i.bf16 %v302_v29, %v396_v26  ;;  %v368_v44 = vld [vmem:[#allocation2 + $0x90] sm:$0xff]  ;;  %s3487_s21 = smov 40   ;;  %s3488_s27 = smov 48  }
  0x43   :  { %v2917_v38 = vpack.i.bf16 %v335_v37, %v287_v25  ;;  %v351_v40 = vld [vmem:[#allocation2 + $0x82] sm:$0xff]  ;;  %v2937_v45 = vpack.i.bf16 %v368_v44, %v319_v36  ;;  %v2932_v46 = vpack.i.bf16 %v3905_v34, %v3907_v35  ;;  %v384_v47 = vld [vmem:[#allocation2 + $0x91] sm:$0xff]  ;;  %vm954_vm5 = vcmask 97280   ;;  %s3489_s9 = smov 56  }
  0x44   :  { %2898 = vrot.lane.b32.xlu1 %v2897_v33, %s3479_s25  ;;  %v2927_v42 = vpack.i.bf16 %v351_v40, %v303_v30  ;;  %v2947_v48 = vpack.i.bf16 %v384_v47, %v335_v37  ;;  %v288_v49 = vld [vmem:[#allocation2 + $0xa1] sm:$0xff]  ;;  %v289_v50 = vld [vmem:[#allocation2 + $0xb1] sm:$0xff]  ;;  %vm971_vm6 = vcmask 130048   ;;  %vm988_vm7 = vcmask 162816  }
  0x45   :  { %2893 = vrot.lane.b32.xlu0 %v2882_v28, %s3479_s25  ;;  %v2957_v51 = vpack.i.bf16 %v289_v50, %v288_v49  ;;  %v290_v52 = vld [vmem:[#allocation2 + $0xc1] sm:$0xff]  ;;  %v291_v53 = vld [vmem:[#allocation2 + $0xd1] sm:$0xff]  ;;  %vm1005_vm8 = vcmask 195584   ;;  %vm1022_vm9 = vcmask 228352   ;;  %vm1039_vm10 = vcmask 261120  }
  0x46   :  { %v400_v54 = vld [vmem:[#allocation2 + $0x92] sm:$0xff]  ;;  %v2967_v55 = vpack.i.bf16 %v291_v53, %v290_v52  ;;  %v304_v57 = vld [vmem:[#allocation2 + $0xa2] sm:$0xff]  ;;  %v2992_v14 = vpack.i.bf16 %v290_v52, %v289_v50  ;;  %vm1091_vm11 = vcmask 293888   ;;  %vm1394_vm12 = vcmask 58368  }
  0x47   :  { %v2962_v56 = vpack.i.bf16 %v400_v54, %v351_v40  ;;  %v306_v58 = vld [vmem:[#allocation2 + $0xc2] sm:$0xff]  ;;  %v307_v59 = vld [vmem:[#allocation2 + $0xd2] sm:$0xff]  ;;  %vm1403_vm13 = vcmask 57344   ;;  %1395 = vst.msk [vmem:[#allocation3 + $0x8] sm:$0x3] %vm1394_vm12, %v3478_v6  ;;  %vm2301_vm14 = vcmask 1043456  }
  0x48   :  { %2908 = vrot.lane.b32.xlu1 %v2907_v5, %s3481_s20  ;;  %v305_v60 = vld [vmem:[#allocation2 + $0xb2] sm:$0xff]  ;;  %v2977_v62 = vpack.i.bf16 %v307_v59, %v306_v58  ;;  %v3935_v2 = vld [vmem:[#allocation2 + $0xe0] sm:$0xff]  ;;  %1397 = vst.msk [vmem:[#allocation3 + $0xa8] sm:$0x3] %vm1394_vm12, %v3478_v6  ;;  %1400 = vst.msk [vmem:[#allocation3 + $0x98] sm:$0x3] %vm1394_vm12, %v3478_v6 }
  0x49   :  { %2903 = vrot.lane.b32.xlu0 %v2902_v32, %s3481_s20  ;;  %v2972_v63 = vpack.i.bf16 %v305_v60, %v304_v57  ;;  %v3931_v0 = vld [vmem:[#allocation2 + $0xb0] sm:$0xff]  ;;  %v3937_v3 = vld [vmem:[#allocation2 + $0xc0] sm:$0xff]  ;;  %v3002_v17 = vpack.i.bf16 %v306_v58, %v305_v60  ;;  %1402 = vst.msk [vmem:[#allocation3 + $0x138] sm:$0x3] %vm1394_vm12, %v3478_v6  ;;  %vm2157_vm15 = vcmask 326656   ;;  %vm2191_vm1 = vcmask 457728  }
  0x4a   :  { %v3933_v1 = vld [vmem:[#allocation2 + $0xd0] sm:$0xff]  ;;  %v2982_v7 = vpack.i.bf16 %v3937_v3, %v3931_v0  ;;  %v339_v10 = vld [vmem:[#allocation2 + $0xe1] sm:$0xff]  ;;  %1421 = vst.msk [vmem:[#allocation3 + $0x29] sm:$0x1] %vm1403_vm13, %v3478_v6  ;;  %1422 = vst.msk [vmem:[#allocation3 + $0x39] sm:$0x1] %vm1403_vm13, %v3478_v6 }
  0x4b   :  { %v2987_v4 = vpack.i.bf16 %v3935_v2, %v3933_v1  ;;  %v2997_v13 = vpack.i.bf16 %v339_v10, %v291_v53  ;;  %v355_v15 = vld [vmem:[#allocation2 + $0xe2] sm:$0xff]  ;;  %v3949_v18 = vld [vmem:[#allocation2 + $0xf0] sm:$0xff]  ;;  %v3012_v20 = vpack.i.bf16 %v3933_v1, %v3937_v3  ;;  %1404 = vst.msk [vmem:[#allocation3 + $0x10] sm:$0x1] %vm1403_vm13, %v3478_v6  ;;  %1405 = vst.msk [vmem:[#allocation3 + $0x20] sm:$0x1] %vm1403_vm13, %v3478_v6 }
  0x4c   :  { %2918 = vrot.lane.b32.xlu1 %v2917_v38, %s3482_s8  ;;  %v3007_v16 = vpack.i.bf16 %v355_v15, %v307_v59  ;;  %v3017_v19 = vpack.i.bf16 %v3949_v18, %v3935_v2  ;;  %v388_v21 = vld [vmem:[#allocation2 + $0xf1] sm:$0xff]  ;;  %v294_v23 = vld [vmem:[#allocation2 + $0x101] sm:$0xff]  ;;  %1406 = vst.msk [vmem:[#allocation3 + $0x30] sm:$0x1] %vm1403_vm13, %v3478_v6  ;;  %1407 = vst.msk [vmem:[#allocation3 + $0x40] sm:$0x1] %vm1403_vm13, %v3478_v6 }
  0x4d   :  { %2913 = vrot.lane.b32.xlu0 %v2912_v39, %s3482_s8  ;;  %v3027_v22 = vpack.i.bf16 %v388_v21, %v339_v10  ;;  %v295_v24 = vld [vmem:[#allocation2 + $0x111] sm:$0xff]  ;;  %v327_v31 = vld [vmem:[#allocation2 + $0x120] sm:$0xff]  ;;  %v3072_v38 = vpack.i.bf16 %v294_v23, %v388_v21  ;;  %1408 = vst.msk [vmem:[#allocation3 + $0x50] sm:$0x1] %vm1403_vm13, %v3478_v6  ;;  %1409 = vst.msk [vmem:[#allocation3 + $0x60] sm:$0x1] %vm1403_vm13, %v3478_v6 }
  0x4e   :  { %v404_v25 = vld [vmem:[#allocation2 + $0xf2] sm:$0xff]  ;;  %v3047_v26 = vpack.i.bf16 %v295_v24, %v294_v23  ;;  %v343_v32 = vld [vmem:[#allocation2 + $0x121] sm:$0xff]  ;;  %1410 = vst.msk [vmem:[#allocation3 + $0x70] sm:$0x1] %vm1403_vm13, %v3478_v6  ;;  %1411 = vst.msk [vmem:[#allocation3 + $0x80] sm:$0x1] %vm1403_vm13, %v3478_v6 }
  0x4f   :  { %v3042_v27 = vpack.i.bf16 %v404_v25, %v355_v15  ;;  %v311_v28 = vld [vmem:[#allocation2 + $0x112] sm:$0xff]  ;;  %v3077_v37 = vpack.i.bf16 %v343_v32, %v295_v24  ;;  %v359_v39 = vld [vmem:[#allocation2 + $0x122] sm:$0xff]  ;;  %1412 = vst.msk [vmem:[#allocation3 + $0xb0] sm:$0x1] %vm1403_vm13, %v3478_v6  ;;  %1413 = vst.msk [vmem:[#allocation3 + $0xc0] sm:$0x1] %vm1403_vm13, %v3478_v6 }
  0x50   :  { %2928 = vrot.lane.b32.xlu1 %v2927_v42, %s3483_s28  ;;  %v3965_v30 = vld [vmem:[#allocation2 + $0x110] sm:$0xff]  ;;  %v3087_v40 = vpack.i.bf16 %v359_v39, %v311_v28  ;;  %v264_v60 = vld [vmem:[#allocation2] sm:$0xff]  ;;  %1414 = vst.msk [vmem:[#allocation3 + $0xd0] sm:$0x1] %vm1403_vm13, %v3478_v6  ;;  %1415 = vst.msk [vmem:[#allocation3 + $0xe0] sm:$0x1] %vm1403_vm13, %v3478_v6 }
  0x51   :  { %2923 = vrot.lane.b32.xlu0 %v2922_v43, %s3483_s28  ;;  %v3067_v36 = vpack.i.bf16 %v327_v31, %v3965_v30  ;;  %v376_v43 = vld [vmem:[#allocation2 + $0x130] sm:$0xff]  ;;  %1416 = vst.msk [vmem:[#allocation3 + $0xf0] sm:$0x1] %vm1403_vm13, %v3478_v6  ;;  %1417 = vst.msk [vmem:[#allocation3 + $0x100] sm:$0x1] %vm1403_vm13, %v3478_v6  ;;  %vm2208_vm2 = vcmask 523264  }
  0x52   :  { %v3097_v44 = vpack.i.bf16 %v376_v43, %v327_v31  ;;  %v408_v50 = vld [vmem:[#allocation2 + $0x132] sm:$0xff]  ;;  %1418 = vst.msk [vmem:[#allocation3 + $0x110] sm:$0x1] %vm1403_vm13, %v3478_v6  ;;  %1419 = vst.msk [vmem:[#allocation3 + $0x120] sm:$0x1] %vm1403_vm13, %v3478_v6  ;;  %vm2276_vm4 = vcmask 588800  }
  0x53   :  { %v3117_v53 = vpack.i.bf16 %v408_v50, %v359_v39  ;;  %1420 = vst.msk [vmem:[#allocation3 + $0x19] sm:$0x1] %vm1403_vm13, %v3478_v6  ;;  %1423 = vst.msk [vmem:[#allocation3 + $0x49] sm:$0x1] %vm1403_vm13, %v3478_v6 }
  0x54   :  { %2938 = vrot.lane.b32.xlu1 %v2937_v45, %s3484_s24  ;;  %1424 = vst.msk [vmem:[#allocation3 + $0x59] sm:$0x1] %vm1403_vm13, %v3478_v6  ;;  %1425 = vst.msk [vmem:[#allocation3 + $0x69] sm:$0x1] %vm1403_vm13, %v3478_v6 }
  0x55   :  { %2933 = vrot.lane.b32.xlu0 %v2932_v46, %s3484_s24  ;;  %v392_v46 = vld [vmem:[#allocation2 + $0x131] sm:$0xff]  ;;  %1426 = vst.msk [vmem:[#allocation3 + $0x79] sm:$0x1] %vm1403_vm13, %v3478_v6  ;;  %1427 = vst.msk [vmem:[#allocation3 + $0x89] sm:$0x1] %vm1403_vm13, %v3478_v6 }
  0x56   :  { %v3107_v49 = vpack.i.bf16 %v392_v46, %v343_v32  ;;  %1428 = vst.msk [vmem:[#allocation3 + $0xb9] sm:$0x1] %vm1403_vm13, %v3478_v6  ;;  %1429 = vst.msk [vmem:[#allocation3 + $0xc9] sm:$0x1] %vm1403_vm13, %v3478_v6 }
  0x57   :  { %1430 = vst.msk [vmem:[#allocation3 + $0xd9] sm:$0x1] %vm1403_vm13, %v3478_v6  ;;  %1431 = vst.msk [vmem:[#allocation3 + $0xe9] sm:$0x1] %vm1403_vm13, %v3478_v6 }
  0x58   :  { %2948 = vrot.lane.b32.xlu1 %v2947_v48, %s3485_s12  ;;  %1432 = vst.msk [vmem:[#allocation3 + $0xf9] sm:$0x1] %vm1403_vm13, %v3478_v6  ;;  %1433 = vst.msk [vmem:[#allocation3 + $0x109] sm:$0x1] %vm1403_vm13, %v3478_v6 }
  0x59   :  { %2943 = vrot.lane.b32.xlu0 %v2887_v11, %s3485_s12  ;;  %v310_v11 = vld [vmem:[#allocation2 + $0x102] sm:$0xff]  ;;  %1434 = vst.msk [vmem:[#allocation3 + $0x119] sm:$0x1] %vm1403_vm13, %v3478_v6  ;;  %1435 = vst.msk [vmem:[#allocation3 + $0x129] sm:$0x1] %vm1403_vm13, %v3478_v6 }
  0x5a   :  { %v3057_v29 = vpack.i.bf16 %v311_v28, %v310_v11  ;;  %v3082_v42 = vpack.i.bf16 %v310_v11, %v404_v25 }
  0x5c   :  { %2958 = vrot.lane.b32.xlu1 %v2957_v51, %s3480_s26 }
  0x5d   :  { %2953 = vrot.lane.b32.xlu0 %v2897_v33, %s3486_s14  ;;  %v3967_v33 = vld [vmem:[#allocation2 + $0x100] sm:$0xff] }
  0x5e   :  { %v3062_v5 = vpack.i.bf16 %v3967_v33, %v3949_v18  ;;  %v3092_v45 = vpack.i.bf16 %v3965_v30, %v3967_v33 }
  0x60   :  { %2968 = vrot.lane.b32.xlu1 %v2967_v55, %s3480_s26 }
  0x61   :  { %2963 = vrot.lane.b32.xlu0 %v2962_v56, %s3486_s14 }
  0x64   :  { %2978 = vrot.lane.b32.xlu1 %v2977_v62, %s3479_s25 }
  0x65   :  { %2973 = vrot.lane.b32.xlu0 %v2972_v63, %s3479_s25 }
  0x68   :  { %2988 = vrot.lane.b32.xlu1 %v2987_v4, %s3481_s20 }
  0x69   :  { %2983 = vrot.lane.b32.xlu0 %v2982_v7, %s3481_s20 }
  0x6c   :  { %2998 = vrot.lane.b32.xlu1 %v2997_v13, %s3482_s8 }
  0x6d   :  { %2993 = vrot.lane.b32.xlu0 %v2992_v14, %s3482_s8 }
  0x70   :  { %3008 = vrot.lane.b32.xlu1 %v3007_v16, %s3483_s28 }
  0x71   :  { %3003 = vrot.lane.b32.xlu0 %v3002_v17, %s3483_s28 }
  0x74   :  { %3018 = vrot.lane.b32.xlu1 %v3017_v19, %s3484_s24 }
  0x75   :  { %3013 = vrot.lane.b32.xlu0 %v3012_v20, %s3484_s24 }
  0x78   :  { %3028 = vrot.lane.b32.xlu1 %v3027_v22, %s3485_s12 }
  0x79   :  { %3023 = vrot.lane.b32.xlu0 %v2967_v55, %s3485_s12 }
  0x7c   :  { %3038 = vrot.lane.b32.xlu1 %v3027_v22, %s3480_s26 }
  0x7d   :  { %3033 = vrot.lane.b32.xlu0 %v2977_v62, %s3486_s14 }
  0x80   :  { %3048 = vrot.lane.b32.xlu1 %v3047_v26, %s3480_s26 }
  0x81   :  { %3043 = vrot.lane.b32.xlu0 %v3042_v27, %s3486_s14 }
  0x84   :  { %3058 = vrot.lane.b32.xlu1 %v3057_v29, %s3479_s25 }
  0x85   :  { %3053 = vrot.lane.b32.xlu0 %v3042_v27, %s3479_s25 }
  0x88   :  { %3068 = vrot.lane.b32.xlu1 %v3067_v36, %s3481_s20 }
  0x89   :  { %3063 = vrot.lane.b32.xlu0 %v3062_v5, %s3481_s20 }
  0x8c   :  { %3078 = vrot.lane.b32.xlu1 %v3077_v37, %s3482_s8 }
  0x8d   :  { %3073 = vrot.lane.b32.xlu0 %v3072_v38, %s3482_s8 }
  0x90   :  { %3088 = vrot.lane.b32.xlu1 %v3087_v40, %s3483_s28 }
  0x91   :  { %3083 = vrot.lane.b32.xlu0 %v3082_v42, %s3483_s28 }
  0x92   :  { %v2814_v47 = vpop.permute.xlu1 %2813 }
  0x93   :  { %v2804_v48 = vpop.permute.xlu0 %2803  ;;  %v2816_v10 = vunpack.i.h.bf16 %v2814_v47  ;;  %v2815_v13 = vunpack.i.l.bf16 %v2814_v47 }
  0x94   :  { %3098 = vrot.lane.b32.xlu1 %v3097_v44, %s3484_s24  ;;  %v2806_v58 = vunpack.i.h.bf16 %v2804_v48  ;;  %v2805_v59 = vunpack.i.l.bf16 %v2804_v48 }
  0x95   :  { %3093 = vrot.lane.b32.xlu0 %v3092_v45, %s3484_s24 }
  0x96   :  { %v2819_v51 = vpop.permute.xlu1 %2818  ;;  %v921_v14 = vsel %vm204_vm0, %v264_v60, %v2805_v59  ;;  %v922_v15 = vsel %vm204_vm0, %v3724_v61, %v2806_v58 }
  0x97   :  { %v2809_v52 = vpop.permute.xlu0 %2808  ;;  %v2821_v16 = vunpack.i.h.bf16 %v2819_v51  ;;  %v2820_v17 = vunpack.i.l.bf16 %v2819_v51  ;;  %v938_v27 = vsel %vm937_vm3, %v921_v14, %v2815_v13  ;;  %v939_v61 = vsel %vm937_vm3, %v922_v15, %v2816_v10 }
  0x98   :  { %3108 = vrot.lane.b32.xlu1 %v3107_v49, %s3485_s12  ;;  %v2811_v62 = vunpack.i.h.bf16 %v2809_v52  ;;  %v2810_v63 = vunpack.i.l.bf16 %v2809_v52 }
  0x99   :  { %3103 = vrot.lane.b32.xlu0 %v3047_v26, %s3485_s12  ;;  %s3490_s12 = smov 64  }
  0x9a   :  { %v2829_v54 = vpop.permute.xlu1 %2828  ;;  %v924_v19 = vsel %vm204_vm0, %v3747_v8, %v2811_v62  ;;  %v923_v20 = vsel %vm204_vm0, %v3749_v9, %v2810_v63 }
  0x9b   :  { %v2824_v55 = vpop.permute.xlu0 %2823  ;;  %v2831_v21 = vunpack.i.h.bf16 %v2829_v54  ;;  %v2830_v22 = vunpack.i.l.bf16 %v2829_v54  ;;  %v940_v11 = vsel %vm937_vm3, %v923_v20, %v2820_v17  ;;  %v941_v8 = vsel %vm937_vm3, %v924_v19, %v2821_v16 }
  0x9c   :  { %3118 = vrot.lane.b32.xlu1 %v3117_v53, %s3486_s14  ;;  %v2826_v25 = vunpack.i.h.bf16 %v2824_v55  ;;  %v2825_v26 = vunpack.i.l.bf16 %v2824_v55 }
  0x9d   :  { %3113 = vrot.lane.b32.xlu0 %v3057_v29, %s3486_s14  ;;  %v957_v29 = vsel %vm954_vm5, %v940_v11, %v2830_v22  ;;  %v958_v31 = vsel %vm954_vm5, %v941_v8, %v2831_v21 }
  0x9e   :  { %v3988_v56 = vpop.permute.xlu1 %2838  ;;  %v955_v38 = vsel %vm954_vm5, %v938_v27, %v2825_v26  ;;  %v956_v39 = vsel %vm954_vm5, %v939_v61, %v2826_v25 }
  0x9f   :  { %v2834_v57 = vpop.permute.xlu0 %2833  ;;  %v2841_v43 = vunpack.i.h.bf16 %v3988_v56  ;;  %v2840_v44 = vunpack.i.l.bf16 %v3988_v56 }
  0xa0   :  { %v2836_v28 = vunpack.i.h.bf16 %v2834_v57  ;;  %v2835_v9 = vunpack.i.l.bf16 %v2834_v57 }
  0xa1   :  { %v974_v10 = vsel %vm971_vm6, %v957_v29, %v2840_v44  ;;  %v975_v13 = vsel %vm971_vm6, %v958_v31, %v2841_v43 }
  0xa2   :  { %v3990_v4 = vpop.permute.xlu1 %2848  ;;  %v972_v47 = vsel %vm971_vm6, %v955_v38, %v2835_v9  ;;  %v973_v48 = vsel %vm971_vm6, %v956_v39, %v2836_v28 }
  0xa3   :  { %v2844_v7 = vpop.permute.xlu0 %2843  ;;  %v2851_v49 = vunpack.i.h.bf16 %v3990_v4  ;;  %v2850_v50 = vunpack.i.l.bf16 %v3990_v4 }
  0xa4   :  { %v2846_v36 = vunpack.i.h.bf16 %v2844_v7  ;;  %v2845_v5 = vunpack.i.l.bf16 %v2844_v7 }
  0xa5   :  { %v991_v16 = vsel %vm988_vm7, %v974_v10, %v2850_v50  ;;  %v992_v17 = vsel %vm988_vm7, %v975_v13, %v2851_v49 }
  0xa6   :  { %v2859_v23 = vpop.permute.xlu1 %2858  ;;  %v989_v51 = vsel %vm988_vm7, %v972_v47, %v2845_v5  ;;  %v990_v52 = vsel %vm988_vm7, %v973_v48, %v2846_v36 }
  0xa7   :  { %v2854_v24 = vpop.permute.xlu0 %2853  ;;  %v2861_v53 = vunpack.i.h.bf16 %v2859_v23  ;;  %v2860_v54 = vunpack.i.l.bf16 %v2859_v23 }
  0xa8   :  { %v2856_v40 = vunpack.i.h.bf16 %v2854_v24  ;;  %v2855_v42 = vunpack.i.l.bf16 %v2854_v24 }
  0xa9   :  { %v1008_v22 = vsel %vm1005_vm8, %v991_v16, %v2860_v54  ;;  %v1009_v23 = vsel %vm1005_vm8, %v992_v17, %v2861_v53 }
  0xaa   :  { %v2869_v32 = vpop.permute.xlu1 %2868  ;;  %v1006_v59 = vsel %vm1005_vm8, %v989_v51, %v2855_v42  ;;  %v1007_v60 = vsel %vm1005_vm8, %v990_v52, %v2856_v40 }
  0xab   :  { %v2864_v37 = vpop.permute.xlu0 %2863  ;;  %v2871_v62 = vunpack.i.h.bf16 %v2869_v32  ;;  %v2870_v63 = vunpack.i.l.bf16 %v2869_v32 }
  0xac   :  { %v2866_v45 = vunpack.i.h.bf16 %v2864_v37  ;;  %v2865_v46 = vunpack.i.l.bf16 %v2864_v37 }
  0xad   :  { %v1025_v26 = vsel %vm1022_vm9, %v1008_v22, %v2870_v63  ;;  %v1026_v27 = vsel %vm1022_vm9, %v1009_v23, %v2871_v62 }
  0xae   :  { %v2879_v55 = vpop.permute.xlu1 %2878  ;;  %v1023_v7 = vsel %vm1022_vm9, %v1006_v59, %v2865_v46  ;;  %v1024_v4 = vsel %vm1022_vm9, %v1007_v60, %v2866_v45 }
  0xaf   :  { %v2874_v57 = vpop.permute.xlu0 %2873  ;;  %v2881_v40 = vunpack.i.h.bf16 %v2879_v55  ;;  %v2880_v42 = vunpack.i.l.bf16 %v2879_v55 }
  0xb0   :  { %v2876_v58 = vunpack.i.h.bf16 %v2874_v57  ;;  %v2875_v56 = vunpack.i.l.bf16 %v2874_v57 }
  0xb1   :  { %v926_v57 = vsel %vm204_vm0, %v3816_v41, %v2881_v40  ;;  %v925_v55 = vsel %vm204_vm0, %v3753_v12, %v2880_v42 }
  0xb2   :  { %v1040_v14 = vsel %vm1039_vm10, %v1023_v7, %v2875_v56  ;;  %v1041_v15 = vsel %vm1039_vm10, %v1024_v4, %v2876_v58  ;;  %v2889_v19 = vpop.permute.xlu1 %2888 }
  0xb3   :  { %v2884_v20 = vpop.permute.xlu0 %2883  ;;  %v1056_v21 = vpack.c.bf16 %v1041_v15, %v1040_v14  ;;  %v2891_v38 = vunpack.i.h.bf16 %v2889_v19  ;;  %v2890_v39 = vunpack.i.l.bf16 %v2889_v19 }
  0xb4   :  { %v2886_v24 = vunpack.i.h.bf16 %v2884_v20  ;;  %v2885_v25 = vunpack.i.l.bf16 %v2884_v20 }
  0xb5   :  { %2743 = vmatprep.mubr.msk.bf16.mxu0 %vm1091_vm11, %v1056_v21  ;;  %v928_v51 = vsel %vm204_vm0, %v3905_v34, %v2891_v38  ;;  %v927_v52 = vsel %vm204_vm0, %v3907_v35, %v2890_v39 }
  0xb6   :  { %v1042_v61 = vsel %vm1039_vm10, %v1025_v26, %v2885_v25  ;;  %v1043_v11 = vsel %vm1039_vm10, %v1026_v27, %v2886_v24  ;;  %v2899_v8 = vpop.permute.xlu1 %2898 }
  0xb7   :  { %v2894_v28 = vpop.permute.xlu0 %2893  ;;  %v1057_v9 = vpack.c.bf16 %v1043_v11, %v1042_v61  ;;  %v2901_v43 = vunpack.i.h.bf16 %v2899_v8  ;;  %v2900_v44 = vunpack.i.l.bf16 %v2899_v8 }
  0xb8   :  { %v2896_v45 = vunpack.i.h.bf16 %v2894_v28  ;;  %v2895_v46 = vunpack.i.l.bf16 %v2894_v28 }
  0xb9   :  { %2744 = vmatmul.mubr.msk.bf16.vlgmr.msra.gmra.mrb[0].mxu0 %vm1091_vm11, %v1057_v9  ;;  %v944_v58 = vsel %vm937_vm3, %v927_v52, %v2900_v44  ;;  %v945_v56 = vsel %vm937_vm3, %v928_v51, %v2901_v43 }
  0xba   :  { %v2909_v29 = vpop.permute.xlu1 %2908  ;;  %v943_v59 = vsel %vm937_vm3, %v926_v57, %v2896_v45  ;;  %v942_v60 = vsel %vm937_vm3, %v925_v55, %v2895_v46 }
  0xbb   :  { %v2904_v31 = vpop.permute.xlu0 %2903  ;;  %v2911_v47 = vunpack.i.h.bf16 %v2909_v29  ;;  %v2910_v48 = vunpack.i.l.bf16 %v2909_v29 }
  0xbc   :  { %v2906_v53 = vunpack.i.h.bf16 %v2904_v31  ;;  %v2905_v54 = vunpack.i.l.bf16 %v2904_v31 }
  0xbd   :  { %v961_v35 = vsel %vm954_vm5, %v944_v58, %v2910_v48  ;;  %v962_v63 = vsel %vm954_vm5, %v945_v56, %v2911_v47 }
  0xbe   :  { %v4033_v36 = vpop.permute.xlu1 %2918  ;;  %v959_v12 = vsel %vm954_vm5, %v942_v60, %v2905_v54  ;;  %v960_v13 = vsel %vm954_vm5, %v943_v59, %v2906_v53 }
  0xbf   :  { %v2914_v5 = vpop.permute.xlu0 %2913  ;;  %v2921_v16 = vunpack.i.h.bf16 %v4033_v36  ;;  %v2920_v17 = vunpack.i.l.bf16 %v4033_v36 }
  0xc0   :  { %v2916_v34 = vunpack.i.h.bf16 %v2914_v5  ;;  %v2915_v62 = vunpack.i.l.bf16 %v2914_v5 }
  0xc1   :  { %v978_v38 = vsel %vm971_vm6, %v961_v35, %v2920_v17  ;;  %v979_v39 = vsel %vm971_vm6, %v962_v63, %v2921_v16 }
  0xc2   :  { %v4035_v32 = vpop.permute.xlu1 %2928  ;;  %v976_v21 = vsel %vm971_vm6, %v959_v12, %v2915_v62  ;;  %v977_v22 = vsel %vm971_vm6, %v960_v13, %v2916_v34 }
  0xc3   :  { %v2924_v37 = vpop.permute.xlu0 %2923  ;;  %v2931_v23 = vunpack.i.h.bf16 %v4035_v32  ;;  %v2930_v24 = vunpack.i.l.bf16 %v4035_v32 }
  0xc4   :  { %v2926_v7 = vunpack.i.h.bf16 %v2924_v37  ;;  %v2925_v4 = vunpack.i.l.bf16 %v2924_v37 }
  0xc5   :  { %v995_v43 = vsel %vm988_vm7, %v978_v38, %v2930_v24  ;;  %v996_v44 = vsel %vm988_vm7, %v979_v39, %v2931_v23 }
  0xc6   :  { %v2939_v49 = vpop.permute.xlu1 %2938  ;;  %v993_v25 = vsel %vm988_vm7, %v976_v21, %v2925_v4  ;;  %v994_v26 = vsel %vm988_vm7, %v977_v22, %v2926_v7 }
  0xc7   :  { %v2934_v50 = vpop.permute.xlu0 %2933  ;;  %v2941_v27 = vunpack.i.h.bf16 %v2939_v49  ;;  %v2940_v61 = vunpack.i.l.bf16 %v2939_v49 }
  0xc8   :  { %v2936_v14 = vunpack.i.h.bf16 %v2934_v50  ;;  %v2935_v15 = vunpack.i.l.bf16 %v2934_v50 }
  0xc9   :  { %v1012_v48 = vsel %vm1005_vm8, %v995_v43, %v2940_v61  ;;  %v1013_v49 = vsel %vm1005_vm8, %v996_v44, %v2941_v27 }
  0xca   :  { %v2949_v41 = vpop.permute.xlu1 %2948  ;;  %v1010_v28 = vsel %vm1005_vm8, %v993_v25, %v2935_v15  ;;  %v1011_v9 = vsel %vm1005_vm8, %v994_v26, %v2936_v14  ;;  %v272_v14 = vld [vmem:[#allocation2 + $0xa0] sm:$0xff] }
  0xcb   :  { %v2944_v10 = vpop.permute.xlu0 %2943  ;;  %v2951_v36 = vunpack.i.h.bf16 %v2949_v41  ;;  %v2950_v5 = vunpack.i.l.bf16 %v2949_v41 }
  0xcc   :  { %v2946_v19 = vunpack.i.h.bf16 %v2944_v10  ;;  %v2945_v20 = vunpack.i.l.bf16 %v2944_v10 }
  0xcd   :  { %v1029_v52 = vsel %vm1022_vm9, %v1012_v48, %v2950_v5  ;;  %v1030_v53 = vsel %vm1022_vm9, %v1013_v49, %v2951_v36 }
  0xce   :  { %v2959_v11 = vpop.permute.xlu1 %2958  ;;  %v1027_v37 = vsel %vm1022_vm9, %v1010_v28, %v2945_v20  ;;  %v1028_v32 = vsel %vm1022_vm9, %v1011_v9, %v2946_v19 }
  0xcf   :  { %v2954_v8 = vpop.permute.xlu0 %2953  ;;  %v2961_v41 = vunpack.i.h.bf16 %v2959_v11  ;;  %v2960_v10 = vunpack.i.l.bf16 %v2959_v11 }
  0xd0   :  { %v2956_v29 = vunpack.i.h.bf16 %v2954_v8  ;;  %v2955_v31 = vunpack.i.l.bf16 %v2954_v8 }
  0xd1   :  { %v930_v26 = vsel %vm204_vm0, %v3931_v0, %v2961_v41  ;;  %v929_v27 = vsel %vm204_vm0, %v272_v14, %v2960_v10 }
  0xd2   :  { %v1044_v40 = vsel %vm1039_vm10, %v1027_v37, %v2955_v31  ;;  %v1045_v42 = vsel %vm1039_vm10, %v1028_v32, %v2956_v29  ;;  %v2969_v46 = vpop.permute.xlu1 %2968 }
  0xd3   :  { %v1058_v45 = vpack.c.bf16 %v1045_v42, %v1044_v40  ;;  %v2964_v47 = vpop.permute.xlu0 %2963  ;;  %v2971_v7 = vunpack.i.h.bf16 %v2969_v46  ;;  %v2970_v4 = vunpack.i.l.bf16 %v2969_v46 }
  0xd4   :  { %v2966_v50 = vunpack.i.h.bf16 %v2964_v47  ;;  %v2965_v51 = vunpack.i.l.bf16 %v2964_v47 }
  0xd5   :  { %2747 = vmatprep.mubr.msk.bf16.mxu0 %vm1091_vm11, %v1058_v45  ;;  %v932_v22 = vsel %vm204_vm0, %v3933_v1, %v2971_v7  ;;  %v931_v23 = vsel %vm204_vm0, %v3937_v3, %v2970_v4 }
  0xd6   :  { %v1047_v54 = vsel %vm1039_vm10, %v1030_v53, %v2966_v50  ;;  %v1046_v57 = vsel %vm1039_vm10, %v1029_v52, %v2965_v51  ;;  %v2979_v58 = vpop.permute.xlu1 %2978 }
  0xd7   :  { %v1059_v55 = vpack.c.bf16 %v1047_v54, %v1046_v57  ;;  %v2974_v56 = vpop.permute.xlu0 %2973  ;;  %v2981_v12 = vunpack.i.h.bf16 %v2979_v58  ;;  %v2980_v13 = vunpack.i.l.bf16 %v2979_v58 }
  0xd8   :  { %v2976_v15 = vunpack.i.h.bf16 %v2974_v56  ;;  %v2975_v16 = vunpack.i.l.bf16 %v2974_v56 }
  0xd9   :  { %2748 = vmatmul.mubr.msk.bf16.gmra.mrb[4].mxu0 %vm1091_vm11, %v1059_v55  ;;  %v948_v61 = vsel %vm937_vm3, %v931_v23, %v2980_v13  ;;  %v949_v11 = vsel %vm937_vm3, %v932_v22, %v2981_v12 }
  0xda   :  { %v2989_v59 = vpop.permute.xlu1 %2988  ;;  %v947_v8 = vsel %vm937_vm3, %v930_v26, %v2976_v15  ;;  %v946_v28 = vsel %vm937_vm3, %v929_v27, %v2975_v16 }
  0xdb   :  { %v2984_v60 = vpop.permute.xlu0 %2983  ;;  %v2991_v17 = vunpack.i.h.bf16 %v2989_v59  ;;  %v2990_v19 = vunpack.i.l.bf16 %v2989_v59 }
  0xdc   :  { %v2986_v24 = vunpack.i.h.bf16 %v2984_v60  ;;  %v2985_v25 = vunpack.i.l.bf16 %v2984_v60 }
  0xdd   :  { %v965_v29 = vsel %vm954_vm5, %v948_v61, %v2990_v19  ;;  %v966_v3 = vsel %vm954_vm5, %v949_v11, %v2991_v17 }
  0xde   :  { %v4079_v34 = vpop.permute.xlu1 %2998  ;;  %v963_v37 = vsel %vm954_vm5, %v946_v28, %v2985_v25  ;;  %v964_v32 = vsel %vm954_vm5, %v947_v8, %v2986_v24 }
  0xdf   :  { %v2994_v62 = vpop.permute.xlu0 %2993  ;;  %v3001_v40 = vunpack.i.h.bf16 %v4079_v34  ;;  %v3000_v42 = vunpack.i.l.bf16 %v4079_v34 }
  0xe0   :  { %v2996_v9 = vunpack.i.h.bf16 %v2994_v62  ;;  %v2995_v1 = vunpack.i.l.bf16 %v2994_v62 }
  0xe2   :  { %v4081_v35 = vpop.permute.xlu1 %3008  ;;  %v980_v45 = vsel %vm971_vm6, %v963_v37, %v2995_v1  ;;  %v981_v46 = vsel %vm971_vm6, %v964_v32, %v2996_v9 }
  0xe3   :  { %v3004_v63 = vpop.permute.xlu0 %3003  ;;  %v3011_v47 = vunpack.i.h.bf16 %v4081_v35  ;;  %v3010_v48 = vunpack.i.l.bf16 %v4081_v35  ;;  %v982_v35 = vsel %vm971_vm6, %v965_v29, %v3000_v42 }
  0xe4   :  { %v3006_v31 = vunpack.i.h.bf16 %v3004_v63  ;;  %v3005_v36 = vunpack.i.l.bf16 %v3004_v63  ;;  %v983_v63 = vsel %vm971_vm6, %v966_v3, %v3001_v40 }
  0xe5   :  { %v999_v41 = vsel %vm988_vm7, %v982_v35, %v3010_v48  ;;  %v1000_v10 = vsel %vm988_vm7, %v983_v63, %v3011_v47 }
  0xe6   :  { %v3019_v20 = vpop.permute.xlu1 %3018  ;;  %v997_v49 = vsel %vm988_vm7, %v980_v45, %v3005_v36  ;;  %v998_v50 = vsel %vm988_vm7, %v981_v46, %v3006_v31 }
  0xe7   :  { %v3014_v21 = vpop.permute.xlu0 %3013  ;;  %v3021_v51 = vunpack.i.h.bf16 %v3019_v20  ;;  %v3020_v52 = vunpack.i.l.bf16 %v3019_v20 }
  0xe8   :  { %v3016_v38 = vunpack.i.h.bf16 %v3014_v21  ;;  %v3015_v39 = vunpack.i.l.bf16 %v3014_v21 }
  0xe9   :  { %v1016_v15 = vsel %vm1005_vm8, %v999_v41, %v3020_v52  ;;  %v1017_v16 = vsel %vm1005_vm8, %v1000_v10, %v3021_v51 }
  0xea   :  { %v3029_v5 = vpop.permute.xlu1 %3028  ;;  %v1014_v57 = vsel %vm1005_vm8, %v997_v49, %v3015_v39  ;;  %v1015_v55 = vsel %vm1005_vm8, %v998_v50, %v3016_v38 }
  0xeb   :  { %v3024_v0 = vpop.permute.xlu0 %3023  ;;  %v3031_v59 = vunpack.i.h.bf16 %v3029_v5  ;;  %v3030_v60 = vunpack.i.l.bf16 %v3029_v5 }
  0xec   :  { %v3026_v43 = vunpack.i.h.bf16 %v3024_v0  ;;  %v3025_v44 = vunpack.i.l.bf16 %v3024_v0 }
  0xed   :  { %v1033_v20 = vsel %vm1022_vm9, %v1016_v15, %v3030_v60  ;;  %v1034_v21 = vsel %vm1022_vm9, %v1017_v16, %v3031_v59 }
  0xee   :  { %v3039_v53 = vpop.permute.xlu1 %3038  ;;  %v1031_v34 = vsel %vm1022_vm9, %v1014_v57, %v3025_v44  ;;  %v1032_v62 = vsel %vm1022_vm9, %v1015_v55, %v3026_v43 }
  0xef   :  { %v3034_v54 = vpop.permute.xlu0 %3033  ;;  %v3041_v28 = vunpack.i.h.bf16 %v3039_v53  ;;  %v3040_v9 = vunpack.i.l.bf16 %v3039_v53 }
  0xf0   :  { %v3036_v58 = vunpack.i.h.bf16 %v3034_v54  ;;  %v3035_v56 = vunpack.i.l.bf16 %v3034_v54 }
  0xf1   :  { %v934_v42 = vsel %vm204_vm0, %v3949_v18, %v3041_v28  ;;  %v933_v43 = vsel %vm204_vm0, %v3935_v2, %v3040_v9 }
  0xf2   :  { %v1048_v7 = vsel %vm1039_vm10, %v1031_v34, %v3035_v56  ;;  %v1049_v4 = vsel %vm1039_vm10, %v1032_v62, %v3036_v58  ;;  %v3049_v13 = vpop.permute.xlu1 %3048 }
  0xf3   :  { %v1060_v12 = vpack.c.bf16 %v1049_v4, %v1048_v7  ;;  %v3044_v14 = vpop.permute.xlu0 %3043  ;;  %v3051_v1 = vunpack.i.h.bf16 %v3049_v13  ;;  %v3050_v29 = vunpack.i.l.bf16 %v3049_v13 }
  0xf4   :  { %v3046_v17 = vunpack.i.h.bf16 %v3044_v14  ;;  %v3045_v19 = vunpack.i.l.bf16 %v3044_v14 }
  0xf5   :  { %2751 = vmatprep.mubr.msk.bf16.mxu0 %vm1091_vm11, %v1060_v12  ;;  %v936_v44 = vsel %vm204_vm0, %v3965_v30, %v3051_v1  ;;  %v935_v45 = vsel %vm204_vm0, %v3967_v33, %v3050_v29  ;;  %vm2174_vm0 = vcmask 392192  }
  0xf6   :  { %v1051_v22 = vsel %vm1039_vm10, %v1034_v21, %v3046_v17  ;;  %v1050_v23 = vsel %vm1039_vm10, %v1033_v20, %v3045_v19  ;;  %v3059_v25 = vpop.permute.xlu1 %3058 }
  0xf7   :  { %v1061_v24 = vpack.c.bf16 %v1051_v22, %v1050_v23  ;;  %v3054_v26 = vpop.permute.xlu0 %3053  ;;  %v3061_v3 = vunpack.i.h.bf16 %v3059_v25  ;;  %v3060_v31 = vunpack.i.l.bf16 %v3059_v25 }
  0xf8   :  { %v3056_v36 = vunpack.i.h.bf16 %v3054_v26  ;;  %v3055_v5 = vunpack.i.l.bf16 %v3054_v26 }
  0xf9   :  { %2752 = vmatmul.mubr.msk.bf16.gmra.mrb[8].mxu0 %vm1091_vm11, %v1061_v24  ;;  %v952_v46 = vsel %vm937_vm3, %v935_v45, %v3060_v31  ;;  %v953_v47 = vsel %vm937_vm3, %v936_v44, %v3061_v3 }
  0xfa   :  { %v3069_v27 = vpop.permute.xlu1 %3068  ;;  %v951_v48 = vsel %vm937_vm3, %v934_v42, %v3056_v36  ;;  %v950_v49 = vsel %vm937_vm3, %v933_v43, %v3055_v5  ;;  %v4165_v43 = vld [vmem:[%s4882_s2] ss:$0 sm:$0xff] }
  0xfb   :  { %v3064_v61 = vpop.permute.xlu0 %3063  ;;  %v3071_v32 = vunpack.i.h.bf16 %v3069_v27  ;;  %v3070_v38 = vunpack.i.l.bf16 %v3069_v27 }
  0xfc   :  { %v3066_v39 = vunpack.i.h.bf16 %v3064_v61  ;;  %v3065_v40 = vunpack.i.l.bf16 %v3064_v61 }
  0xfd   :  { %v969_v54 = vsel %vm954_vm5, %v952_v46, %v3070_v38  ;;  %v970_v30 = vsel %vm954_vm5, %v953_v47, %v3071_v32 }
  0xfe   :  { %v3079_v11 = vpop.permute.xlu1 %3078  ;;  %v967_v33 = vsel %vm954_vm5, %v950_v49, %v3065_v40  ;;  %v968_v57 = vsel %vm954_vm5, %v951_v48, %v3066_v39 }
  0xff   :  { %v3074_v8 = vpop.permute.xlu0 %3073  ;;  %v3081_v18 = vunpack.i.h.bf16 %v3079_v11  ;;  %v3080_v52 = vunpack.i.l.bf16 %v3079_v11 }
 0x100   :  { %v3076_v53 = vunpack.i.h.bf16 %v3074_v8  ;;  %v3075_v2 = vunpack.i.l.bf16 %v3074_v8 }
 0x101   :  { %v986_v4 = vsel %vm971_vm6, %v969_v54, %v3080_v52  ;;  %v987_v41 = vsel %vm971_vm6, %v970_v30, %v3081_v18 }
 0x102   :  { %v3089_v0 = vpop.permute.xlu1 %3088  ;;  %v984_v10 = vsel %vm971_vm6, %v967_v33, %v3075_v2  ;;  %v985_v12 = vsel %vm971_vm6, %v968_v57, %v3076_v53 }
 0x103   :  { %v3084_v37 = vpop.permute.xlu0 %3083  ;;  %v3091_v55 = vunpack.i.h.bf16 %v3089_v0  ;;  %v3090_v58 = vunpack.i.l.bf16 %v3089_v0 }
 0x104   :  { %v3086_v56 = vunpack.i.h.bf16 %v3084_v37  ;;  %v3085_v59 = vunpack.i.l.bf16 %v3084_v37 }
 0x105   :  { %v1003_v17 = vsel %vm988_vm7, %v986_v4, %v3090_v58  ;;  %v1004_v19 = vsel %vm988_vm7, %v987_v41, %v3091_v55 }
 0x106   :  { %v3099_v50 = vpop.permute.xlu1 %3098  ;;  %v1001_v20 = vsel %vm988_vm7, %v984_v10, %v3085_v59  ;;  %v1002_v21 = vsel %vm988_vm7, %v985_v12, %v3086_v56 }
 0x107   :  { %v3094_v51 = vpop.permute.xlu0 %3093  ;;  %v3101_v60 = vunpack.i.h.bf16 %v3099_v50  ;;  %v3100_v34 = vunpack.i.l.bf16 %v3099_v50 }
 0x108   :  { %v3096_v62 = vunpack.i.h.bf16 %v3094_v51  ;;  %v3095_v35 = vunpack.i.l.bf16 %v3094_v51 }
 0x109   :  { %v1020_v22 = vsel %vm1005_vm8, %v1003_v17, %v3100_v34  ;;  %v1021_v23 = vsel %vm1005_vm8, %v1004_v19, %v3101_v60 }
 0x10a   :  { %v3109_v63 = vpop.permute.xlu1 %3108  ;;  %v1018_v24 = vsel %vm1005_vm8, %v1001_v20, %v3095_v35  ;;  %v1019_v25 = vsel %vm1005_vm8, %v1002_v21, %v3096_v62 }
 0x10b   :  { %v3104_v7 = vpop.permute.xlu0 %3103  ;;  %v3111_v13 = vunpack.i.h.bf16 %v3109_v63  ;;  %v3110_v14 = vunpack.i.l.bf16 %v3109_v63 }
 0x10c   :  { %v3106_v15 = vunpack.i.h.bf16 %v3104_v7  ;;  %v3105_v16 = vunpack.i.l.bf16 %v3104_v7 }
 0x10d   :  { %v1037_v9 = vsel %vm1022_vm9, %v1020_v22, %v3110_v14  ;;  %v1038_v1 = vsel %vm1022_vm9, %v1021_v23, %v3111_v13 }
 0x10e   :  { %v3119_v26 = vpop.permute.xlu1 %3118  ;;  %v1035_v29 = vsel %vm1022_vm9, %v1018_v24, %v3105_v16  ;;  %v1036_v3 = vsel %vm1022_vm9, %v1019_v25, %v3106_v15 }
 0x10f   :  { %v3114_v27 = vpop.permute.xlu0 %3113  ;;  %v3121_v61 = vunpack.i.h.bf16 %v3119_v26  ;;  %v3120_v11 = vunpack.i.l.bf16 %v3119_v26 }
 0x110   :  { %v3116_v8 = vunpack.i.h.bf16 %v3114_v27  ;;  %v3115_v28 = vunpack.i.l.bf16 %v3114_v27 }
 0x111   :  { %v1054_v31 = vsel %vm1039_vm10, %v1037_v9, %v3120_v11  ;;  %v1055_v36 = vsel %vm1039_vm10, %v1038_v1, %v3121_v61 }
 0x112   :  { %v1052_v5 = vsel %vm1039_vm10, %v1035_v29, %v3115_v28  ;;  %v1053_v0 = vsel %vm1039_vm10, %v1036_v3, %v3116_v8  ;;  %v1063_v37 = vpack.c.bf16 %v1055_v36, %v1054_v31 }
 0x113   :  { %v1062_v32 = vpack.c.bf16 %v1053_v0, %v1052_v5 }
 0x115   :  { %2755 = vmatprep.mubr.msk.bf16.mxu0 %vm1091_vm11, %v1062_v32 }
 0x116   :  { %2756 = vmatmul.mubr.msk.bf16.gmra.mrb[12].mxu0 %vm1091_vm11, %v1063_v37 }
 0x18c   :  { %v2745_v38 = vpop.f32.mrb[0].mxu0 }
 0x18d   :  { %v1154_v39 = vpop.f32.mrb[1].mxu0  ;;  %v4244_v47 = vadd.f32 %v2745_v38, %v4165_v43 }
 0x18e   :  { %v2746_v40 = vpop.f32.mrb[2].mxu0  ;;  %v4171_v45 = vadd.f32 %v4165_v43, %v1154_v39 }
 0x18f   :  { %v1157_v42 = vpop.f32.mrb[3].mxu0  ;;  %v4254_v18 = vadd.f32 %v2746_v40, %v4165_v43  ;;  %v1256_v6 = vmul.f32 %v4244_v47, %v4244_v47  ;;  %v1220_v54 = vsel %vm937_vm3, %v4244_v47, 0.0 }
 0x190   :  { %v4168_v44 = vadd.f32 %v4165_v43, %v1157_v42  ;;  %v1254_v48 = vmul.f32 %v4171_v45, %v4171_v45  ;;  %v1217_v50 = vsel %vm937_vm3, %v4171_v45, 0.0 }
 0x191   :  { %v1257_v30 = vmul.f32 %v4254_v18, %v4254_v18  ;;  %v1273_v57 = vsel %vm937_vm3, %v1256_v6, 0.0  ;;  %v1222_v59 = vsel %vm937_vm3, %v4254_v18, 0.0 }
 0x192   :  { %v1255_v46 = vmul.f32 %v4168_v44, %v4168_v44  ;;  %v1218_v49 = vsel %vm937_vm3, %v4168_v44, 0.0  ;;  %v1270_v53 = vsel %vm937_vm3, %v1254_v48, 0.0 }
 0x193   :  { %v1219_v52 = vadd.f32 %v1218_v49, %v1217_v50  ;;  %v1275_v35 = vsel %vm937_vm3, %v1257_v30, 0.0 }
 0x194   :  { %v1271_v51 = vsel %vm937_vm3, %v1255_v46, 0.0 }
 0x195   :  { %v1272_v2 = vadd.f32 %v1271_v51, %v1270_v53  ;;  %v1221_v33 = vadd.f32 %v1220_v54, %v1219_v52 }
 0x197   :  { %v1274_v58 = vadd.f32 %v1273_v57, %v1272_v2  ;;  %v1223_v63 = vadd.f32 %v1222_v59, %v1221_v33 }
 0x199   :  { %v1276_v14 = vadd.f32 %v1275_v35, %v1274_v58 }
 0x1ac   :  { %v2749_v55 = vpop.f32.mrb[4].mxu0 }
 0x1ad   :  { %v1170_v56 = vpop.f32.mrb[5].mxu0  ;;  %v4267_v60 = vadd.f32 %v2749_v55, %v4165_v43 }
 0x1ae   :  { %v4270_v34 = vadd.f32 %v4165_v43, %v1170_v56  ;;  %v2750_v62 = vpop.f32.mrb[6].mxu0 }
 0x1af   :  { %v1173_v7 = vpop.f32.mrb[7].mxu0  ;;  %v4278_v10 = vadd.f32 %v2750_v62, %v4165_v43  ;;  %v1260_v15 = vmul.f32 %v4267_v60, %v4267_v60  ;;  %v1228_v22 = vsel %vm937_vm3, %v4267_v60, 0.0 }
 0x1b0   :  { %v1224_v4 = vsel %vm937_vm3, %v4270_v34, 0.0  ;;  %v1258_v41 = vmul.f32 %v4270_v34, %v4270_v34  ;;  %v4281_v12 = vadd.f32 %v4165_v43, %v1173_v7 }
 0x1b1   :  { %v1225_v13 = vadd.f32 %v1224_v4, %v1223_v63  ;;  %v1261_v23 = vmul.f32 %v4278_v10, %v4278_v10  ;;  %v1281_v27 = vsel %vm937_vm3, %v1260_v15, 0.0  ;;  %v1230_v61 = vsel %vm937_vm3, %v4278_v10, 0.0 }
 0x1b2   :  { %v1277_v16 = vsel %vm937_vm3, %v1258_v41, 0.0  ;;  %v1226_v17 = vsel %vm937_vm3, %v4281_v12, 0.0  ;;  %v1259_v19 = vmul.f32 %v4281_v12, %v4281_v12 }
 0x1b3   :  { %v1278_v20 = vadd.f32 %v1277_v16, %v1276_v14  ;;  %v1227_v21 = vadd.f32 %v1226_v17, %v1225_v13  ;;  %v1283_v28 = vsel %vm937_vm3, %v1261_v23, 0.0 }
 0x1b4   :  { %v1279_v24 = vsel %vm937_vm3, %v1259_v19, 0.0 }
 0x1b5   :  { %v1229_v25 = vadd.f32 %v1228_v22, %v1227_v21  ;;  %v1280_v26 = vadd.f32 %v1279_v24, %v1278_v20 }
 0x1b7   :  { %v1282_v11 = vadd.f32 %v1281_v27, %v1280_v26  ;;  %v1231_v8 = vadd.f32 %v1230_v61, %v1229_v25 }
 0x1b9   :  { %v1284_v9 = vadd.f32 %v1283_v28, %v1282_v11 }
 0x1cc   :  { %v2753_v1 = vpop.f32.mrb[8].mxu0 }
 0x1cd   :  { %v1186_v29 = vpop.f32.mrb[9].mxu0  ;;  %v4300_v3 = vadd.f32 %v2753_v1, %v4165_v43 }
 0x1ce   :  { %v4303_v31 = vadd.f32 %v4165_v43, %v1186_v29  ;;  %v2754_v36 = vpop.f32.mrb[10].mxu0 }
 0x1cf   :  { %v1189_v5 = vpop.f32.mrb[11].mxu0  ;;  %v4310_v32 = vadd.f32 %v2754_v36, %v4165_v43  ;;  %v1264_v40 = vmul.f32 %v4300_v3, %v4300_v3  ;;  %v1236_v51 = vsel %vm937_vm3, %v4300_v3, 0.0 }
 0x1d0   :  { %v1232_v0 = vsel %vm937_vm3, %v4303_v31, 0.0  ;;  %v1262_v37 = vmul.f32 %v4303_v31, %v4303_v31  ;;  %v4313_v38 = vadd.f32 %v4165_v43, %v1189_v5 }
 0x1d1   :  { %v1233_v39 = vadd.f32 %v1232_v0, %v1231_v8  ;;  %v1265_v52 = vmul.f32 %v4310_v32, %v4310_v32  ;;  %v1289_v54 = vsel %vm937_vm3, %v1264_v40, 0.0  ;;  %v1238_v30 = vsel %vm937_vm3, %v4310_v32, 0.0 }
 0x1d2   :  { %v1285_v42 = vsel %vm937_vm3, %v1262_v37, 0.0  ;;  %v1234_v46 = vsel %vm937_vm3, %v4313_v38, 0.0  ;;  %v1263_v48 = vmul.f32 %v4313_v38, %v4313_v38 }
 0x1d3   :  { %v1286_v49 = vadd.f32 %v1285_v42, %v1284_v9  ;;  %v1235_v50 = vadd.f32 %v1234_v46, %v1233_v39  ;;  %v1291_v55 = vsel %vm937_vm3, %v1265_v52, 0.0 }
 0x1d4   :  { %v1287_v6 = vsel %vm937_vm3, %v1263_v48, 0.0 }
 0x1d5   :  { %v1237_v53 = vadd.f32 %v1236_v51, %v1235_v50  ;;  %v1288_v2 = vadd.f32 %v1287_v6, %v1286_v49 }
 0x1d7   :  { %v1290_v33 = vadd.f32 %v1289_v54, %v1288_v2  ;;  %v1239_v57 = vadd.f32 %v1238_v30, %v1237_v53  ;;  %v1318_v2 = vlaneseq  ;;  %v1313_v30 = vld [vmem:[%s4885_s5] sm:$0x1] }
 0x1d9   :  { %v1292_v58 = vadd.f32 %v1291_v55, %v1290_v33  ;;  %v1319_v54 = vshrl.u32 %v1318_v2, 7 }
 0x1db   :  { %v4361_v33 = vsub.s32 0, %v1319_v54  ;;  %v1468_v54 = vld [vmem:[#allocation3 + $0x2] sm:$0xff] }
 0x1e9   :  { %v2757_v56 = vpop.f32.mrb[12].mxu0 }
 0x1ea   :  { %v1202_v59 = vpop.f32.mrb[13].mxu0  ;;  %v4332_v62 = vadd.f32 %v2757_v56, %v4165_v43 }
 0x1eb   :  { %v4335_v35 = vadd.f32 %v4165_v43, %v1202_v59  ;;  %v2758_v63 = vpop.f32.mrb[14].mxu0 }
 0x1ec   :  { %v1205_v7 = vpop.f32.mrb[15].mxu0  ;;  %v4342_v13 = vadd.f32 %v2758_v63, %v4165_v43  ;;  %v1268_v16 = vmul.f32 %v4332_v62, %v4332_v62  ;;  %v1244_v23 = vsel %vm937_vm3, %v4332_v62, 0.0 }
 0x1ed   :  { %v1240_v4 = vsel %vm937_vm3, %v4335_v35, 0.0  ;;  %v1266_v41 = vmul.f32 %v4335_v35, %v4335_v35  ;;  %v1206_v14 = vadd.f32 %v4165_v43, %v1205_v7 }
 0x1ee   :  { %v1241_v15 = vadd.f32 %v1240_v4, %v1239_v57  ;;  %v1269_v24 = vmul.f32 %v4342_v13, %v4342_v13  ;;  %v1297_v27 = vsel %vm937_vm3, %v1268_v16, 0.0  ;;  %v1246_v61 = vsel %vm937_vm3, %v4342_v13, 0.0 }
 0x1ef   :  { %v1293_v17 = vsel %vm937_vm3, %v1266_v41, 0.0  ;;  %v1242_v19 = vsel %vm937_vm3, %v1206_v14, 0.0  ;;  %v1267_v20 = vmul.f32 %v1206_v14, %v1206_v14 }
 0x1f0   :  { %v1294_v21 = vadd.f32 %v1293_v17, %v1292_v58  ;;  %v1243_v22 = vadd.f32 %v1242_v19, %v1241_v15  ;;  %v1299_v28 = vsel %vm937_vm3, %v1269_v24, 0.0  ;;  %v1315_v58 = vld [vmem:[%s4886_s6] sm:$0x1] }
 0x1f1   :  { %v1295_v25 = vsel %vm937_vm3, %v1267_v20, 0.0 }
 0x1f2   :  { %v1245_v43 = vadd.f32 %v1244_v23, %v1243_v22  ;;  %v1296_v26 = vadd.f32 %v1295_v25, %v1294_v21 }
 0x1f4   :  { %v1247_v11 = vadd.f32 %v1246_v61, %v1245_v43  ;;  %v1298_v8 = vadd.f32 %v1297_v27, %v1296_v26 }
 0x1f6   :  { %v1248_v9 = vrot.slane %v1247_v11, 4  ;;  %v1300_v1 = vadd.f32 %v1299_v28, %v1298_v8 }
 0x1f8   :  { %v1249_v29 = vadd.f32 %v1248_v9, %v1247_v11  ;;  %v1301_v36 = vrot.slane %v1300_v1, 4 }
 0x1fa   :  { %v1250_v5 = vrot.slane %v1249_v29, 2  ;;  %v1302_v0 = vadd.f32 %v1301_v36, %v1300_v1 }
 0x1fc   :  { %v1251_v37 = vadd.f32 %v1250_v5, %v1249_v29  ;;  %v1303_v39 = vrot.slane %v1302_v0, 2 }
 0x1fe   :  { %v1252_v40 = vrot.slane %v1251_v37, 1  ;;  %v1304_v42 = vadd.f32 %v1303_v39, %v1302_v0 }
 0x200   :  { %v1253_v46 = vadd.f32 %v1252_v40, %v1251_v37  ;;  %v1305_v48 = vrot.slane %v1304_v42, 1 }
 0x202   :  { %v1306_v49 = vadd.f32 %v1305_v48, %v1304_v42  ;;  %v1307_v50 = vmul.f32 0.0078125, %v1253_v46 }
 0x204   :  { %v1308_v51 = vmul.f32 0.0078125, %v1306_v49  ;;  %v1309_v52 = vmul.f32 %v1307_v50, %v1307_v50 }
 0x206   :  { %v1310_v6 = vsub.f32 %v1308_v51, %v1309_v52 }
 0x208   :  { %v1311_v53 = vadd.f32 1e-05, %v1310_v6 }
 0x20a   :  { %3450 = vrsqrt.f32 %v1311_v53 }
 0x214   :  { %v3451_v57 = vpop.eup %3450 }
 0x215   :  { %v1314_v55 = vmul.f32 %v3451_v57, %v1313_v30 }
 0x217   :  { %v1316_v56 = vmul.f32 %v1314_v55, %v1307_v50  ;;  %v1321_v59 = vrot.slane %v1314_v55, %v4361_v33  ;;  %v1452_v50 = vld [vmem:[#allocation3 + $0x1] sm:$0xff] }
 0x219   :  { %v1317_v63 = vsub.f32 %v1315_v58, %v1316_v56  ;;  %v1335_v7 = vmul.f32 %v1321_v59, %v1206_v14  ;;  %v1323_v4 = vmul.f32 %v1321_v59, %v4168_v44  ;;  %v1324_v41 = vmul.f32 %v1321_v59, %v4244_v47 }
 0x21a   :  { %v1322_v15 = vmul.f32 %v1321_v59, %v4171_v45  ;;  %v1325_v16 = vmul.f32 %v1321_v59, %v4254_v18  ;;  %v1326_v17 = vmul.f32 %v1321_v59, %v4270_v34  ;;  %v1327_v19 = vmul.f32 %v1321_v59, %v4281_v12 }
 0x21b   :  { %v1342_v20 = vrot.slane %v1317_v63, %v4361_v33  ;;  %v1328_v21 = vmul.f32 %v1321_v59, %v4267_v60  ;;  %v1329_v22 = vmul.f32 %v1321_v59, %v4278_v10  ;;  %v1330_v14 = vmul.f32 %v1321_v59, %v4303_v31 }
 0x21c   :  { %v1331_v44 = vmul.f32 %v1321_v59, %v4313_v38  ;;  %v1332_v47 = vmul.f32 %v1321_v59, %v4300_v3  ;;  %v1333_v45 = vmul.f32 %v1321_v59, %v4310_v32  ;;  %v1334_v18 = vmul.f32 %v1321_v59, %v4335_v35 }
 0x21d   :  { %v1357_v23 = vadd.f32 %v1342_v20, %v1335_v7  ;;  %v1345_v34 = vadd.f32 %v1342_v20, %v1323_v4  ;;  %v1346_v24 = vadd.f32 %v1342_v20, %v1324_v41  ;;  %v1344_v12 = vadd.f32 %v1342_v20, %v1322_v15 }
 0x21e   :  { %v1347_v25 = vadd.f32 %v1342_v20, %v1325_v16  ;;  %v1348_v43 = vadd.f32 %v1342_v20, %v1326_v17  ;;  %v1349_v26 = vadd.f32 %v1342_v20, %v1327_v19  ;;  %v1350_v60 = vadd.f32 %v1342_v20, %v1328_v21  ;;  %v3445_v21 = vld [vmem:[%s4883_s3] sm:$0xff]  }
 0x21f   :  { %v1373_v27 = vmax.f32 %v1357_v23, 0.0  ;;  %v1361_v10 = vmax.f32 %v1345_v34, 0.0  ;;  %v1362_v61 = vmax.f32 %v1346_v24, 0.0  ;;  %v1360_v31 = vmax.f32 %v1344_v12, 0.0  ;;  %2759 = vmatprep.subr.bf16.mxu1 %v3445_v21  ;;  %v3447_v23 = vld [vmem:[%s4883_s3 + $0x10] sm:$0xff]   ;;  %v3448_v12 = vld [vmem:[%s4883_s3 + $0x18] sm:$0xff]  }
 0x220   :  { %v1363_v11 = vmax.f32 %v1347_v25, 0.0  ;;  %v1364_v38 = vmax.f32 %v1348_v43, 0.0  ;;  %v1365_v8 = vmax.f32 %v1349_v26, 0.0  ;;  %v1366_v3 = vmax.f32 %v1350_v60, 0.0  ;;  %2760 = vmatpush3.bf16.msra.mxu1 %v3445_v21  ;;  %v3449_v25 = vld [vmem:[%s4883_s3 + $0x20] ss:$0 sps:$4 sm:$0xff]  }
 0x221   :  { %1390 = vst.msk [vmem:[#allocation3 + $0x101] sm:$0xff] %vm937_vm3, %v1373_v27  ;;  %1378 = vst.msk [vmem:[#allocation3 + $0x21] sm:$0xff] %vm937_vm3, %v1361_v10  ;;  %v1351_v32 = vadd.f32 %v1342_v20, %v1329_v22  ;;  %v1352_v35 = vadd.f32 %v1342_v20, %v1330_v14  ;;  %v1353_v28 = vadd.f32 %v1342_v20, %v1331_v44  ;;  %v3446_v44 = vld [vmem:[%s4883_s3 + $0x8] sm:$0xff]  }
 0x222   :  { %1379 = vst.msk [vmem:[#allocation3 + $0x31] sm:$0xff] %vm937_vm3, %v1362_v61  ;;  %1377 = vst.msk [vmem:[#allocation3 + $0x11] sm:$0xff] %vm937_vm3, %v1360_v31  ;;  %v1354_v9 = vadd.f32 %v1342_v20, %v1332_v47  ;;  %v1355_v1 = vadd.f32 %v1342_v20, %v1333_v45  ;;  %v1356_v29 = vadd.f32 %v1342_v20, %v1334_v18  ;;  %2761 = vmatprep.subr.bf16.mxu1 %v3446_v44 }
 0x223   :  { %1380 = vst.msk [vmem:[#allocation3 + $0x41] sm:$0xff] %vm937_vm3, %v1363_v11  ;;  %1381 = vst.msk [vmem:[#allocation3 + $0x51] sm:$0xff] %vm937_vm3, %v1364_v38  ;;  %v1336_v36 = vmul.f32 %v1321_v59, %v4332_v62  ;;  %v1337_v5 = vmul.f32 %v1321_v59, %v4342_v13  ;;  %v1367_v0 = vmax.f32 %v1351_v32, 0.0  ;;  %v1368_v37 = vmax.f32 %v1352_v35, 0.0 }
 0x224   :  { %1382 = vst.msk [vmem:[#allocation3 + $0x61] sm:$0xff] %vm937_vm3, %v1365_v8  ;;  %1383 = vst.msk [vmem:[#allocation3 + $0x71] sm:$0xff] %vm937_vm3, %v1366_v3  ;;  %v1369_v39 = vmax.f32 %v1353_v28, 0.0  ;;  %v1370_v40 = vmax.f32 %v1354_v9, 0.0  ;;  %v1371_v42 = vmax.f32 %v1355_v1, 0.0  ;;  %v1372_v46 = vmax.f32 %v1356_v29, 0.0  ;;  %2762 = vmatpush3.bf16.msra.mxu1 %v3446_v44 }
 0x225   :  { %v1358_v48 = vadd.f32 %v1342_v20, %v1336_v36  ;;  %v1359_v49 = vadd.f32 %v1342_v20, %v1337_v5  ;;  %1384 = vst.msk [vmem:[#allocation3 + $0x81] sm:$0xff] %vm937_vm3, %v1367_v0  ;;  %1385 = vst.msk [vmem:[#allocation3 + $0xb1] sm:$0xff] %vm937_vm3, %v1368_v37  ;;  %2763 = vmatprep.subr.bf16.mxu1 %v3447_v23  ;;  %v2303_v61 = vsel %vm2301_vm14, %v3449_v25, 0  ;;  %v1540_v37 = vld [vmem:[#allocation3 + $0x90] sm:$0xff] }
 0x226   :  { %1386 = vst.msk [vmem:[#allocation3 + $0xc1] sm:$0xff] %vm937_vm3, %v1369_v39  ;;  %1387 = vst.msk [vmem:[#allocation3 + $0xd1] sm:$0xff] %vm937_vm3, %v1370_v40 }
 0x227   :  { %1388 = vst.msk [vmem:[#allocation3 + $0xe1] sm:$0xff] %vm937_vm3, %v1371_v42  ;;  %1389 = vst.msk [vmem:[#allocation3 + $0xf1] sm:$0xff] %vm937_vm3, %v1372_v46  ;;  %v1374_v62 = vmax.f32 %v1358_v48, 0.0  ;;  %v1375_v13 = vmax.f32 %v1359_v49, 0.0  ;;  %v1556_v42 = vld [vmem:[#allocation3 + $0x91] sm:$0xff]  ;;  %v1460_v48 = vld [vmem:[#allocation3 + $0xa1] sm:$0xff] }
 0x228   :  { %v1454_v51 = vld [vmem:[#allocation3 + $0x21] sm:$0xff]  ;;  %2764 = vmatpush3.bf16.msra.mxu1 %v3447_v23 }
 0x229   :  { %v1455_v52 = vld [vmem:[#allocation3 + $0x31] sm:$0xff]  ;;  %1391 = vst.msk [vmem:[#allocation3 + $0x111] sm:$0xff] %vm937_vm3, %v1374_v62  ;;  %1392 = vst.msk [vmem:[#allocation3 + $0x121] sm:$0xff] %vm937_vm3, %v1375_v13  ;;  %v1470_v30 = vld [vmem:[#allocation3 + $0x22] sm:$0xff]  ;;  %2765 = vmatprep.subr.bf16.mxu1 %v3448_v12 }
 0x22a   :  { %v1453_v6 = vld [vmem:[#allocation3 + $0x11] sm:$0xff]  ;;  %v3127_v53 = vpack.i.bf16 %v1455_v52, %v1454_v51  ;;  %v4403_v63 = vld [vmem:[#allocation3 + $0x40] sm:$0xff] }
 0x22b   :  { %v3122_v2 = vpack.i.bf16 %v1453_v6, %v1452_v50  ;;  %v1471_v57 = vld [vmem:[#allocation3 + $0x32] sm:$0xff]  ;;  %v4407_v4 = vld [vmem:[#allocation3 + $0x20] sm:$0xff]  ;;  %v3152_v19 = vpack.i.bf16 %v1454_v51, %v1453_v6 }
 0x22c   :  { %v1469_v55 = vld [vmem:[#allocation3 + $0x12] sm:$0xff]  ;;  %3128 = vrot.lane.b32.xlu1 %v3127_v53, %s3479_s25  ;;  %v3137_v58 = vpack.i.bf16 %v1471_v57, %v1470_v30  ;;  %v1503_v16 = vld [vmem:[#allocation3 + $0x41] sm:$0xff]  ;;  %2766 = vmatpush3.bf16.msra.mxu1 %v3448_v12 }
 0x22d   :  { %3123 = vrot.lane.b32.xlu0 %v3122_v2, %s3479_s25  ;;  %v3132_v56 = vpack.i.bf16 %v1469_v55, %v1468_v54  ;;  %v4401_v59 = vld [vmem:[#allocation3 + $0x30] sm:$0xff]  ;;  %v3157_v17 = vpack.i.bf16 %v1503_v16, %v1455_v52  ;;  %v1519_v20 = vld [vmem:[#allocation3 + $0x42] sm:$0xff]  ;;  %v3162_v14 = vpack.i.bf16 %v1470_v30, %v1469_v55  ;;  %2786 = vmatprep.subr.msk.bf16.mxu1 %vm2301_vm14, %v3449_v25 }
 0x22e   :  { %v4405_v7 = vld [vmem:[#allocation3 + $0x10] sm:$0xff]  ;;  %v3147_v41 = vpack.i.bf16 %v4403_v63, %v4401_v59  ;;  %v3167_v22 = vpack.i.bf16 %v1519_v20, %v1471_v57  ;;  %v3172_v18 = vpack.i.bf16 %v4401_v59, %v4407_v4  ;;  %v1458_v43 = vld [vmem:[#allocation3 + $0x61] sm:$0xff] }
 0x22f   :  { %v3142_v15 = vpack.i.bf16 %v4407_v4, %v4405_v7  ;;  %v4425_v47 = vld [vmem:[#allocation3 + $0x50] sm:$0xff]  ;;  %v1474_v31 = vld [vmem:[#allocation3 + $0x62] sm:$0xff] }
 0x230   :  { %3138 = vrot.lane.b32.xlu1 %v3137_v58, %s3482_s8  ;;  %v3177_v45 = vpack.i.bf16 %v4425_v47, %v4403_v63  ;;  %v1552_v34 = vld [vmem:[#allocation3 + $0x51] sm:$0xff]  ;;  %2768 = vmatpush3.bf16.msra.mxu1 %v2303_v61  ;;  %v1491_v3 = vld [vmem:[#allocation3 + $0x80] sm:$0xff] }
 0x231   :  { %3133 = vrot.lane.b32.xlu0 %v3132_v56, %s3482_s8  ;;  %v3187_v24 = vpack.i.bf16 %v1552_v34, %v1503_v16  ;;  %v1459_v26 = vld [vmem:[#allocation3 + $0x71] sm:$0xff]  ;;  %v4452_v32 = vld [vmem:[#allocation3 + $0x60] sm:$0xff]  ;;  %v3232_v29 = vpack.i.bf16 %v1458_v43, %v1552_v34  ;;  %v3257_v39 = vpack.i.bf16 %v1540_v37, %v1491_v3 }
 0x232   :  { %v1568_v60 = vld [vmem:[#allocation3 + $0x52] sm:$0xff]  ;;  %v3207_v27 = vpack.i.bf16 %v1459_v26, %v1458_v43  ;;  %v3222_v28 = vpack.i.bf16 %v4452_v32, %v4425_v47  ;;  %v1507_v9 = vld [vmem:[#allocation3 + $0x81] sm:$0xff] }
 0x233   :  { %v3202_v10 = vpack.i.bf16 %v1568_v60, %v1519_v20  ;;  %v1475_v11 = vld [vmem:[#allocation3 + $0x72] sm:$0xff]  ;;  %v3237_v1 = vpack.i.bf16 %v1507_v9, %v1459_v26  ;;  %v1523_v36 = vld [vmem:[#allocation3 + $0x82] sm:$0xff]  ;;  %v3242_v0 = vpack.i.bf16 %v1474_v31, %v1568_v60  ;;  %v3267_v46 = vpack.i.bf16 %v1556_v42, %v1507_v9 }
 0x234   :  { %3148 = vrot.lane.b32.xlu1 %v3147_v41, %s3484_s24  ;;  %v3217_v38 = vpack.i.bf16 %v1475_v11, %v1474_v31  ;;  %v4450_v8 = vld [vmem:[#allocation3 + $0x70] sm:$0xff]  ;;  %v3247_v5 = vpack.i.bf16 %v1523_v36, %v1475_v11  ;;  %v1462_v62 = vld [vmem:[#allocation3 + $0xc1] sm:$0xff] }
 0x235   :  { %3143 = vrot.lane.b32.xlu0 %v3142_v15, %s3484_s24  ;;  %v3227_v35 = vpack.i.bf16 %v1491_v3, %v4450_v8  ;;  %v3252_v40 = vpack.i.bf16 %v4450_v8, %v4452_v32  ;;  %v1461_v49 = vld [vmem:[#allocation3 + $0xb1] sm:$0xff]  ;;  %v1478_v2 = vld [vmem:[#allocation3 + $0xc2] sm:$0xff] }
 0x236   :  { %v3277_v50 = vpack.i.bf16 %v1461_v49, %v1460_v48  ;;  %v1463_v13 = vld [vmem:[#allocation3 + $0xd1] sm:$0xff]  ;;  %v4477_v56 = vld [vmem:[#allocation3 + $0xe0] sm:$0xff]  ;;  %v3312_v21 = vpack.i.bf16 %v1462_v62, %v1461_v49 }
 0x237   :  { %v1572_v51 = vld [vmem:[#allocation3 + $0x92] sm:$0xff]  ;;  %v3287_v52 = vpack.i.bf16 %v1463_v13, %v1462_v62  ;;  %v4481_v15 = vld [vmem:[#allocation3 + $0xc0] sm:$0xff] }
 0x238   :  { %3158 = vrot.lane.b32.xlu1 %v3157_v17, %s3486_s14  ;;  %v3282_v6 = vpack.i.bf16 %v1572_v51, %v1523_v36  ;;  %v1479_v54 = vld [vmem:[#allocation3 + $0xd2] sm:$0xff]  ;;  %v1466_v12 = vld [vmem:[#allocation3 + $0x101] sm:$0xff] }
 0x239   :  { %3153 = vrot.lane.b32.xlu0 %v3152_v19, %s3486_s14  ;;  %v1477_v30 = vld [vmem:[#allocation3 + $0xb2] sm:$0xff]  ;;  %v3297_v57 = vpack.i.bf16 %v1479_v54, %v1478_v2  ;;  %v1511_v19 = vld [vmem:[#allocation3 + $0xe1] sm:$0xff] }
 0x23a   :  { %v4479_v41 = vld [vmem:[#allocation3 + $0xb0] sm:$0xff]  ;;  %v3317_v20 = vpack.i.bf16 %v1511_v19, %v1463_v13  ;;  %v3322_v44 = vpack.i.bf16 %v1478_v2, %v1477_v30  ;;  %v1499_v11 = vld [vmem:[#allocation3 + $0x120] sm:$0xff] }
 0x23b   :  { %v3302_v17 = vpack.i.bf16 %v4481_v15, %v4479_v41  ;;  %v1560_v34 = vld [vmem:[#allocation3 + $0xf1] sm:$0xff] }
 0x23c   :  { %3168 = vrot.lane.b32.xlu1 %v3167_v22, %s3487_s21  ;;  %v1527_v22 = vld [vmem:[#allocation3 + $0xe2] sm:$0xff]  ;;  %v1467_v25 = vld [vmem:[#allocation3 + $0x111] sm:$0xff] }
 0x23d   :  { %3163 = vrot.lane.b32.xlu0 %v3162_v14, %s3487_s21  ;;  %v3327_v14 = vpack.i.bf16 %v1527_v22, %v1479_v54  ;;  %v1576_v43 = vld [vmem:[#allocation3 + $0xf2] sm:$0xff]  ;;  %v3367_v26 = vpack.i.bf16 %v1467_v25, %v1466_v12 }
 0x23e   :  { %v3362_v60 = vpack.i.bf16 %v1576_v43, %v1527_v22  ;;  %v4509_v31 = vld [vmem:[#allocation3 + $0x110] sm:$0xff] }
 0x23f   :  { %v3387_v3 = vpack.i.bf16 %v1499_v11, %v4509_v31  ;;  %v1580_v62 = vld [vmem:[#allocation3 + $0x132] sm:$0xff] }
 0x240   :  { %3178 = vrot.lane.b32.xlu1 %v3177_v45, %s3488_s27  ;;  %v4493_v45 = vld [vmem:[#allocation3 + $0xf0] sm:$0xff] }
 0x241   :  { %3173 = vrot.lane.b32.xlu0 %v3172_v18, %s3488_s27  ;;  %v3337_v18 = vpack.i.bf16 %v4493_v45, %v4477_v56 }
 0x244   :  { %3188 = vrot.lane.b32.xlu1 %v3187_v24, %s3489_s9 }
 0x245   :  { %3183 = vrot.lane.b32.xlu0 %v3127_v53, %s3489_s9  ;;  %v1476_v53 = vld [vmem:[#allocation3 + $0xa2] sm:$0xff] }
 0x246   :  { %v3292_v55 = vpack.i.bf16 %v1477_v30, %v1476_v53 }
 0x248   :  { %3198 = vrot.lane.b32.xlu1 %v3187_v24, %s3479_s25  ;;  %v3347_v24 = vpack.i.bf16 %v1560_v34, %v1511_v19 }
 0x249   :  { %3193 = vrot.lane.b32.xlu0 %v3137_v58, %s3490_s12  ;;  %v4475_v58 = vld [vmem:[#allocation3 + $0xd0] sm:$0xff] }
 0x24a   :  { %v3307_v16 = vpack.i.bf16 %v4477_v56, %v4475_v58  ;;  %v3332_v23 = vpack.i.bf16 %v4475_v58, %v4481_v15 }
 0x24c   :  { %3208 = vrot.lane.b32.xlu1 %v3207_v27, %s3479_s25 }
 0x24d   :  { %3203 = vrot.lane.b32.xlu0 %v3202_v10, %s3490_s12 }
 0x250   :  { %3218 = vrot.lane.b32.xlu1 %v3217_v38, %s3482_s8 }
 0x251   :  { %3213 = vrot.lane.b32.xlu0 %v3202_v10, %s3482_s8  ;;  %v1483_v10 = vld [vmem:[#allocation3 + $0x112] sm:$0xff] }
 0x254   :  { %3228 = vrot.lane.b32.xlu1 %v3227_v35, %s3484_s24 }
 0x255   :  { %3223 = vrot.lane.b32.xlu0 %v3222_v28, %s3484_s24  ;;  %v1515_v28 = vld [vmem:[#allocation3 + $0x121] sm:$0xff] }
 0x256   :  { %v3397_v9 = vpack.i.bf16 %v1515_v28, %v1467_v25 }
 0x258   :  { %3238 = vrot.lane.b32.xlu1 %v3237_v1, %s3486_s14  ;;  %v3392_v1 = vpack.i.bf16 %v1466_v12, %v1560_v34 }
 0x259   :  { %3233 = vrot.lane.b32.xlu0 %v3232_v29, %s3486_s14  ;;  %v1531_v29 = vld [vmem:[#allocation3 + $0x122] sm:$0xff] }
 0x25a   :  { %v3407_v36 = vpack.i.bf16 %v1531_v29, %v1483_v10 }
 0x25c   :  { %3248 = vrot.lane.b32.xlu1 %v3247_v5, %s3487_s21 }
 0x25d   :  { %3243 = vrot.lane.b32.xlu0 %v3242_v0, %s3487_s21  ;;  %v1548_v0 = vld [vmem:[#allocation3 + $0x130] sm:$0xff] }
 0x260   :  { %3258 = vrot.lane.b32.xlu1 %v3257_v39, %s3488_s27 }
 0x261   :  { %3253 = vrot.lane.b32.xlu0 %v3252_v40, %s3488_s27  ;;  %v3417_v40 = vpack.i.bf16 %v1548_v0, %v1499_v11 }
 0x264   :  { %3268 = vrot.lane.b32.xlu1 %v3267_v46, %s3489_s9  ;;  %v1564_v46 = vld [vmem:[#allocation3 + $0x131] sm:$0xff] }
 0x265   :  { %3263 = vrot.lane.b32.xlu0 %v3207_v27, %s3489_s9  ;;  %v1482_v27 = vld [vmem:[#allocation3 + $0x102] sm:$0xff] }
 0x266   :  { %v3377_v61 = vpack.i.bf16 %v1483_v10, %v1482_v27  ;;  %v3402_v5 = vpack.i.bf16 %v1482_v27, %v1576_v43 }
 0x268   :  { %3278 = vrot.lane.b32.xlu1 %v3277_v50, %s3479_s25  ;;  %v3427_v50 = vpack.i.bf16 %v1564_v46, %v1515_v28 }
 0x269   :  { %3273 = vrot.lane.b32.xlu0 %v3217_v38, %s3490_s12  ;;  %v4511_v38 = vld [vmem:[#allocation3 + $0x100] sm:$0xff] }
 0x26a   :  { %v3382_v35 = vpack.i.bf16 %v4511_v38, %v4493_v45  ;;  %v3412_v42 = vpack.i.bf16 %v4509_v31, %v4511_v38 }
 0x26c   :  { %3288 = vrot.lane.b32.xlu1 %v3287_v52, %s3479_s25 }
 0x26d   :  { %3283 = vrot.lane.b32.xlu0 %v3282_v6, %s3490_s12 }
 0x270   :  { %3298 = vrot.lane.b32.xlu1 %v3297_v57, %s3482_s8 }
 0x271   :  { %3293 = vrot.lane.b32.xlu0 %v3292_v55, %s3482_s8 }
 0x274   :  { %3308 = vrot.lane.b32.xlu1 %v3307_v16, %s3484_s24 }
 0x275   :  { %3303 = vrot.lane.b32.xlu0 %v3302_v17, %s3484_s24 }
 0x278   :  { %3318 = vrot.lane.b32.xlu1 %v3317_v20, %s3486_s14  ;;  %v1436_v20 = vld [vmem:[#allocation3] sm:$0xff] }
 0x279   :  { %3313 = vrot.lane.b32.xlu0 %v3312_v21, %s3486_s14 }
 0x27c   :  { %3328 = vrot.lane.b32.xlu1 %v3327_v14, %s3487_s21 }
 0x27d   :  { %3323 = vrot.lane.b32.xlu0 %v3322_v44, %s3487_s21 }
 0x280   :  { %3338 = vrot.lane.b32.xlu1 %v3337_v18, %s3488_s27 }
 0x281   :  { %3333 = vrot.lane.b32.xlu0 %v3332_v23, %s3488_s27 }
 0x284   :  { %3348 = vrot.lane.b32.xlu1 %v3347_v24, %s3489_s9 }
 0x285   :  { %3343 = vrot.lane.b32.xlu0 %v3287_v52, %s3489_s9  ;;  %v3437_v52 = vpack.i.bf16 %v1580_v62, %v1531_v29 }
 0x288   :  { %3358 = vrot.lane.b32.xlu1 %v3347_v24, %s3479_s25 }
 0x289   :  { %3353 = vrot.lane.b32.xlu0 %v3297_v57, %s3490_s12 }
 0x28c   :  { %3368 = vrot.lane.b32.xlu1 %v3367_v26, %s3479_s25 }
 0x28d   :  { %3363 = vrot.lane.b32.xlu0 %v3362_v60, %s3490_s12 }
 0x290   :  { %3378 = vrot.lane.b32.xlu1 %v3377_v61, %s3482_s8 }
 0x291   :  { %3373 = vrot.lane.b32.xlu0 %v3362_v60, %s3482_s8 }
 0x294   :  { %3388 = vrot.lane.b32.xlu1 %v3387_v3, %s3484_s24 }
 0x295   :  { %3383 = vrot.lane.b32.xlu0 %v3382_v35, %s3484_s24 }
 0x298   :  { %3398 = vrot.lane.b32.xlu1 %v3397_v9, %s3486_s14 }
 0x299   :  { %3393 = vrot.lane.b32.xlu0 %v3392_v1, %s3486_s14 }
 0x29c   :  { %3408 = vrot.lane.b32.xlu1 %v3407_v36, %s3487_s21 }
 0x29d   :  { %3403 = vrot.lane.b32.xlu0 %v3402_v5, %s3487_s21 }
 0x29e   :  { %v3129_v37 = vpop.permute.xlu1 %3128 }
 0x29f   :  { %v3124_v39 = vpop.permute.xlu0 %3123  ;;  %v3131_v30 = vunpack.i.h.bf16 %v3129_v37  ;;  %v3130_v57 = vunpack.i.l.bf16 %v3129_v37 }
 0x2a0   :  { %3418 = vrot.lane.b32.xlu1 %v3417_v40, %s3488_s27  ;;  %v3126_v55 = vunpack.i.h.bf16 %v3124_v39  ;;  %v3125_v16 = vunpack.i.l.bf16 %v3124_v39 }
 0x2a1   :  { %3413 = vrot.lane.b32.xlu0 %v3412_v42, %s3488_s27  ;;  %v2096_v34 = vsel %vm937_vm3, %v4401_v59, %v3131_v30  ;;  %v2095_v24 = vsel %vm937_vm3, %v4407_v4, %v3130_v57 }
 0x2a2   :  { %v3139_v48 = vpop.permute.xlu1 %3138  ;;  %v2093_v43 = vsel %vm937_vm3, %v1436_v20, %v3125_v16 }
 0x2a3   :  { %v3134_v49 = vpop.permute.xlu0 %3133  ;;  %v3141_v17 = vunpack.i.h.bf16 %v3139_v48  ;;  %v3140_v19 = vunpack.i.l.bf16 %v3139_v48 }
 0x2a4   :  { %3428 = vrot.lane.b32.xlu1 %v3427_v50, %s3489_s9  ;;  %v3136_v21 = vunpack.i.h.bf16 %v3134_v49  ;;  %v3135_v22 = vunpack.i.l.bf16 %v3134_v49 }
 0x2a5   :  { %3423 = vrot.lane.b32.xlu0 %v3367_v26, %s3489_s9  ;;  %v2094_v26 = vsel %vm937_vm3, %v4405_v7, %v3126_v55  ;;  %v2111_v60 = vsel %vm971_vm6, %v2095_v24, %v3140_v19  ;;  %v2112_v27 = vsel %vm971_vm6, %v2096_v34, %v3141_v17 }
 0x2a6   :  { %v3149_v13 = vpop.permute.xlu1 %3148  ;;  %v2109_v10 = vsel %vm971_vm6, %v2093_v43, %v3135_v22 }
 0x2a7   :  { %v3144_v51 = vpop.permute.xlu0 %3143  ;;  %v3151_v14 = vunpack.i.h.bf16 %v3149_v13  ;;  %v3150_v44 = vunpack.i.l.bf16 %v3149_v13 }
 0x2a8   :  { %3438 = vrot.lane.b32.xlu1 %v3437_v52, %s3490_s12  ;;  %v3146_v12 = vunpack.i.h.bf16 %v3144_v51  ;;  %v3145_v25 = vunpack.i.l.bf16 %v3144_v51 }
 0x2a9   :  { %3433 = vrot.lane.b32.xlu0 %v3377_v61, %s3490_s12  ;;  %v2110_v61 = vsel %vm971_vm6, %v2094_v26, %v3136_v21  ;;  %v2127_v4 = vsel %vm1005_vm8, %v2111_v60, %v3150_v44  ;;  %v2128_v3 = vsel %vm1005_vm8, %v2112_v27, %v3151_v14 }
 0x2aa   :  { %v4532_v6 = vpop.permute.xlu1 %3158  ;;  %v2125_v7 = vsel %vm1005_vm8, %v2109_v10, %v3145_v25  ;;  %v2126_v29 = vsel %vm1005_vm8, %v2110_v61, %v3146_v12 }
 0x2ab   :  { %v3154_v53 = vpop.permute.xlu0 %3153  ;;  %v3161_v0 = vunpack.i.h.bf16 %v4532_v6  ;;  %v3160_v37 = vunpack.i.l.bf16 %v4532_v6 }
 0x2ac   :  { %v3156_v11 = vunpack.i.h.bf16 %v3154_v53  ;;  %v3155_v59 = vunpack.i.l.bf16 %v3154_v53 }
 0x2ad   :  { %v2143_v19 = vsel %vm1039_vm10, %v2127_v4, %v3160_v37  ;;  %v2144_v20 = vsel %vm1039_vm10, %v2128_v3, %v3161_v0 }
 0x2ae   :  { %v4534_v2 = vpop.permute.xlu1 %3168  ;;  %v2141_v42 = vsel %vm1039_vm10, %v2125_v7, %v3155_v59  ;;  %v2142_v46 = vsel %vm1039_vm10, %v2126_v29, %v3156_v11 }
 0x2af   :  { %v3164_v54 = vpop.permute.xlu0 %3163  ;;  %v3171_v48 = vunpack.i.h.bf16 %v4534_v2  ;;  %v3170_v49 = vunpack.i.l.bf16 %v4534_v2 }
 0x2b0   :  { %v3166_v35 = vunpack.i.h.bf16 %v3164_v54  ;;  %v3165_v28 = vunpack.i.l.bf16 %v3164_v54 }
 0x2b1   :  { %v2160_v14 = vsel %vm2157_vm15, %v2143_v19, %v3170_v49  ;;  %v2161_v44 = vsel %vm2157_vm15, %v2144_v20, %v3171_v48 }
 0x2b2   :  { %v3179_v18 = vpop.permute.xlu1 %3178  ;;  %v2158_v50 = vsel %vm2157_vm15, %v2141_v42, %v3165_v28  ;;  %v2159_v62 = vsel %vm2157_vm15, %v2142_v46, %v3166_v35 }
 0x2b3   :  { %v3174_v23 = vpop.permute.xlu0 %3173  ;;  %v3181_v13 = vunpack.i.h.bf16 %v3179_v18  ;;  %v3180_v51 = vunpack.i.l.bf16 %v3179_v18 }
 0x2b4   :  { %v3176_v36 = vunpack.i.h.bf16 %v3174_v23  ;;  %v3175_v5 = vunpack.i.l.bf16 %v3174_v23 }
 0x2b5   :  { %v2177_v24 = vsel %vm2174_vm0, %v2160_v14, %v3180_v51  ;;  %v2178_v12 = vsel %vm2174_vm0, %v2161_v44, %v3181_v13 }
 0x2b6   :  { %v3189_v9 = vpop.permute.xlu1 %3188  ;;  %v2175_v6 = vsel %vm2174_vm0, %v2158_v50, %v3175_v5  ;;  %v2176_v54 = vsel %vm2174_vm0, %v2159_v62, %v3176_v36 }
 0x2b7   :  { %v3184_v1 = vpop.permute.xlu0 %3183  ;;  %v3191_v55 = vunpack.i.h.bf16 %v3189_v9  ;;  %v3190_v16 = vunpack.i.l.bf16 %v3189_v9 }
 0x2b8   :  { %v3186_v39 = vunpack.i.h.bf16 %v3184_v1  ;;  %v3185_v40 = vunpack.i.l.bf16 %v3184_v1 }
 0x2b9   :  { %v2194_v26 = vsel %vm2191_vm1, %v2177_v24, %v3190_v16  ;;  %v2195_v60 = vsel %vm2191_vm1, %v2178_v12, %v3191_v55 }
 0x2ba   :  { %v3199_v52 = vpop.permute.xlu1 %3198  ;;  %v2192_v17 = vsel %vm2191_vm1, %v2175_v6, %v3185_v40  ;;  %v2193_v2 = vsel %vm2191_vm1, %v2176_v54, %v3186_v39 }
 0x2bb   :  { %v3194_v53 = vpop.permute.xlu0 %3193  ;;  %v3201_v36 = vunpack.i.h.bf16 %v3199_v52  ;;  %v3200_v5 = vunpack.i.l.bf16 %v3199_v52 }
 0x2bc   :  { %v3196_v30 = vunpack.i.h.bf16 %v3194_v53  ;;  %v3195_v57 = vunpack.i.l.bf16 %v3194_v53 }
 0x2bd   :  { %v2098_v53 = vsel %vm937_vm3, %v4425_v47, %v3201_v36  ;;  %v2097_v52 = vsel %vm937_vm3, %v4403_v63, %v3200_v5 }
 0x2be   :  { %v2209_v21 = vsel %vm2208_vm2, %v2192_v17, %v3195_v57  ;;  %v2210_v22 = vsel %vm2208_vm2, %v2193_v2, %v3196_v30  ;;  %v3209_v18 = vpop.permute.xlu1 %3208 }
 0x2bf   :  { %v3204_v23 = vpop.permute.xlu0 %3203  ;;  %v2225_v34 = vpack.c.bf16 %v2210_v22, %v2209_v21  ;;  %v3211_v7 = vunpack.i.h.bf16 %v3209_v18  ;;  %v3210_v29 = vunpack.i.l.bf16 %v3209_v18 }
 0x2c0   :  { %v3206_v25 = vunpack.i.h.bf16 %v3204_v23  ;;  %v3205_v43 = vunpack.i.l.bf16 %v3204_v23 }
 0x2c1   :  { %2769 = vmatprep.mubr.msk.bf16.mxu1 %vm2276_vm4, %v2225_v34  ;;  %v2100_v50 = vsel %vm937_vm3, %v4450_v8, %v3211_v7  ;;  %v2099_v62 = vsel %vm937_vm3, %v4452_v32, %v3210_v29 }
 0x2c2   :  { %v2212_v27 = vsel %vm2208_vm2, %v2195_v60, %v3206_v25  ;;  %v2211_v10 = vsel %vm2208_vm2, %v2194_v26, %v3205_v43  ;;  %v3219_v11 = vpop.permute.xlu1 %3218 }
 0x2c3   :  { %v2226_v61 = vpack.c.bf16 %v2212_v27, %v2211_v10  ;;  %v3214_v59 = vpop.permute.xlu0 %3213  ;;  %v3221_v0 = vunpack.i.h.bf16 %v3219_v11  ;;  %v3220_v37 = vunpack.i.l.bf16 %v3219_v11 }
 0x2c4   :  { %v3216_v39 = vunpack.i.h.bf16 %v3214_v59  ;;  %v3215_v40 = vunpack.i.l.bf16 %v3214_v59 }
 0x2c5   :  { %2770 = vmatmul.mubr.msk.bf16.vlgmr.msra.gmra.mrb[0].mxu1 %vm2276_vm4, %v2226_v61  ;;  %v2115_v6 = vsel %vm971_vm6, %v2099_v62, %v3220_v37  ;;  %v2116_v54 = vsel %vm971_vm6, %v2100_v50, %v3221_v0 }
 0x2c6   :  { %v3229_v4 = vpop.permute.xlu1 %3228  ;;  %v2114_v30 = vsel %vm971_vm6, %v2098_v53, %v3216_v39  ;;  %v2113_v57 = vsel %vm971_vm6, %v2097_v52, %v3215_v40 }
 0x2c7   :  { %v3224_v3 = vpop.permute.xlu0 %3223  ;;  %v3231_v42 = vunpack.i.h.bf16 %v3229_v4  ;;  %v3230_v46 = vunpack.i.l.bf16 %v3229_v4 }
 0x2c8   :  { %v3226_v13 = vunpack.i.h.bf16 %v3224_v3  ;;  %v3225_v51 = vunpack.i.l.bf16 %v3224_v3 }
 0x2c9   :  { %v2131_v32 = vsel %vm1005_vm8, %v2115_v6, %v3230_v46  ;;  %v2132_v16 = vsel %vm1005_vm8, %v2116_v54, %v3231_v42 }
 0x2ca   :  { %v4577_v35 = vpop.permute.xlu1 %3238  ;;  %v2129_v63 = vsel %vm1005_vm8, %v2113_v57, %v3225_v51  ;;  %v2130_v20 = vsel %vm1005_vm8, %v2114_v30, %v3226_v13 }
 0x2cb   :  { %v3234_v28 = vpop.permute.xlu0 %3233  ;;  %v3241_v14 = vunpack.i.h.bf16 %v4577_v35  ;;  %v3240_v44 = vunpack.i.l.bf16 %v4577_v35 }
 0x2cc   :  { %v3236_v8 = vunpack.i.h.bf16 %v3234_v28  ;;  %v3235_v55 = vunpack.i.l.bf16 %v3234_v28 }
 0x2cd   :  { %v2147_v7 = vsel %vm1039_vm10, %v2131_v32, %v3240_v44  ;;  %v2148_v29 = vsel %vm1039_vm10, %v2132_v16, %v3241_v14 }
 0x2ce   :  { %v4579_v9 = vpop.permute.xlu1 %3248  ;;  %v2145_v34 = vsel %vm1039_vm10, %v2129_v63, %v3235_v55  ;;  %v2146_v24 = vsel %vm1039_vm10, %v2130_v20, %v3236_v8 }
 0x2cf   :  { %v3244_v1 = vpop.permute.xlu0 %3243  ;;  %v3251_v12 = vunpack.i.h.bf16 %v4579_v9  ;;  %v3250_v25 = vunpack.i.l.bf16 %v4579_v9 }
 0x2d0   :  { %v3246_v17 = vunpack.i.h.bf16 %v3244_v1  ;;  %v3245_v2 = vunpack.i.l.bf16 %v3244_v1 }
 0x2d1   :  { %v2164_v0 = vsel %vm2157_vm15, %v2147_v7, %v3250_v25  ;;  %v2165_v37 = vsel %vm2157_vm15, %v2148_v29, %v3251_v12 }
 0x2d2   :  { %v3259_v48 = vpop.permute.xlu1 %3258  ;;  %v2162_v43 = vsel %vm2157_vm15, %v2145_v34, %v3245_v2  ;;  %v2163_v26 = vsel %vm2157_vm15, %v2146_v24, %v3246_v17 }
 0x2d3   :  { %v3254_v49 = vpop.permute.xlu0 %3253  ;;  %v3261_v60 = vunpack.i.h.bf16 %v3259_v48  ;;  %v3260_v27 = vunpack.i.l.bf16 %v3259_v48 }
 0x2d4   :  { %v3256_v21 = vunpack.i.h.bf16 %v3254_v49  ;;  %v3255_v22 = vunpack.i.l.bf16 %v3254_v49 }
 0x2d5   :  { %v2181_v46 = vsel %vm2174_vm0, %v2164_v0, %v3260_v27  ;;  %v2182_v48 = vsel %vm2174_vm0, %v2165_v37, %v3261_v60 }
 0x2d6   :  { %v3269_v47 = vpop.permute.xlu1 %3268  ;;  %v2179_v11 = vsel %vm2174_vm0, %v2162_v43, %v3255_v22  ;;  %v2180_v59 = vsel %vm2174_vm0, %v2163_v26, %v3256_v21  ;;  %v1444_v21 = vld [vmem:[#allocation3 + $0xa0] sm:$0xff] }
 0x2d7   :  { %v3264_v19 = vpop.permute.xlu0 %3263  ;;  %v3271_v35 = vunpack.i.h.bf16 %v3269_v47  ;;  %v3270_v28 = vunpack.i.l.bf16 %v3269_v47 }
 0x2d8   :  { %v3266_v18 = vunpack.i.h.bf16 %v3264_v19  ;;  %v3265_v23 = vunpack.i.l.bf16 %v3264_v19 }
 0x2d9   :  { %v2198_v62 = vsel %vm2191_vm1, %v2181_v46, %v3270_v28  ;;  %v2199_v13 = vsel %vm2191_vm1, %v2182_v48, %v3271_v35 }
 0x2da   :  { %v3279_v10 = vpop.permute.xlu1 %3278  ;;  %v2196_v1 = vsel %vm2191_vm1, %v2179_v11, %v3265_v23  ;;  %v2197_v9 = vsel %vm2191_vm1, %v2180_v59, %v3266_v18 }
 0x2db   :  { %v3274_v61 = vpop.permute.xlu0 %3273  ;;  %v3281_v47 = vunpack.i.h.bf16 %v3279_v10  ;;  %v3280_v19 = vunpack.i.l.bf16 %v3279_v10 }
 0x2dc   :  { %v3276_v4 = vunpack.i.h.bf16 %v3274_v61  ;;  %v3275_v3 = vunpack.i.l.bf16 %v3274_v61 }
 0x2dd   :  { %v2102_v26 = vsel %vm937_vm3, %v4479_v41, %v3281_v47  ;;  %v2101_v60 = vsel %vm937_vm3, %v1444_v21, %v3280_v19 }
 0x2de   :  { %v2213_v36 = vsel %vm2208_vm2, %v2196_v1, %v3275_v3  ;;  %v2214_v5 = vsel %vm2208_vm2, %v2197_v9, %v3276_v4  ;;  %v3289_v40 = vpop.permute.xlu1 %3288 }
 0x2df   :  { %v2227_v39 = vpack.c.bf16 %v2214_v5, %v2213_v36  ;;  %v3284_v42 = vpop.permute.xlu0 %3283  ;;  %v3291_v17 = vunpack.i.h.bf16 %v3289_v40  ;;  %v3290_v2 = vunpack.i.l.bf16 %v3289_v40 }
 0x2e0   :  { %v3286_v49 = vunpack.i.h.bf16 %v3284_v42  ;;  %v3285_v50 = vunpack.i.l.bf16 %v3284_v42 }
 0x2e1   :  { %2773 = vmatprep.mubr.msk.bf16.mxu1 %vm2276_vm4, %v2227_v39  ;;  %v2104_v24 = vsel %vm937_vm3, %v4475_v58, %v3291_v17  ;;  %v2103_v12 = vsel %vm937_vm3, %v4481_v15, %v3290_v2 }
 0x2e2   :  { %v2216_v51 = vsel %vm2208_vm2, %v2199_v13, %v3286_v49  ;;  %v2215_v53 = vsel %vm2208_vm2, %v2198_v62, %v3285_v50  ;;  %v3299_v6 = vpop.permute.xlu1 %3298 }
 0x2e3   :  { %v2228_v52 = vpack.c.bf16 %v2216_v51, %v2215_v53  ;;  %v3294_v54 = vpop.permute.xlu0 %3293  ;;  %v3301_v63 = vunpack.i.h.bf16 %v3299_v6  ;;  %v3300_v20 = vunpack.i.l.bf16 %v3299_v6 }
 0x2e4   :  { %v3296_v22 = vunpack.i.h.bf16 %v3294_v54  ;;  %v3295_v14 = vunpack.i.l.bf16 %v3294_v54 }
 0x2e5   :  { %2774 = vmatmul.mubr.msk.bf16.gmra.mrb[4].mxu1 %vm2276_vm4, %v2228_v52  ;;  %v2119_v27 = vsel %vm971_vm6, %v2103_v12, %v3300_v20  ;;  %v2120_v10 = vsel %vm971_vm6, %v2104_v24, %v3301_v63 }
 0x2e6   :  { %v3309_v30 = vpop.permute.xlu1 %3308  ;;  %v2118_v61 = vsel %vm971_vm6, %v2102_v26, %v3296_v22  ;;  %v2117_v11 = vsel %vm971_vm6, %v2101_v60, %v3295_v14 }
 0x2e7   :  { %v3304_v57 = vpop.permute.xlu0 %3303  ;;  %v3311_v44 = vunpack.i.h.bf16 %v3309_v30  ;;  %v3310_v18 = vunpack.i.l.bf16 %v3309_v30 }
 0x2e8   :  { %v3306_v25 = vunpack.i.h.bf16 %v3304_v57  ;;  %v3305_v43 = vunpack.i.l.bf16 %v3304_v57 }
 0x2e9   :  { %v2135_v4 = vsel %vm1005_vm8, %v2119_v27, %v3310_v18  ;;  %v2136_v15 = vsel %vm1005_vm8, %v2120_v10, %v3311_v44 }
 0x2ea   :  { %v4623_v8 = vpop.permute.xlu1 %3318  ;;  %v2133_v1 = vsel %vm1005_vm8, %v2117_v11, %v3305_v43  ;;  %v2134_v9 = vsel %vm1005_vm8, %v2118_v61, %v3306_v25 }
 0x2eb   :  { %v3314_v55 = vpop.permute.xlu0 %3313  ;;  %v3321_v36 = vunpack.i.h.bf16 %v4623_v8  ;;  %v3320_v5 = vunpack.i.l.bf16 %v4623_v8 }
 0x2ec   :  { %v3316_v59 = vunpack.i.h.bf16 %v3314_v55  ;;  %v3315_v58 = vunpack.i.l.bf16 %v3314_v55 }
 0x2ee   :  { %v4625_v32 = vpop.permute.xlu1 %3328  ;;  %v2149_v39 = vsel %vm1039_vm10, %v2133_v1, %v3315_v58  ;;  %v2150_v40 = vsel %vm1039_vm10, %v2134_v9, %v3316_v59 }
 0x2ef   :  { %v3324_v16 = vpop.permute.xlu0 %3323  ;;  %v3331_v42 = vunpack.i.h.bf16 %v4625_v32  ;;  %v3330_v46 = vunpack.i.l.bf16 %v4625_v32  ;;  %v2151_v32 = vsel %vm1039_vm10, %v2135_v4, %v3320_v5 }
 0x2f0   :  { %v3326_v3 = vunpack.i.h.bf16 %v3324_v16  ;;  %v3325_v35 = vunpack.i.l.bf16 %v3324_v16  ;;  %v2152_v16 = vsel %vm1039_vm10, %v2136_v15, %v3321_v36 }
 0x2f1   :  { %v2168_v47 = vsel %vm2157_vm15, %v2151_v32, %v3330_v46  ;;  %v2169_v19 = vsel %vm2157_vm15, %v2152_v16, %v3331_v42 }
 0x2f2   :  { %v3339_v23 = vpop.permute.xlu1 %3338  ;;  %v2166_v48 = vsel %vm2157_vm15, %v2149_v39, %v3325_v35  ;;  %v2167_v49 = vsel %vm2157_vm15, %v2150_v40, %v3326_v3 }
 0x2f3   :  { %v3334_v34 = vpop.permute.xlu0 %3333  ;;  %v3341_v50 = vunpack.i.h.bf16 %v3339_v23  ;;  %v3340_v62 = vunpack.i.l.bf16 %v3339_v23 }
 0x2f4   :  { %v3336_v7 = vunpack.i.h.bf16 %v3334_v34  ;;  %v3335_v29 = vunpack.i.l.bf16 %v3334_v34 }
 0x2f5   :  { %v2185_v22 = vsel %vm2174_vm0, %v2168_v47, %v3340_v62  ;;  %v2186_v14 = vsel %vm2174_vm0, %v2169_v19, %v3341_v50 }
 0x2f6   :  { %v3349_v28 = vpop.permute.xlu1 %3348  ;;  %v2183_v53 = vsel %vm2174_vm0, %v2166_v48, %v3335_v29  ;;  %v2184_v52 = vsel %vm2174_vm0, %v2167_v49, %v3336_v7 }
 0x2f7   :  { %v3344_v41 = vpop.permute.xlu0 %3343  ;;  %v3351_v30 = vunpack.i.h.bf16 %v3349_v28  ;;  %v3350_v57 = vunpack.i.l.bf16 %v3349_v28 }
 0x2f8   :  { %v3346_v0 = vunpack.i.h.bf16 %v3344_v41  ;;  %v3345_v37 = vunpack.i.l.bf16 %v3344_v41 }
 0x2f9   :  { %v2202_v23 = vsel %vm2191_vm1, %v2185_v22, %v3350_v57  ;;  %v2203_v34 = vsel %vm2191_vm1, %v2186_v14, %v3351_v30 }
 0x2fa   :  { %v3359_v13 = vpop.permute.xlu1 %3358  ;;  %v2200_v8 = vsel %vm2191_vm1, %v2183_v53, %v3345_v37  ;;  %v2201_v55 = vsel %vm2191_vm1, %v2184_v52, %v3346_v0 }
 0x2fb   :  { %v3354_v51 = vpop.permute.xlu0 %3353  ;;  %v3361_v11 = vunpack.i.h.bf16 %v3359_v13  ;;  %v3360_v59 = vunpack.i.l.bf16 %v3359_v13 }
 0x2fc   :  { %v3356_v6 = vunpack.i.h.bf16 %v3354_v51  ;;  %v3355_v54 = vunpack.i.l.bf16 %v3354_v51 }
 0x2fd   :  { %v2106_v5 = vsel %vm937_vm3, %v4493_v45, %v3361_v11  ;;  %v2105_v0 = vsel %vm937_vm3, %v4477_v56, %v3360_v59 }
 0x2fe   :  { %v2217_v17 = vsel %vm2208_vm2, %v2200_v8, %v3355_v54  ;;  %v2218_v2 = vsel %vm2208_vm2, %v2201_v55, %v3356_v6  ;;  %v3369_v20 = vpop.permute.xlu1 %3368 }
 0x2ff   :  { %v2229_v63 = vpack.c.bf16 %v2218_v2, %v2217_v17  ;;  %v3364_v21 = vpop.permute.xlu0 %3363  ;;  %v3371_v58 = vunpack.i.h.bf16 %v3369_v20  ;;  %v3370_v4 = vunpack.i.l.bf16 %v3369_v20 }
 0x300   :  { %v3366_v44 = vunpack.i.h.bf16 %v3364_v21  ;;  %v3365_v18 = vunpack.i.l.bf16 %v3364_v21 }
 0x301   :  { %2777 = vmatprep.mubr.msk.bf16.mxu1 %vm2276_vm4, %v2229_v63  ;;  %v2108_v37 = vsel %vm937_vm3, %v4509_v31, %v3371_v58  ;;  %v2107_v39 = vsel %vm937_vm3, %v4511_v38, %v3370_v4 }
 0x302   :  { %v2220_v24 = vsel %vm2208_vm2, %v2203_v34, %v3366_v44  ;;  %v2219_v12 = vsel %vm2208_vm2, %v2202_v23, %v3365_v18  ;;  %v3379_v43 = vpop.permute.xlu1 %3378 }
 0x303   :  { %v2230_v25 = vpack.c.bf16 %v2220_v24, %v2219_v12  ;;  %v3374_v26 = vpop.permute.xlu0 %3373  ;;  %v3381_v15 = vunpack.i.h.bf16 %v3379_v43  ;;  %v3380_v3 = vunpack.i.l.bf16 %v3379_v43 }
 0x304   :  { %v3376_v35 = vunpack.i.h.bf16 %v3374_v26  ;;  %v3375_v28 = vunpack.i.l.bf16 %v3374_v26 }
 0x305   :  { %2778 = vmatmul.mubr.msk.bf16.gmra.mrb[8].mxu1 %vm2276_vm4, %v2230_v25  ;;  %v2123_v40 = vsel %vm971_vm6, %v2107_v39, %v3380_v3  ;;  %v2124_v42 = vsel %vm971_vm6, %v2108_v37, %v3381_v15 }
 0x306   :  { %v3389_v60 = vpop.permute.xlu1 %3388  ;;  %v2122_v46 = vsel %vm971_vm6, %v2106_v5, %v3376_v35  ;;  %v2121_v48 = vsel %vm971_vm6, %v2105_v0, %v3375_v28  ;;  %v4709_v0 = vld [vmem:[%s4884_s4] ss:$0 sm:$0xff] }
 0x307   :  { %v3384_v27 = vpop.permute.xlu0 %3383  ;;  %v3391_v9 = vunpack.i.h.bf16 %v3389_v60  ;;  %v3390_v7 = vunpack.i.l.bf16 %v3389_v60 }
 0x308   :  { %v3386_v29 = vunpack.i.h.bf16 %v3384_v27  ;;  %v3385_v36 = vunpack.i.l.bf16 %v3384_v27 }
 0x309   :  { %v2139_v51 = vsel %vm1005_vm8, %v2123_v40, %v3390_v7  ;;  %v2140_v31 = vsel %vm1005_vm8, %v2124_v42, %v3391_v9 }
 0x30a   :  { %v3399_v10 = vpop.permute.xlu1 %3398  ;;  %v2137_v38 = vsel %vm1005_vm8, %v2121_v48, %v3385_v36  ;;  %v2138_v53 = vsel %vm1005_vm8, %v2122_v46, %v3386_v29 }
 0x30b   :  { %v3394_v61 = vpop.permute.xlu0 %3393  ;;  %v3401_v45 = vunpack.i.h.bf16 %v3399_v10  ;;  %v3400_v62 = vunpack.i.l.bf16 %v3399_v10 }
 0x30c   :  { %v3396_v13 = vunpack.i.h.bf16 %v3394_v61  ;;  %v3395_v56 = vunpack.i.l.bf16 %v3394_v61 }
 0x30d   :  { %v2155_v2 = vsel %vm1039_vm10, %v2139_v51, %v3400_v62  ;;  %v2156_v47 = vsel %vm1039_vm10, %v2140_v31, %v3401_v45 }
 0x30e   :  { %v3409_v41 = vpop.permute.xlu1 %3408  ;;  %v2153_v19 = vsel %vm1039_vm10, %v2137_v38, %v3395_v56  ;;  %v2154_v63 = vsel %vm1039_vm10, %v2138_v53, %v3396_v13 }
 0x30f   :  { %v3404_v1 = vpop.permute.xlu0 %3403  ;;  %v3411_v52 = vunpack.i.h.bf16 %v3409_v41  ;;  %v3410_v6 = vunpack.i.l.bf16 %v3409_v41 }
 0x310   :  { %v3406_v54 = vunpack.i.h.bf16 %v3404_v1  ;;  %v3405_v30 = vunpack.i.l.bf16 %v3404_v1 }
 0x311   :  { %v2172_v44 = vsel %vm2157_vm15, %v2155_v2, %v3410_v6  ;;  %v2173_v18 = vsel %vm2157_vm15, %v2156_v47, %v3411_v52 }
 0x312   :  { %v3419_v49 = vpop.permute.xlu1 %3418  ;;  %v2170_v23 = vsel %vm2157_vm15, %v2153_v19, %v3405_v30  ;;  %v2171_v34 = vsel %vm2157_vm15, %v2154_v63, %v3406_v54 }
 0x313   :  { %v3414_v50 = vpop.permute.xlu0 %3413  ;;  %v3421_v57 = vunpack.i.h.bf16 %v3419_v49  ;;  %v3420_v8 = vunpack.i.l.bf16 %v3419_v49 }
 0x314   :  { %v3416_v55 = vunpack.i.h.bf16 %v3414_v50  ;;  %v3415_v32 = vunpack.i.l.bf16 %v3414_v50 }
 0x315   :  { %v2189_v24 = vsel %vm2174_vm0, %v2172_v44, %v3420_v8  ;;  %v2190_v12 = vsel %vm2174_vm0, %v2173_v18, %v3421_v57 }
 0x316   :  { %v3429_v16 = vpop.permute.xlu1 %3428  ;;  %v2187_v25 = vsel %vm2174_vm0, %v2170_v23, %v3415_v32  ;;  %v2188_v43 = vsel %vm2174_vm0, %v2171_v34, %v3416_v55 }
 0x317   :  { %v3424_v17 = vpop.permute.xlu0 %3423  ;;  %v3431_v20 = vunpack.i.h.bf16 %v3429_v16  ;;  %v3430_v21 = vunpack.i.l.bf16 %v3429_v16 }
 0x318   :  { %v3426_v22 = vunpack.i.h.bf16 %v3424_v17  ;;  %v3425_v14 = vunpack.i.l.bf16 %v3424_v17 }
 0x319   :  { %v2206_v59 = vsel %vm2191_vm1, %v2189_v24, %v3430_v21  ;;  %v2207_v58 = vsel %vm2191_vm1, %v2190_v12, %v3431_v20 }
 0x31a   :  { %v3439_v26 = vpop.permute.xlu1 %3438  ;;  %v2204_v4 = vsel %vm2191_vm1, %v2187_v25, %v3425_v14  ;;  %v2205_v15 = vsel %vm2191_vm1, %v2188_v43, %v3426_v22 }
 0x31b   :  { %v3434_v60 = vpop.permute.xlu0 %3433  ;;  %v3441_v27 = vunpack.i.h.bf16 %v3439_v26  ;;  %v3440_v10 = vunpack.i.l.bf16 %v3439_v26 }
 0x31c   :  { %v3436_v61 = vunpack.i.h.bf16 %v3434_v60  ;;  %v3435_v11 = vunpack.i.l.bf16 %v3434_v60 }
 0x31d   :  { %v2223_v3 = vsel %vm2208_vm2, %v2206_v59, %v3440_v10  ;;  %v2224_v35 = vsel %vm2208_vm2, %v2207_v58, %v3441_v27 }
 0x31e   :  { %v2221_v28 = vsel %vm2208_vm2, %v2204_v4, %v3435_v11  ;;  %v2222_v41 = vsel %vm2208_vm2, %v2205_v15, %v3436_v61  ;;  %v2232_v1 = vpack.c.bf16 %v2224_v35, %v2223_v3 }
 0x31f   :  { %v2231_v9 = vpack.c.bf16 %v2222_v41, %v2221_v28 }
 0x321   :  { %2781 = vmatprep.mubr.msk.bf16.mxu1 %vm2276_vm4, %v2231_v9 }
 0x322   :  { %2782 = vmatmul.mubr.msk.bf16.gmra.mrb[12].mxu1 %vm2276_vm4, %v2232_v1 }
 0x398   :  { %v2771_v7 = vpop.f32.mrb[0].mxu1 }
 0x399   :  { %v2339_v29 = vpop.f32.mrb[1].mxu1  ;;  %v4720_v42 = vadd.f32 %v2771_v7, %v4709_v0 }
 0x39a   :  { %v2772_v36 = vpop.f32.mrb[2].mxu1  ;;  %v4715_v39 = vadd.f32 %v4709_v0, %v2339_v29 }
 0x39b   :  { %v2342_v5 = vpop.f32.mrb[3].mxu1  ;;  %v4730_v45 = vadd.f32 %v2772_v36, %v4709_v0  ;;  %v2441_v13 = vmul.f32 %v4720_v42, %v4720_v42  ;;  %v2405_v31 = vsel %vm937_vm3, %v4720_v42, 0.0 }
 0x39c   :  { %v4712_v37 = vadd.f32 %v4709_v0, %v2342_v5  ;;  %v2439_v46 = vmul.f32 %v4715_v39, %v4715_v39  ;;  %v2402_v49 = vsel %vm937_vm3, %v4715_v39, 0.0 }
 0x39d   :  { %v2442_v38 = vmul.f32 %v4730_v45, %v4730_v45  ;;  %v2458_v52 = vsel %vm937_vm3, %v2441_v13, 0.0  ;;  %v2407_v57 = vsel %vm937_vm3, %v4730_v45, 0.0 }
 0x39e   :  { %v2440_v40 = vmul.f32 %v4712_v37, %v4712_v37  ;;  %v2403_v48 = vsel %vm937_vm3, %v4712_v37, 0.0  ;;  %v2455_v56 = vsel %vm937_vm3, %v2439_v46, 0.0 }
 0x39f   :  { %v2404_v62 = vadd.f32 %v2403_v48, %v2402_v49  ;;  %v2460_v16 = vsel %vm937_vm3, %v2442_v38, 0.0 }
 0x3a0   :  { %v2456_v50 = vsel %vm937_vm3, %v2440_v40, 0.0 }
 0x3a1   :  { %v2457_v51 = vadd.f32 %v2456_v50, %v2455_v56  ;;  %v2406_v53 = vadd.f32 %v2405_v31, %v2404_v62 }
 0x3a3   :  { %v2459_v54 = vadd.f32 %v2458_v52, %v2457_v51  ;;  %v2408_v17 = vadd.f32 %v2407_v57, %v2406_v53 }
 0x3a5   :  { %v2461_v22 = vadd.f32 %v2460_v16, %v2459_v54 }
 0x3b8   :  { %v2775_v6 = vpop.f32.mrb[4].mxu1 }
 0x3b9   :  { %v2355_v30 = vpop.f32.mrb[5].mxu1  ;;  %v4743_v8 = vadd.f32 %v2775_v6, %v4709_v0 }
 0x3ba   :  { %v4746_v55 = vadd.f32 %v4709_v0, %v2355_v30  ;;  %v2776_v32 = vpop.f32.mrb[6].mxu1 }
 0x3bb   :  { %v2358_v2 = vpop.f32.mrb[7].mxu1  ;;  %v4754_v63 = vadd.f32 %v2776_v32, %v4709_v0  ;;  %v2445_v14 = vmul.f32 %v4743_v8, %v4743_v8  ;;  %v2413_v12 = vsel %vm937_vm3, %v4743_v8, 0.0 }
 0x3bc   :  { %v2409_v47 = vsel %vm937_vm3, %v4746_v55, 0.0  ;;  %v2443_v19 = vmul.f32 %v4746_v55, %v4746_v55  ;;  %v4757_v20 = vadd.f32 %v4709_v0, %v2358_v2 }
 0x3bd   :  { %v2410_v21 = vadd.f32 %v2409_v47, %v2408_v17  ;;  %v2446_v25 = vmul.f32 %v4754_v63, %v4754_v63  ;;  %v2466_v27 = vsel %vm937_vm3, %v2445_v14, 0.0  ;;  %v2415_v10 = vsel %vm937_vm3, %v4754_v63, 0.0 }
 0x3be   :  { %v2462_v44 = vsel %vm937_vm3, %v2443_v19, 0.0  ;;  %v2411_v18 = vsel %vm937_vm3, %v4757_v20, 0.0  ;;  %v2444_v23 = vmul.f32 %v4757_v20, %v4757_v20 }
 0x3bf   :  { %v2463_v34 = vadd.f32 %v2462_v44, %v2461_v22  ;;  %v2412_v24 = vadd.f32 %v2411_v18, %v2410_v21  ;;  %v2468_v59 = vsel %vm937_vm3, %v2446_v25, 0.0 }
 0x3c0   :  { %v2464_v43 = vsel %vm937_vm3, %v2444_v23, 0.0 }
 0x3c1   :  { %v2414_v26 = vadd.f32 %v2413_v12, %v2412_v24  ;;  %v2465_v60 = vadd.f32 %v2464_v43, %v2463_v34 }
 0x3c3   :  { %v2467_v61 = vadd.f32 %v2466_v27, %v2465_v60  ;;  %v2416_v11 = vadd.f32 %v2415_v10, %v2414_v26 }
 0x3c5   :  { %v2469_v58 = vadd.f32 %v2468_v59, %v2467_v61 }
 0x3d8   :  { %v2779_v4 = vpop.f32.mrb[8].mxu1 }
 0x3d9   :  { %v2371_v15 = vpop.f32.mrb[9].mxu1  ;;  %v4776_v3 = vadd.f32 %v2779_v4, %v4709_v0 }
 0x3da   :  { %v4779_v35 = vadd.f32 %v4709_v0, %v2371_v15  ;;  %v2780_v28 = vpop.f32.mrb[10].mxu1 }
 0x3db   :  { %v2374_v41 = vpop.f32.mrb[11].mxu1  ;;  %v4786_v7 = vadd.f32 %v2780_v28, %v4709_v0  ;;  %v2449_v5 = vmul.f32 %v4776_v3, %v4776_v3  ;;  %v2421_v62 = vsel %vm937_vm3, %v4776_v3, 0.0 }
 0x3dc   :  { %v2417_v1 = vsel %vm937_vm3, %v4779_v35, 0.0  ;;  %v2447_v9 = vmul.f32 %v4779_v35, %v4779_v35  ;;  %v4789_v29 = vadd.f32 %v4709_v0, %v2374_v41 }
 0x3dd   :  { %v2418_v36 = vadd.f32 %v2417_v1, %v2416_v11  ;;  %v2450_v13 = vmul.f32 %v4786_v7, %v4786_v7  ;;  %v2474_v38 = vsel %vm937_vm3, %v2449_v5, 0.0  ;;  %v2423_v53 = vsel %vm937_vm3, %v4786_v7, 0.0 }
 0x3de   :  { %v2470_v40 = vsel %vm937_vm3, %v2447_v9, 0.0  ;;  %v2419_v46 = vsel %vm937_vm3, %v4789_v29, 0.0  ;;  %v2448_v48 = vmul.f32 %v4789_v29, %v4789_v29 }
 0x3df   :  { %v2471_v49 = vadd.f32 %v2470_v40, %v2469_v58  ;;  %v2420_v50 = vadd.f32 %v2419_v46, %v2418_v36  ;;  %v2476_v54 = vsel %vm937_vm3, %v2450_v13, 0.0 }
 0x3e0   :  { %v2472_v56 = vsel %vm937_vm3, %v2448_v48, 0.0 }
 0x3e1   :  { %v2422_v51 = vadd.f32 %v2421_v62, %v2420_v50  ;;  %v2473_v31 = vadd.f32 %v2472_v56, %v2471_v49 }
 0x3e3   :  { %v2475_v52 = vadd.f32 %v2474_v38, %v2473_v31  ;;  %v2424_v6 = vadd.f32 %v2423_v53, %v2422_v51  ;;  %v2498_v38 = vld [vmem:[%s4885_s5] sm:$0x1]  ;;  %s3491_s5 = smov [#allocation4]  }
 0x3e5   :  { %v2477_v30 = vadd.f32 %v2476_v54, %v2475_v52 }
 0x3f5   :  { %v2783_v57 = vpop.f32.mrb[12].mxu1 }
 0x3f6   :  { %v2387_v32 = vpop.f32.mrb[13].mxu1  ;;  %v4808_v16 = vadd.f32 %v2783_v57, %v4709_v0 }
 0x3f7   :  { %v4811_v17 = vadd.f32 %v4709_v0, %v2387_v32  ;;  %v2784_v2 = vpop.f32.mrb[14].mxu1 }
 0x3f8   :  { %v2390_v47 = vpop.f32.mrb[15].mxu1  ;;  %v2399_v22 = vadd.f32 %v2784_v2, %v4709_v0  ;;  %v2453_v18 = vmul.f32 %v4808_v16, %v4808_v16  ;;  %v2429_v43 = vsel %vm937_vm3, %v4808_v16, 0.0 }
 0x3f9   :  { %v2425_v19 = vsel %vm937_vm3, %v4811_v17, 0.0  ;;  %v2451_v21 = vmul.f32 %v4811_v17, %v4811_v17  ;;  %v2391_v14 = vadd.f32 %v4709_v0, %v2390_v47 }
 0x3fa   :  { %v2426_v44 = vadd.f32 %v2425_v19, %v2424_v6  ;;  %v2454_v26 = vmul.f32 %v2399_v22, %v2399_v22  ;;  %v2482_v0 = vsel %vm937_vm3, %v2453_v18, 0.0  ;;  %v2431_v61 = vsel %vm937_vm3, %v2399_v22, 0.0  ;;  %v2500_v6 = vld [vmem:[%s4886_s6] sm:$0x1]  ;;  %s2582_s6 = sshll.u32 %s3491_s5, 4  ;;  %s2583_s6 = int_to_ptr.vmem [resolvable:$true] %s2582_s6 }
 0x3fb   :  { %v2478_v23 = vsel %vm937_vm3, %v2451_v21, 0.0  ;;  %v2427_v34 = vsel %vm937_vm3, %v2391_v14, 0.0  ;;  %v2452_v24 = vmul.f32 %v2391_v14, %v2391_v14  ;;  %s3454_s14 = scalar_lea.vmem %s2583_s6, 2048  ;;  %p3459_p1 = scmp.lt.s32.totalorder %s2583_s6, %s2583_s6 }
 0x3fc   :  { %v2479_v12 = vadd.f32 %v2478_v23, %v2477_v30  ;;  %v2428_v25 = vadd.f32 %v2427_v34, %v2426_v44  ;;  %v2484_v58 = vsel %vm937_vm3, %v2454_v26, 0.0  ;;  %p3455_p0 = scmp.ne.s32.totalorder %s2583_s6, %s3454_s14  ;;  %p3460_p2 = scmp.lt.s32.totalorder %s3454_s14, %s3454_s14 }
 0x3fd   :  { %v2480_v60 = vsel %vm937_vm3, %v2452_v24, 0.0 }
 0x3fe   :  { %v2430_v27 = vadd.f32 %v2429_v43, %v2428_v25  ;;  %v2481_v10 = vadd.f32 %v2480_v60, %v2479_v12  ;;  %p3461_p3 = por %p3460_p2, %p3459_p1 }
 0x400   :  { %v2432_v11 = vadd.f32 %v2431_v61, %v2430_v27  ;;  %v2483_v59 = vadd.f32 %v2482_v0, %v2481_v10  ;;  %p3462_p4 = pnand %p3461_p3, %p3455_p0 }
 0x402   :  { %v2433_v4 = vrot.slane %v2432_v11, 4  ;;  %v2485_v15 = vadd.f32 %v2484_v58, %v2483_v59 }
 0x404   :  { %v2434_v28 = vadd.f32 %v2433_v4, %v2432_v11  ;;  %v2486_v41 = vrot.slane %v2485_v15, 4 }
 0x406   :  { %v2435_v1 = vrot.slane %v2434_v28, 2  ;;  %v2487_v9 = vadd.f32 %v2486_v41, %v2485_v15 }
 0x408   :  { %v2436_v36 = vadd.f32 %v2435_v1, %v2434_v28  ;;  %v2488_v5 = vrot.slane %v2487_v9, 2 }
 0x40a   :  { %v2437_v40 = vrot.slane %v2436_v36, 1  ;;  %v2489_v46 = vadd.f32 %v2488_v5, %v2487_v9 }
 0x40c   :  { %v2438_v48 = vadd.f32 %v2437_v40, %v2436_v36  ;;  %v2490_v49 = vrot.slane %v2489_v46, 1 }
 0x40e   :  { %v2491_v50 = vadd.f32 %v2490_v49, %v2489_v46  ;;  %v2492_v62 = vmul.f32 0.0078125, %v2438_v48 }
 0x410   :  { %v2493_v13 = vmul.f32 0.0078125, %v2491_v50  ;;  %v2494_v56 = vmul.f32 %v2492_v62, %v2492_v62 }
 0x412   :  { %v2495_v51 = vsub.f32 %v2493_v13, %v2494_v56 }
 0x414   :  { %v2496_v31 = vadd.f32 1e-05, %v2495_v51 }
 0x416   :  { %3452 = vrsqrt.f32 %v2496_v31 }
 0x420   :  { %v3453_v53 = vpop.eup %3452 }
 0x421   :  { %v2499_v52 = vmul.f32 %v3453_v53, %v2498_v38 }
 0x423   :  { %v2501_v54 = vmul.f32 %v2499_v52, %v2492_v62  ;;  %v2506_v30 = vrot.slane %v2499_v52, %v4361_v33 }
 0x425   :  { %v2502_v57 = vsub.f32 %v2500_v6, %v2501_v54  ;;  %v2520_v32 = vmul.f32 %v2506_v30, %v2391_v14  ;;  %v2507_v2 = vmul.f32 %v2506_v30, %v4715_v39  ;;  %v2508_v47 = vmul.f32 %v2506_v30, %v4712_v37 }
 0x426   :  { %v2509_v19 = vmul.f32 %v2506_v30, %v4720_v42  ;;  %v2510_v21 = vmul.f32 %v2506_v30, %v4730_v45  ;;  %v2511_v44 = vmul.f32 %v2506_v30, %v4746_v55  ;;  %v2512_v18 = vmul.f32 %v2506_v30, %v4757_v20 }
 0x427   :  { %v2527_v23 = vrot.slane %v2502_v57, %v4361_v33  ;;  %v2513_v34 = vmul.f32 %v2506_v30, %v4743_v8  ;;  %v2514_v24 = vmul.f32 %v2506_v30, %v4754_v63  ;;  %v2515_v14 = vmul.f32 %v2506_v30, %v4779_v35 }
 0x428   :  { %v2516_v39 = vmul.f32 %v2506_v30, %v4789_v29  ;;  %v2517_v37 = vmul.f32 %v2506_v30, %v4776_v3  ;;  %v2518_v42 = vmul.f32 %v2506_v30, %v4786_v7  ;;  %v2519_v45 = vmul.f32 %v2506_v30, %v4811_v17 }
 0x429   :  { %v2542_v12 = vadd.f32 %v2527_v23, %v2520_v32  ;;  %v2521_v55 = vmul.f32 %v2506_v30, %v4808_v16  ;;  %v2522_v20 = vmul.f32 %v2506_v30, %v2399_v22  ;;  %v2529_v25 = vadd.f32 %v2527_v23, %v2507_v2 }
 0x42a   :  { %v2530_v33 = vadd.f32 %v2527_v23, %v2508_v47  ;;  %v2531_v43 = vadd.f32 %v2527_v23, %v2509_v19  ;;  %v2532_v8 = vadd.f32 %v2527_v23, %v2510_v21  ;;  %v2533_v26 = vadd.f32 %v2527_v23, %v2511_v44 }
 0x42b   :  { %v2558_v63 = vmax.f32 %v2542_v12, 0.0  ;;  %v2534_v60 = vadd.f32 %v2527_v23, %v2512_v18  ;;  %v2535_v35 = vadd.f32 %v2527_v23, %v2513_v34  ;;  %v2536_v27 = vadd.f32 %v2527_v23, %v2514_v24 }
 0x42c   :  { %v2537_v29 = vadd.f32 %v2527_v23, %v2515_v14  ;;  %v2538_v10 = vadd.f32 %v2527_v23, %v2516_v39  ;;  %v2539_v3 = vadd.f32 %v2527_v23, %v2517_v37  ;;  %v2540_v0 = vadd.f32 %v2527_v23, %v2518_v42 }
 0x42d   :  { %2574 = vst.msk [vmem:[#allocation4 + $0x68] sm:$0xff] %vm937_vm3, %v2558_v63  ;;  %v2541_v7 = vadd.f32 %v2527_v23, %v2519_v45  ;;  %v2543_v17 = vadd.f32 %v2527_v23, %v2521_v55  ;;  %v2544_v61 = vadd.f32 %v2527_v23, %v2522_v20  ;;  %v2545_v16 = vmax.f32 %v2529_v25, 0.0 }
 0x42e   :  { %v2546_v22 = vmax.f32 %v2530_v33, 0.0  ;;  %v2547_v11 = vmax.f32 %v2531_v43, 0.0  ;;  %v2548_v59 = vmax.f32 %v2532_v8, 0.0  ;;  %v2549_v58 = vmax.f32 %v2533_v26, 0.0 }
 0x42f   :  { %v2550_v4 = vmax.f32 %v2534_v60, 0.0  ;;  %v2551_v15 = vmax.f32 %v2535_v35, 0.0  ;;  %v2552_v28 = vmax.f32 %v2536_v27, 0.0  ;;  %v2553_v41 = vmax.f32 %v2537_v29, 0.0  ;;  %2561 = vst.msk [vmem:[#allocation4] sm:$0xff] %vm937_vm3, %v2545_v16 }
 0x430   :  { %v2554_v1 = vmax.f32 %v2538_v10, 0.0  ;;  %v2555_v9 = vmax.f32 %v2539_v3, 0.0  ;;  %v2556_v36 = vmax.f32 %v2540_v0, 0.0  ;;  %v2557_v5 = vmax.f32 %v2541_v7, 0.0  ;;  %2562 = vst.msk [vmem:[#allocation4 + $0x8] sm:$0xff] %vm937_vm3, %v2546_v22  ;;  %2563 = vst.msk [vmem:[#allocation4 + $0x10] sm:$0xff] %vm937_vm3, %v2547_v11 }
 0x431   :  { %2564 = vst.msk [vmem:[#allocation4 + $0x18] sm:$0xff] %vm937_vm3, %v2548_v59  ;;  %2565 = vst.msk [vmem:[#allocation4 + $0x20] sm:$0xff] %vm937_vm3, %v2549_v58  ;;  %v2559_v40 = vmax.f32 %v2543_v17, 0.0  ;;  %v2560_v46 = vmax.f32 %v2544_v61, 0.0 }
 0x432   :  { %2566 = vst.msk [vmem:[#allocation4 + $0x28] sm:$0xff] %vm937_vm3, %v2550_v4  ;;  %2567 = vst.msk [vmem:[#allocation4 + $0x30] sm:$0xff] %vm937_vm3, %v2551_v15 }
 0x433   :  { %2568 = vst.msk [vmem:[#allocation4 + $0x38] sm:$0xff] %vm937_vm3, %v2552_v28  ;;  %2569 = vst.msk [vmem:[#allocation4 + $0x40] sm:$0xff] %vm937_vm3, %v2553_v41 }
 0x434   :  { %2570 = vst.msk [vmem:[#allocation4 + $0x48] sm:$0xff] %vm937_vm3, %v2554_v1  ;;  %2571 = vst.msk [vmem:[#allocation4 + $0x50] sm:$0xff] %vm937_vm3, %v2555_v9 }
 0x435   :  { %2572 = vst.msk [vmem:[#allocation4 + $0x58] sm:$0xff] %vm937_vm3, %v2556_v36  ;;  %2573 = vst.msk [vmem:[#allocation4 + $0x60] sm:$0xff] %vm937_vm3, %v2557_v5 }
 0x436   :  { %2575 = vst.msk [vmem:[#allocation4 + $0x70] sm:$0xff] %vm937_vm3, %v2559_v40  ;;  %2576 = vst.msk [vmem:[#allocation4 + $0x78] sm:$0xff] %vm937_vm3, %v2560_v46 }
 0x437   :  { %3465 = shalt.err (!%p3462_p4)
}
 0x438   :  { %s3466_s2 = scalar_lea.hbm %s4887_s7, 2048 }
 0x439   :  { %p3467_p5 = scmp.ne.s32.totalorder %s4887_s7, %s3466_s2  ;;  %p3470_p6 = scmp.lt.u32.totalorder %s3466_s2, %s4887_s7 }
 0x43b   :  { %p3472_p7 = pnand %p3470_p6, %p3467_p5 }
 0x43d   :  { %3475 = shalt.err (!%p3472_p7)
}
 0x43e   :  { %s3492_s17 = smov 128  }
 0x43f   :  { %2588 = dma.vmem_to_hbm [thread:$0]  %s2583_s6, 2048, %s4887_s7, [#allocation5], %s3492_s17, %s3492_s17, %s3479_s25  }
 0x440   :  { %3476 = dma.done.wait [#allocation5], 2048  }
 0x441   :  { %3477 = vsyncadd [#allocation5], 4294965248 }
 0x442   :  { %2592 = vsyncpa [#allocation5], 1 }

</bundles_post_ra>
